<compile_context>
chip_gen: v5e
topology: v5e:2x2
jax: 0.10.0
libtpu: 0.0.40
codegen_flags: <defaults>
</compile_context>

<pallas_src>
import jax
import jax.numpy as jnp
from jax.experimental import pallas as pl
from jax.experimental.pallas import tpu as pltpu


# ---------------------------------------------------------------------------
# Fused kernel: [proj -> biLSTM layer 1] -> [proj -> biLSTM layer 2] -> decoder
#   x_ref     : (T, B, 2H)   time-major input
#   wihN_ref  : (2H, 8H)     [W_ih_fwd^T | W_ih_bwd^T]
#   bN_ref    : (1, 8H)      fused b_ih + b_hh, both directions
#   whhN_ref  : (2H, 8H)     block-diag [[W_hh_fwd^T, 0], [0, W_hh_bwd^T]]
#   dw1/db1   : (2H, D), (1, D)   decoder Linear 1
#   dw2/db2   : (1, D), (1, 1)    decoder Linear 2 (as row vector + scalar)
#   o_ref     : (T, B)       affinities (time-major)
# ---------------------------------------------------------------------------
def _rlsumm_fused_kernel(x_ref, wih1_ref, b1_ref, whh1_ref,
                         wih2_ref, b2_ref, whh2_ref,
                         dw1_ref, db1_ref, dw2_ref, db2_ref,
                         o_ref,
                         gates_ref, hbuf_ref, hcat_ref, c_ref):
    T, B, G8 = gates_ref.shape
    H4 = G8 // 2
    H = H4 // 4
    TWO_H = 2 * H

    def run_layer(layer_in, wih, bias, whh):
        # Input projection for all timesteps / both directions: one big GEMM
        # straight into VMEM scratch (never materialized in HBM).
        flat = layer_in.reshape(T * B, TWO_H)
        gates_ref[...] = (
            jnp.dot(flat, wih, preferred_element_type=jnp.float32) + bias
        ).reshape(T, B, G8)

        hcat_ref[...] = jnp.zeros_like(hcat_ref)   # [h_fwd | h_bwd]
        c_ref[...] = jnp.zeros_like(c_ref)         # [c_fwd | c_bwd]

        def step(s, carry):
            hcat = hcat_ref[...]                                   # (B, 2H)
            # Single fused recurrent matmul for both directions (N = 8H).
            rec = jnp.dot(hcat, whh, preferred_element_type=jnp.float32)
            g_f = gates_ref[s, :, 0:H4] + rec[:, 0:H4]             # fwd @ s
            g_b = gates_ref[T - 1 - s, :, H4:G8] + rec[:, H4:G8]   # bwd @ T-1-s

            # Full-width transcendentals (EUP), then slice gate blocks.
            sig_f = jax.nn.sigmoid(g_f)
            th_f = jnp.tanh(g_f)
            sig_b = jax.nn.sigmoid(g_b)
            th_b = jnp.tanh(g_b)

            c_f = (sig_f[:, H:2 * H] * c_ref[:, 0:H]
                   + sig_f[:, 0:H] * th_f[:, 2 * H:3 * H])
            c_b = (sig_b[:, H:2 * H] * c_ref[:, H:TWO_H]
                   + sig_b[:, 0:H] * th_b[:, 2 * H:3 * H])
            h_f = sig_f[:, 3 * H:4 * H] * jnp.tanh(c_f)
            h_b = sig_b[:, 3 * H:4 * H] * jnp.tanh(c_b)

            c_ref[:, 0:H] = c_f
            c_ref[:, H:TWO_H] = c_b
            hcat_ref[:, 0:H] = h_f
            hcat_ref[:, H:TWO_H] = h_b
            hbuf_ref[s, :, 0:H] = h_f
            hbuf_ref[T - 1 - s, :, H:TWO_H] = h_b
            return carry

        jax.lax.fori_loop(0, T, step, 0,
                          unroll=True if T <= 16 else 2)

    # Layer 1: reads x, writes hbuf.
    run_layer(x_ref[...], wih1_ref[...], b1_ref[...], whh1_ref[...])
    # Layer 2: gates are computed from hbuf up-front, then hbuf is overwritten
    # with the layer-2 output (gates/hbuf scratch reused; all stays in VMEM).
    run_layer(hbuf_ref[...], wih2_ref[...], b2_ref[...], whh2_ref[...])

    # Decoder epilogue on the VMEM-resident layer-2 output.
    h2 = hbuf_ref[...]                                            # (T, B, 2H)
    hdec = jnp.dot(h2.reshape(T * B, TWO_H), dw1_ref[...],
                   preferred_element_type=jnp.float32) + db1_ref[...]
    hdec = jnp.maximum(hdec, 0.0)                                 # (T*B, D)
    D = hdec.shape[-1]
    hdec3 = hdec.reshape(T, B, D)
    # (D -> 1) projection as VPU multiply + lane reduction (no width-1 matmul,
    # no width-1 output stores).
    aff = jnp.sum(hdec3 * dw2_ref[...].reshape(1, 1, D), axis=-1)  # (T, B)
    o_ref[...] = aff + db2_ref[...]


def rl_summ_forward(x_bti, params):
    """x_bti: (B, T, 2*hidden) -> affinities (B, T)."""
    B, T, I = x_bti.shape
    H = I // 2
    G8 = 8 * H
    B_pad = ((B + 7) // 8) * 8                     # 8-sublane granule

    x = jnp.transpose(x_bti, (1, 0, 2))            # (T, B, 2H) time-major
    if B_pad != B:
        x = jnp.pad(x, ((0, 0), (0, B_pad - B), (0, 0)))

    (wih1, b1, whh1), (wih2, b2, whh2) = params["lstm"]
    dw1, db1, dw2, db2 = params["dec"]
    D = dw1.shape[1]

    itemsize = 4
    scratch_bytes = itemsize * (T * B_pad * G8 + T * B_pad * I + 2 * B_pad * I)
    io_bytes = itemsize * (T * B_pad * I + T * B_pad)
    w_bytes = itemsize * (4 * I * G8 + 2 * G8 + I * D + 2 * D + 1)
    vmem_limit = int(min(64 * 2 ** 20,
                         max(16 * 2 ** 20,
                             scratch_bytes + 2 * (io_bytes + w_bytes))))

    aff_tb = pl.pallas_call(
        _rlsumm_fused_kernel,
        out_shape=jax.ShapeDtypeStruct((T, B_pad), jnp.float32),
        grid=(1,),
        in_specs=[
            pl.BlockSpec((T, B_pad, I), lambda i: (0, 0, 0)),   # x
            pl.BlockSpec((I, G8), lambda i: (0, 0)),            # wih1
            pl.BlockSpec((1, G8), lambda i: (0, 0)),            # b1
            pl.BlockSpec((I, G8), lambda i: (0, 0)),            # whh1
            pl.BlockSpec((I, G8), lambda i: (0, 0)),            # wih2
            pl.BlockSpec((1, G8), lambda i: (0, 0)),            # b2
            pl.BlockSpec((I, G8), lambda i: (0, 0)),            # whh2
            pl.BlockSpec((I, D), lambda i: (0, 0)),             # dec W1^T
            pl.BlockSpec((1, D), lambda i: (0, 0)),             # dec b1
            pl.BlockSpec((1, D), lambda i: (0, 0)),             # dec w2 row
            pl.BlockSpec((1, 1), lambda i: (0, 0)),             # dec b2
        ],
        out_specs=pl.BlockSpec((T, B_pad), lambda i: (0, 0)),
        scratch_shapes=[
            pltpu.VMEM((T, B_pad, G8), jnp.float32),   # gates (reused per layer)
            pltpu.VMEM((T, B_pad, I), jnp.float32),    # hidden states (reused)
            pltpu.VMEM((B_pad, I), jnp.float32),       # carried h [fwd|bwd]
            pltpu.VMEM((B_pad, I), jnp.float32),       # carried c [fwd|bwd]
        ],
        compiler_params=pltpu.CompilerParams(
            dimension_semantics=("arbitrary",),
            vmem_limit_bytes=vmem_limit),
    )(x, wih1, b1, whh1, wih2, b2, whh2, dw1, db1, dw2, db2)

    return jnp.transpose(aff_tb[:, :B])            # (B, T)


# ---------------------------------------------------------------------------
# Parameter construction (deterministic, PyTorch-style uniform init), stored
# in the fused layout the kernel consumes.
# ---------------------------------------------------------------------------
def init_params(key, hidden_dim, decoder_dim):
    H = hidden_dim
    I = 2 * H
    G4, G8 = 4 * H, 8 * H
    k_lstm = float(1.0 / (H ** 0.5))
    layers = []
    for _ in range(2):
        key, kf1, kf2, kf3, kf4, kb1, kb2, kb3, kb4 = jax.random.split(key, 9)
        w_ih_f = jax.random.uniform(kf1, (G4, I), jnp.float32, -k_lstm, k_lstm)
        w_hh_f = jax.random.uniform(kf2, (G4, H), jnp.float32, -k_lstm, k_lstm)
        b_ih_f = jax.random.uniform(kf3, (G4,), jnp.float32, -k_lstm, k_lstm)
        b_hh_f = jax.random.uniform(kf4, (G4,), jnp.float32, -k_lstm, k_lstm)
        w_ih_b = jax.random.uniform(kb1, (G4, I), jnp.float32, -k_lstm, k_lstm)
        w_hh_b = jax.random.uniform(kb2, (G4, H), jnp.float32, -k_lstm, k_lstm)
        b_ih_b = jax.random.uniform(kb3, (G4,), jnp.float32, -k_lstm, k_lstm)
        b_hh_b = jax.random.uniform(kb4, (G4,), jnp.float32, -k_lstm, k_lstm)

        wih_cat = jnp.concatenate([w_ih_f.T, w_ih_b.T], axis=1)          # (2H, 8H)
        b_cat = jnp.concatenate([b_ih_f + b_hh_f, b_ih_b + b_hh_b]).reshape(1, G8)
        whh_bd = jnp.zeros((I, G8), jnp.float32)                          # (2H, 8H)
        whh_bd = whh_bd.at[:H, :G4].set(w_hh_f.T)
        whh_bd = whh_bd.at[H:, G4:].set(w_hh_b.T)
        layers.append((wih_cat, b_cat, whh_bd))

    key, k1, k2, k3, k4 = jax.random.split(key, 5)
    k_d1 = float(1.0 / ((2 * H) ** 0.5))
    k_d2 = float(1.0 / (decoder_dim ** 0.5))
    w1 = jax.random.uniform(k1, (decoder_dim, 2 * H), jnp.float32, -k_d1, k_d1)
    b1 = jax.random.uniform(k2, (decoder_dim,), jnp.float32, -k_d1, k_d1)
    w2 = jax.random.uniform(k3, (1, decoder_dim), jnp.float32, -k_d2, k_d2)
    b2 = jax.random.uniform(k4, (1,), jnp.float32, -k_d2, k_d2)
    dec = (w1.T, b1.reshape(1, -1), w2, b2.reshape(1, 1))
    return {"lstm": layers, "dec": dec}


# ---------------------------------------------------------------------------
# Pure-JAX reference (sanity check)
# ---------------------------------------------------------------------------
def _lstm_dir_ref(x, w_ih_t, w_hh_t, b, reverse):
    T, B, _ = x.shape
    H = w_hh_t.shape[0]
    xs = x[::-1] if reverse else x

    def step(carry, xt):
        h, c = carry
        gates = xt @ w_ih_t + h @ w_hh_t + b
        i = jax.nn.sigmoid(gates[:, :H])
        f = jax.nn.sigmoid(gates[:, H:2 * H])
        g = jnp.tanh(gates[:, 2 * H:3 * H])
        o = jax.nn.sigmoid(gates[:, 3 * H:])
        c = f * c + i * g
        h = o * jnp.tanh(c)
        return (h, c), h

    (_, _), hs = jax.lax.scan(step, (jnp.zeros((B, H)), jnp.zeros((B, H))), xs)
    return hs[::-1] if reverse else hs


def rl_summ_ref(x_bti, params):
    B, T, I = x_bti.shape
    H = I // 2
    G4 = 4 * H
    out = jnp.transpose(x_bti, (1, 0, 2))
    for wih_cat, b_cat, whh_bd in params["lstm"]:
        wih_f, wih_b = wih_cat[:, :G4], wih_cat[:, G4:]
        whh_f, whh_b = whh_bd[:H, :G4], whh_bd[H:, G4:]
        b_f, b_b = b_cat[:, :G4], b_cat[:, G4:]
        fwd = _lstm_dir_ref(out, wih_f, whh_f, b_f, reverse=False)
        bwd = _lstm_dir_ref(out, wih_b, whh_b, b_b, reverse=True)
        out = jnp.concatenate([fwd, bwd], axis=-1)
    sent = jnp.transpose(out, (1, 0, 2))              # (B, T, 2H)
    w1_t, b1, w2_row, b2 = params["dec"]
    h = jnp.maximum(sent.reshape(B * T, -1) @ w1_t + b1, 0.0)
    return (h @ w2_row.T + b2).reshape(B, T)


if __name__ == "__main__":
    hidden_dim = 32
    decoder_dim = 32
    B, T = 2, 8

    key = jax.random.PRNGKey(0)
    key, kx = jax.random.split(key)
    x = jax.random.normal(kx, (B, T, 2 * hidden_dim), dtype=jnp.float32)
    params = init_params(key, hidden_dim, decoder_dim)

    forward_jit = jax.jit(rl_summ_forward)
    affinities = jax.block_until_ready(forward_jit(x, params))
    ref = jax.block_until_ready(rl_summ_ref(x, params))

    assert affinities.shape == (B, T)
    assert jnp.max(jnp.abs(affinities - ref)) < 1e-2, "mismatch vs reference"

    print("KERNEL_OK")
</pallas_src>

<mosaic_0001>
module attributes {stable_mosaic.version = 11 : i64} {
  func.func @_rlsumm_fused_kernel(%arg0: i32, %arg1: memref<8x8x64xf32, #tpu.memory_space<vmem>>, %arg2: memref<64x256xf32, #tpu.memory_space<vmem>>, %arg3: memref<1x256xf32, #tpu.memory_space<vmem>>, %arg4: memref<64x256xf32, #tpu.memory_space<vmem>>, %arg5: memref<64x256xf32, #tpu.memory_space<vmem>>, %arg6: memref<1x256xf32, #tpu.memory_space<vmem>>, %arg7: memref<64x256xf32, #tpu.memory_space<vmem>>, %arg8: memref<64x32xf32, #tpu.memory_space<vmem>>, %arg9: memref<1x32xf32, #tpu.memory_space<vmem>>, %arg10: memref<1x32xf32, #tpu.memory_space<vmem>>, %arg11: memref<1x1xf32, #tpu.memory_space<vmem>>, %arg12: memref<8x8xf32, #tpu.memory_space<vmem>>, %arg13: memref<8x8x256xf32, #tpu.memory_space<vmem>>, %arg14: memref<8x8x64xf32, #tpu.memory_space<vmem>>, %arg15: memref<8x64xf32, #tpu.memory_space<vmem>>, %arg16: memref<8x64xf32, #tpu.memory_space<vmem>>) attributes {dimension_semantics = [#tpu.dimension_semantics<arbitrary>], iteration_bounds = array<i64: 1>, scalar_prefetch = 0 : i64, scratch_operands = 4 : i64, tpu.core_type = #tpu.core_type<tc>, window_params = [{pipeline_mode = #tpu.pipeline_mode<synchronous>, transform_indices = @transform_0, window_bounds = array<i64: 8, 8, 64>}, {pipeline_mode = #tpu.pipeline_mode<synchronous>, transform_indices = @transform_1, window_bounds = array<i64: 64, 256>}, {pipeline_mode = #tpu.pipeline_mode<synchronous>, transform_indices = @transform_2, window_bounds = array<i64: 1, 256>}, {pipeline_mode = #tpu.pipeline_mode<synchronous>, transform_indices = @transform_3, window_bounds = array<i64: 64, 256>}, {pipeline_mode = #tpu.pipeline_mode<synchronous>, transform_indices = @transform_4, window_bounds = array<i64: 64, 256>}, {pipeline_mode = #tpu.pipeline_mode<synchronous>, transform_indices = @transform_5, window_bounds = array<i64: 1, 256>}, {pipeline_mode = #tpu.pipeline_mode<synchronous>, transform_indices = @transform_6, window_bounds = array<i64: 64, 256>}, {pipeline_mode = #tpu.pipeline_mode<synchronous>, transform_indices = @transform_7, window_bounds = array<i64: 64, 32>}, {pipeline_mode = #tpu.pipeline_mode<synchronous>, transform_indices = @transform_8, window_bounds = array<i64: 1, 32>}, {pipeline_mode = #tpu.pipeline_mode<synchronous>, transform_indices = @transform_9, window_bounds = array<i64: 1, 32>}, {pipeline_mode = #tpu.pipeline_mode<synchronous>, transform_indices = @transform_10, window_bounds = array<i64: 1, 1>}, {pipeline_mode = #tpu.pipeline_mode<synchronous>, transform_indices = @transform_11, window_bounds = array<i64: 8, 8>}]} {
    %c0 = arith.constant 0 : index
    %c0_0 = arith.constant 0 : index
    %c0_1 = arith.constant 0 : index
    %0 = vector.load %arg1[%c0, %c0_0, %c0_1] : memref<8x8x64xf32, #tpu.memory_space<vmem>>, vector<8x8x64xf32>
    %c0_2 = arith.constant 0 : index
    %c0_3 = arith.constant 0 : index
    %1 = vector.load %arg2[%c0_2, %c0_3] : memref<64x256xf32, #tpu.memory_space<vmem>>, vector<64x256xf32>
    %c0_4 = arith.constant 0 : index
    %c0_5 = arith.constant 0 : index
    %2 = vector.load %arg3[%c0_4, %c0_5] : memref<1x256xf32, #tpu.memory_space<vmem>>, vector<1x256xf32>
    %c0_6 = arith.constant 0 : index
    %c0_7 = arith.constant 0 : index
    %3 = vector.load %arg4[%c0_6, %c0_7] : memref<64x256xf32, #tpu.memory_space<vmem>>, vector<64x256xf32>
    %4 = vector.shape_cast %0 : vector<8x8x64xf32> to vector<64x64xf32>
    %cst = arith.constant dense<0.000000e+00> : vector<64x256xf32>
    %5 = tpu.matmul %4, %1, %cst {dimension_numbers = #tpu.dot_dimension_numbers<[1], [0], [0], [1], [0, 0, 1, 1], [], []>} : vector<64x64xf32>, vector<64x256xf32>, vector<64x256xf32> -> vector<64x256xf32>
    %6 = vector.broadcast %2 : vector<1x256xf32> to vector<64x256xf32>
    %7 = arith.addf %5, %6 : vector<64x256xf32>
    %8 = vector.shape_cast %7 : vector<64x256xf32> to vector<8x8x256xf32>
    %c0_8 = arith.constant 0 : index
    %c0_9 = arith.constant 0 : index
    %c0_10 = arith.constant 0 : index
    %9 = vector.load %arg13[%c0_8, %c0_9, %c0_10] : memref<8x8x256xf32, #tpu.memory_space<vmem>>, vector<8x8x256xf32>
    tpu.vector_store %arg13[%c0_8, %c0_9, %c0_10], %8 {strides = array<i32>} : memref<8x8x256xf32, #tpu.memory_space<vmem>>, vector<8x8x256xf32>,
    %cst_11 = arith.constant 0.000000e+00 : f32
    %10 = vector.broadcast %cst_11 : f32 to vector<8x64xf32>
    %c0_12 = arith.constant 0 : index
    %c0_13 = arith.constant 0 : index
    %11 = vector.load %arg15[%c0_12, %c0_13] : memref<8x64xf32, #tpu.memory_space<vmem>>, vector<8x64xf32>
    tpu.vector_store %arg15[%c0_12, %c0_13], %10 {strides = array<i32>} : memref<8x64xf32, #tpu.memory_space<vmem>>, vector<8x64xf32>,
    %cst_14 = arith.constant 0.000000e+00 : f32
    %12 = vector.broadcast %cst_14 : f32 to vector<8x64xf32>
    %c0_15 = arith.constant 0 : index
    %c0_16 = arith.constant 0 : index
    %13 = vector.load %arg16[%c0_15, %c0_16] : memref<8x64xf32, #tpu.memory_space<vmem>>, vector<8x64xf32>
    tpu.vector_store %arg16[%c0_15, %c0_16], %12 {strides = array<i32>} : memref<8x64xf32, #tpu.memory_space<vmem>>, vector<8x64xf32>,
    %c0_i32 = arith.constant 0 : i32
    %c0_17 = arith.constant 0 : index
    %c0_18 = arith.constant 0 : index
    %14 = vector.load %arg15[%c0_17, %c0_18] : memref<8x64xf32, #tpu.memory_space<vmem>>, vector<8x64xf32>
    %cst_19 = arith.constant dense<0.000000e+00> : vector<8x256xf32>
    %15 = tpu.matmul %14, %3, %cst_19 {dimension_numbers = #tpu.dot_dimension_numbers<[1], [0], [0], [1], [0, 0, 1, 1], [], []>} : vector<8x64xf32>, vector<64x256xf32>, vector<8x256xf32> -> vector<8x256xf32>
    %16 = arith.index_cast %c0_i32 : i32 to index
    %c0_20 = arith.constant 0 : index
    %c0_21 = arith.constant 0 : index
    %17 = vector.load %arg13[%16, %c0_20, %c0_21] : memref<8x8x256xf32, #tpu.memory_space<vmem>>, vector<1x8x128xf32>
    %18 = vector.shape_cast %17 : vector<1x8x128xf32> to vector<8x128xf32>
    %19 = vector.extract_strided_slice %15 {offsets = [0, 0], sizes = [8, 128], strides = [1, 1]} : vector<8x256xf32> to vector<8x128xf32>
    %20 = arith.addf %18, %19 : vector<8x128xf32>
    %c7_i32 = arith.constant 7 : i32
    %21 = arith.subi %c7_i32, %c0_i32 : i32
    %22 = arith.index_cast %21 : i32 to index
    %c0_22 = arith.constant 0 : index
    %c128 = arith.constant 128 : index
    %23 = vector.load %arg13[%22, %c0_22, %c128] : memref<8x8x256xf32, #tpu.memory_space<vmem>>, vector<1x8x128xf32>
    %24 = vector.shape_cast %23 : vector<1x8x128xf32> to vector<8x128xf32>
    %25 = vector.extract_strided_slice %15 {offsets = [0, 128], sizes = [8, 128], strides = [1, 1]} : vector<8x256xf32> to vector<8x128xf32>
    %26 = arith.addf %24, %25 : vector<8x128xf32>
    %27 = arith.negf %20 : vector<8x128xf32>
    %28 = math.exp %27 : vector<8x128xf32>
    %cst_23 = arith.constant 1.000000e+00 : f32
    %29 = vector.broadcast %cst_23 : f32 to vector<8x128xf32>
    %30 = arith.addf %29, %28 : vector<8x128xf32>
    %31 = arith.divf %29, %30 : vector<8x128xf32>
    %32 = math.tanh %20 : vector<8x128xf32>
    %33 = arith.negf %26 : vector<8x128xf32>
    %34 = math.exp %33 : vector<8x128xf32>
    %cst_24 = arith.constant 1.000000e+00 : f32
    %35 = vector.broadcast %cst_24 : f32 to vector<8x128xf32>
    %36 = arith.addf %35, %34 : vector<8x128xf32>
    %37 = arith.divf %35, %36 : vector<8x128xf32>
    %38 = math.tanh %26 : vector<8x128xf32>
    %39 = vector.extract_strided_slice %31 {offsets = [0, 32], sizes = [8, 32], strides = [1, 1]} : vector<8x128xf32> to vector<8x32xf32>
    %c0_25 = arith.constant 0 : index
    %c0_26 = arith.constant 0 : index
    %40 = vector.load %arg16[%c0_25, %c0_26] : memref<8x64xf32, #tpu.memory_space<vmem>>, vector<8x32xf32>
    %41 = arith.mulf %39, %40 : vector<8x32xf32>
    %42 = vector.extract_strided_slice %31 {offsets = [0, 0], sizes = [8, 32], strides = [1, 1]} : vector<8x128xf32> to vector<8x32xf32>
    %43 = vector.extract_strided_slice %32 {offsets = [0, 64], sizes = [8, 32], strides = [1, 1]} : vector<8x128xf32> to vector<8x32xf32>
    %44 = arith.mulf %42, %43 : vector<8x32xf32>
    %45 = arith.addf %41, %44 : vector<8x32xf32>
    %46 = vector.extract_strided_slice %37 {offsets = [0, 32], sizes = [8, 32], strides = [1, 1]} : vector<8x128xf32> to vector<8x32xf32>
    %c0_27 = arith.constant 0 : index
    %c32 = arith.constant 32 : index
    %47 = vector.load %arg16[%c0_27, %c32] : memref<8x64xf32, #tpu.memory_space<vmem>>, vector<8x32xf32>
    %48 = arith.mulf %46, %47 : vector<8x32xf32>
    %49 = vector.extract_strided_slice %37 {offsets = [0, 0], sizes = [8, 32], strides = [1, 1]} : vector<8x128xf32> to vector<8x32xf32>
    %50 = vector.extract_strided_slice %38 {offsets = [0, 64], sizes = [8, 32], strides = [1, 1]} : vector<8x128xf32> to vector<8x32xf32>
    %51 = arith.mulf %49, %50 : vector<8x32xf32>
    %52 = arith.addf %48, %51 : vector<8x32xf32>
    %53 = vector.extract_strided_slice %31 {offsets = [0, 96], sizes = [8, 32], strides = [1, 1]} : vector<8x128xf32> to vector<8x32xf32>
    %54 = math.tanh %45 : vector<8x32xf32>
    %55 = arith.mulf %53, %54 : vector<8x32xf32>
    %56 = vector.extract_strided_slice %37 {offsets = [0, 96], sizes = [8, 32], strides = [1, 1]} : vector<8x128xf32> to vector<8x32xf32>
    %57 = math.tanh %52 : vector<8x32xf32>
    %58 = arith.mulf %56, %57 : vector<8x32xf32>
    %c0_28 = arith.constant 0 : index
    %c0_29 = arith.constant 0 : index
    %59 = vector.load %arg16[%c0_28, %c0_29] : memref<8x64xf32, #tpu.memory_space<vmem>>, vector<8x32xf32>
    tpu.vector_store %arg16[%c0_28, %c0_29], %45 {strides = array<i32>} : memref<8x64xf32, #tpu.memory_space<vmem>>, vector<8x32xf32>,
    %c0_30 = arith.constant 0 : index
    %c32_31 = arith.constant 32 : index
    %60 = vector.load %arg16[%c0_30, %c32_31] : memref<8x64xf32, #tpu.memory_space<vmem>>, vector<8x32xf32>
    tpu.vector_store %arg16[%c0_30, %c32_31], %52 {strides = array<i32>} : memref<8x64xf32, #tpu.memory_space<vmem>>, vector<8x32xf32>,
    %c0_32 = arith.constant 0 : index
    %c0_33 = arith.constant 0 : index
    %61 = vector.load %arg15[%c0_32, %c0_33] : memref<8x64xf32, #tpu.memory_space<vmem>>, vector<8x32xf32>
    tpu.vector_store %arg15[%c0_32, %c0_33], %55 {strides = array<i32>} : memref<8x64xf32, #tpu.memory_space<vmem>>, vector<8x32xf32>,
    %c0_34 = arith.constant 0 : index
    %c32_35 = arith.constant 32 : index
    %62 = vector.load %arg15[%c0_34, %c32_35] : memref<8x64xf32, #tpu.memory_space<vmem>>, vector<8x32xf32>
    tpu.vector_store %arg15[%c0_34, %c32_35], %58 {strides = array<i32>} : memref<8x64xf32, #tpu.memory_space<vmem>>, vector<8x32xf32>,
    %63 = arith.index_cast %c0_i32 : i32 to index
    %c0_36 = arith.constant 0 : index
    %c0_37 = arith.constant 0 : index
    %64 = vector.load %arg14[%63, %c0_36, %c0_37] : memref<8x8x64xf32, #tpu.memory_space<vmem>>, vector<1x8x32xf32>
    %65 = vector.shape_cast %64 : vector<1x8x32xf32> to vector<8x32xf32>
    %66 = vector.shape_cast %55 : vector<8x32xf32> to vector<1x8x32xf32>
    tpu.vector_store %arg14[%63, %c0_36, %c0_37], %66 {strides = array<i32>} : memref<8x8x64xf32, #tpu.memory_space<vmem>>, vector<1x8x32xf32>,
    %c7_i32_38 = arith.constant 7 : i32
    %67 = arith.subi %c7_i32_38, %c0_i32 : i32
    %68 = arith.index_cast %67 : i32 to index
    %c0_39 = arith.constant 0 : index
    %c32_40 = arith.constant 32 : index
    %69 = vector.load %arg14[%68, %c0_39, %c32_40] : memref<8x8x64xf32, #tpu.memory_space<vmem>>, vector<1x8x32xf32>
    %70 = vector.shape_cast %69 : vector<1x8x32xf32> to vector<8x32xf32>
    %71 = vector.shape_cast %58 : vector<8x32xf32> to vector<1x8x32xf32>
    tpu.vector_store %arg14[%68, %c0_39, %c32_40], %71 {strides = array<i32>} : memref<8x8x64xf32, #tpu.memory_space<vmem>>, vector<1x8x32xf32>,
    %c1_i32 = arith.constant 1 : i32
    %c0_41 = arith.constant 0 : index
    %c0_42 = arith.constant 0 : index
    %72 = vector.load %arg15[%c0_41, %c0_42] : memref<8x64xf32, #tpu.memory_space<vmem>>, vector<8x64xf32>
    %cst_43 = arith.constant dense<0.000000e+00> : vector<8x256xf32>
    %73 = tpu.matmul %72, %3, %cst_43 {dimension_numbers = #tpu.dot_dimension_numbers<[1], [0], [0], [1], [0, 0, 1, 1], [], []>} : vector<8x64xf32>, vector<64x256xf32>, vector<8x256xf32> -> vector<8x256xf32>
    %74 = arith.index_cast %c1_i32 : i32 to index
    %c0_44 = arith.constant 0 : index
    %c0_45 = arith.constant 0 : index
    %75 = vector.load %arg13[%74, %c0_44, %c0_45] : memref<8x8x256xf32, #tpu.memory_space<vmem>>, vector<1x8x128xf32>
    %76 = vector.shape_cast %75 : vector<1x8x128xf32> to vector<8x128xf32>
    %77 = vector.extract_strided_slice %73 {offsets = [0, 0], sizes = [8, 128], strides = [1, 1]} : vector<8x256xf32> to vector<8x128xf32>
    %78 = arith.addf %76, %77 : vector<8x128xf32>
    %c7_i32_46 = arith.constant 7 : i32
    %79 = arith.subi %c7_i32_46, %c1_i32 : i32
    %80 = arith.index_cast %79 : i32 to index
    %c0_47 = arith.constant 0 : index
    %c128_48 = arith.constant 128 : index
    %81 = vector.load %arg13[%80, %c0_47, %c128_48] : memref<8x8x256xf32, #tpu.memory_space<vmem>>, vector<1x8x128xf32>
    %82 = vector.shape_cast %81 : vector<1x8x128xf32> to vector<8x128xf32>
    %83 = vector.extract_strided_slice %73 {offsets = [0, 128], sizes = [8, 128], strides = [1, 1]} : vector<8x256xf32> to vector<8x128xf32>
    %84 = arith.addf %82, %83 : vector<8x128xf32>
    %85 = arith.negf %78 : vector<8x128xf32>
    %86 = math.exp %85 : vector<8x128xf32>
    %cst_49 = arith.constant 1.000000e+00 : f32
    %87 = vector.broadcast %cst_49 : f32 to vector<8x128xf32>
    %88 = arith.addf %87, %86 : vector<8x128xf32>
    %89 = arith.divf %87, %88 : vector<8x128xf32>
    %90 = math.tanh %78 : vector<8x128xf32>
    %91 = arith.negf %84 : vector<8x128xf32>
    %92 = math.exp %91 : vector<8x128xf32>
    %cst_50 = arith.constant 1.000000e+00 : f32
    %93 = vector.broadcast %cst_50 : f32 to vector<8x128xf32>
    %94 = arith.addf %93, %92 : vector<8x128xf32>
    %95 = arith.divf %93, %94 : vector<8x128xf32>
    %96 = math.tanh %84 : vector<8x128xf32>
    %97 = vector.extract_strided_slice %89 {offsets = [0, 32], sizes = [8, 32], strides = [1, 1]} : vector<8x128xf32> to vector<8x32xf32>
    %c0_51 = arith.constant 0 : index
    %c0_52 = arith.constant 0 : index
    %98 = vector.load %arg16[%c0_51, %c0_52] : memref<8x64xf32, #tpu.memory_space<vmem>>, vector<8x32xf32>
    %99 = arith.mulf %97, %98 : vector<8x32xf32>
    %100 = vector.extract_strided_slice %89 {offsets = [0, 0], sizes = [8, 32], strides = [1, 1]} : vector<8x128xf32> to vector<8x32xf32>
    %101 = vector.extract_strided_slice %90 {offsets = [0, 64], sizes = [8, 32], strides = [1, 1]} : vector<8x128xf32> to vector<8x32xf32>
    %102 = arith.mulf %100, %101 : vector<8x32xf32>
    %103 = arith.addf %99, %102 : vector<8x32xf32>
    %104 = vector.extract_strided_slice %95 {offsets = [0, 32], sizes = [8, 32], strides = [1, 1]} : vector<8x128xf32> to vector<8x32xf32>
    %c0_53 = arith.constant 0 : index
    %c32_54 = arith.constant 32 : index
    %105 = vector.load %arg16[%c0_53, %c32_54] : memref<8x64xf32, #tpu.memory_space<vmem>>, vector<8x32xf32>
    %106 = arith.mulf %104, %105 : vector<8x32xf32>
    %107 = vector.extract_strided_slice %95 {offsets = [0, 0], sizes = [8, 32], strides = [1, 1]} : vector<8x128xf32> to vector<8x32xf32>
    %108 = vector.extract_strided_slice %96 {offsets = [0, 64], sizes = [8, 32], strides = [1, 1]} : vector<8x128xf32> to vector<8x32xf32>
    %109 = arith.mulf %107, %108 : vector<8x32xf32>
    %110 = arith.addf %106, %109 : vector<8x32xf32>
    %111 = vector.extract_strided_slice %89 {offsets = [0, 96], sizes = [8, 32], strides = [1, 1]} : vector<8x128xf32> to vector<8x32xf32>
    %112 = math.tanh %103 : vector<8x32xf32>
    %113 = arith.mulf %111, %112 : vector<8x32xf32>
    %114 = vector.extract_strided_slice %95 {offsets = [0, 96], sizes = [8, 32], strides = [1, 1]} : vector<8x128xf32> to vector<8x32xf32>
    %115 = math.tanh %110 : vector<8x32xf32>
    %116 = arith.mulf %114, %115 : vector<8x32xf32>
    %c0_55 = arith.constant 0 : index
    %c0_56 = arith.constant 0 : index
    %117 = vector.load %arg16[%c0_55, %c0_56] : memref<8x64xf32, #tpu.memory_space<vmem>>, vector<8x32xf32>
    tpu.vector_store %arg16[%c0_55, %c0_56], %103 {strides = array<i32>} : memref<8x64xf32, #tpu.memory_space<vmem>>, vector<8x32xf32>,
    %c0_57 = arith.constant 0 : index
    %c32_58 = arith.constant 32 : index
    %118 = vector.load %arg16[%c0_57, %c32_58] : memref<8x64xf32, #tpu.memory_space<vmem>>, vector<8x32xf32>
    tpu.vector_store %arg16[%c0_57, %c32_58], %110 {strides = array<i32>} : memref<8x64xf32, #tpu.memory_space<vmem>>, vector<8x32xf32>,
    %c0_59 = arith.constant 0 : index
    %c0_60 = arith.constant 0 : index
    %119 = vector.load %arg15[%c0_59, %c0_60] : memref<8x64xf32, #tpu.memory_space<vmem>>, vector<8x32xf32>
    tpu.vector_store %arg15[%c0_59, %c0_60], %113 {strides = array<i32>} : memref<8x64xf32, #tpu.memory_space<vmem>>, vector<8x32xf32>,
    %c0_61 = arith.constant 0 : index
    %c32_62 = arith.constant 32 : index
    %120 = vector.load %arg15[%c0_61, %c32_62] : memref<8x64xf32, #tpu.memory_space<vmem>>, vector<8x32xf32>
    tpu.vector_store %arg15[%c0_61, %c32_62], %116 {strides = array<i32>} : memref<8x64xf32, #tpu.memory_space<vmem>>, vector<8x32xf32>,
    %121 = arith.index_cast %c1_i32 : i32 to index
    %c0_63 = arith.constant 0 : index
    %c0_64 = arith.constant 0 : index
    %122 = vector.load %arg14[%121, %c0_63, %c0_64] : memref<8x8x64xf32, #tpu.memory_space<vmem>>, vector<1x8x32xf32>
    %123 = vector.shape_cast %122 : vector<1x8x32xf32> to vector<8x32xf32>
    %124 = vector.shape_cast %113 : vector<8x32xf32> to vector<1x8x32xf32>
    tpu.vector_store %arg14[%121, %c0_63, %c0_64], %124 {strides = array<i32>} : memref<8x8x64xf32, #tpu.memory_space<vmem>>, vector<1x8x32xf32>,
    %c7_i32_65 = arith.constant 7 : i32
    %125 = arith.subi %c7_i32_65, %c1_i32 : i32
    %126 = arith.index_cast %125 : i32 to index
    %c0_66 = arith.constant 0 : index
    %c32_67 = arith.constant 32 : index
    %127 = vector.load %arg14[%126, %c0_66, %c32_67] : memref<8x8x64xf32, #tpu.memory_space<vmem>>, vector<1x8x32xf32>
    %128 = vector.shape_cast %127 : vector<1x8x32xf32> to vector<8x32xf32>
    %129 = vector.shape_cast %116 : vector<8x32xf32> to vector<1x8x32xf32>
    tpu.vector_store %arg14[%126, %c0_66, %c32_67], %129 {strides = array<i32>} : memref<8x8x64xf32, #tpu.memory_space<vmem>>, vector<1x8x32xf32>,
    %c2_i32 = arith.constant 2 : i32
    %c0_68 = arith.constant 0 : index
    %c0_69 = arith.constant 0 : index
    %130 = vector.load %arg15[%c0_68, %c0_69] : memref<8x64xf32, #tpu.memory_space<vmem>>, vector<8x64xf32>
    %cst_70 = arith.constant dense<0.000000e+00> : vector<8x256xf32>
    %131 = tpu.matmul %130, %3, %cst_70 {dimension_numbers = #tpu.dot_dimension_numbers<[1], [0], [0], [1], [0, 0, 1, 1], [], []>} : vector<8x64xf32>, vector<64x256xf32>, vector<8x256xf32> -> vector<8x256xf32>
    %132 = arith.index_cast %c2_i32 : i32 to index
    %c0_71 = arith.constant 0 : index
    %c0_72 = arith.constant 0 : index
    %133 = vector.load %arg13[%132, %c0_71, %c0_72] : memref<8x8x256xf32, #tpu.memory_space<vmem>>, vector<1x8x128xf32>
    %134 = vector.shape_cast %133 : vector<1x8x128xf32> to vector<8x128xf32>
    %135 = vector.extract_strided_slice %131 {offsets = [0, 0], sizes = [8, 128], strides = [1, 1]} : vector<8x256xf32> to vector<8x128xf32>
    %136 = arith.addf %134, %135 : vector<8x128xf32>
    %c7_i32_73 = arith.constant 7 : i32
    %137 = arith.subi %c7_i32_73, %c2_i32 : i32
    %138 = arith.index_cast %137 : i32 to index
    %c0_74 = arith.constant 0 : index
    %c128_75 = arith.constant 128 : index
    %139 = vector.load %arg13[%138, %c0_74, %c128_75] : memref<8x8x256xf32, #tpu.memory_space<vmem>>, vector<1x8x128xf32>
    %140 = vector.shape_cast %139 : vector<1x8x128xf32> to vector<8x128xf32>
    %141 = vector.extract_strided_slice %131 {offsets = [0, 128], sizes = [8, 128], strides = [1, 1]} : vector<8x256xf32> to vector<8x128xf32>
    %142 = arith.addf %140, %141 : vector<8x128xf32>
    %143 = arith.negf %136 : vector<8x128xf32>
    %144 = math.exp %143 : vector<8x128xf32>
    %cst_76 = arith.constant 1.000000e+00 : f32
    %145 = vector.broadcast %cst_76 : f32 to vector<8x128xf32>
    %146 = arith.addf %145, %144 : vector<8x128xf32>
    %147 = arith.divf %145, %146 : vector<8x128xf32>
    %148 = math.tanh %136 : vector<8x128xf32>
    %149 = arith.negf %142 : vector<8x128xf32>
    %150 = math.exp %149 : vector<8x128xf32>
    %cst_77 = arith.constant 1.000000e+00 : f32
    %151 = vector.broadcast %cst_77 : f32 to vector<8x128xf32>
    %152 = arith.addf %151, %150 : vector<8x128xf32>
    %153 = arith.divf %151, %152 : vector<8x128xf32>
    %154 = math.tanh %142 : vector<8x128xf32>
    %155 = vector.extract_strided_slice %147 {offsets = [0, 32], sizes = [8, 32], strides = [1, 1]} : vector<8x128xf32> to vector<8x32xf32>
    %c0_78 = arith.constant 0 : index
    %c0_79 = arith.constant 0 : index
    %156 = vector.load %arg16[%c0_78, %c0_79] : memref<8x64xf32, #tpu.memory_space<vmem>>, vector<8x32xf32>
    %157 = arith.mulf %155, %156 : vector<8x32xf32>
    %158 = vector.extract_strided_slice %147 {offsets = [0, 0], sizes = [8, 32], strides = [1, 1]} : vector<8x128xf32> to vector<8x32xf32>
    %159 = vector.extract_strided_slice %148 {offsets = [0, 64], sizes = [8, 32], strides = [1, 1]} : vector<8x128xf32> to vector<8x32xf32>
    %160 = arith.mulf %158, %159 : vector<8x32xf32>
    %161 = arith.addf %157, %160 : vector<8x32xf32>
    %162 = vector.extract_strided_slice %153 {offsets = [0, 32], sizes = [8, 32], strides = [1, 1]} : vector<8x128xf32> to vector<8x32xf32>
    %c0_80 = arith.constant 0 : index
    %c32_81 = arith.constant 32 : index
    %163 = vector.load %arg16[%c0_80, %c32_81] : memref<8x64xf32, #tpu.memory_space<vmem>>, vector<8x32xf32>
    %164 = arith.mulf %162, %163 : vector<8x32xf32>
    %165 = vector.extract_strided_slice %153 {offsets = [0, 0], sizes = [8, 32], strides = [1, 1]} : vector<8x128xf32> to vector<8x32xf32>
    %166 = vector.extract_strided_slice %154 {offsets = [0, 64], sizes = [8, 32], strides = [1, 1]} : vector<8x128xf32> to vector<8x32xf32>
    %167 = arith.mulf %165, %166 : vector<8x32xf32>
    %168 = arith.addf %164, %167 : vector<8x32xf32>
    %169 = vector.extract_strided_slice %147 {offsets = [0, 96], sizes = [8, 32], strides = [1, 1]} : vector<8x128xf32> to vector<8x32xf32>
    %170 = math.tanh %161 : vector<8x32xf32>
    %171 = arith.mulf %169, %170 : vector<8x32xf32>
    %172 = vector.extract_strided_slice %153 {offsets = [0, 96], sizes = [8, 32], strides = [1, 1]} : vector<8x128xf32> to vector<8x32xf32>
    %173 = math.tanh %168 : vector<8x32xf32>
    %174 = arith.mulf %172, %173 : vector<8x32xf32>
    %c0_82 = arith.constant 0 : index
    %c0_83 = arith.constant 0 : index
    %175 = vector.load %arg16[%c0_82, %c0_83] : memref<8x64xf32, #tpu.memory_space<vmem>>, vector<8x32xf32>
    tpu.vector_store %arg16[%c0_82, %c0_83], %161 {strides = array<i32>} : memref<8x64xf32, #tpu.memory_space<vmem>>, vector<8x32xf32>,
    %c0_84 = arith.constant 0 : index
    %c32_85 = arith.constant 32 : index
    %176 = vector.load %arg16[%c0_84, %c32_85] : memref<8x64xf32, #tpu.memory_space<vmem>>, vector<8x32xf32>
    tpu.vector_store %arg16[%c0_84, %c32_85], %168 {strides = array<i32>} : memref<8x64xf32, #tpu.memory_space<vmem>>, vector<8x32xf32>,
    %c0_86 = arith.constant 0 : index
    %c0_87 = arith.constant 0 : index
    %177 = vector.load %arg15[%c0_86, %c0_87] : memref<8x64xf32, #tpu.memory_space<vmem>>, vector<8x32xf32>
    tpu.vector_store %arg15[%c0_86, %c0_87], %171 {strides = array<i32>} : memref<8x64xf32, #tpu.memory_space<vmem>>, vector<8x32xf32>,
    %c0_88 = arith.constant 0 : index
    %c32_89 = arith.constant 32 : index
    %178 = vector.load %arg15[%c0_88, %c32_89] : memref<8x64xf32, #tpu.memory_space<vmem>>, vector<8x32xf32>
    tpu.vector_store %arg15[%c0_88, %c32_89], %174 {strides = array<i32>} : memref<8x64xf32, #tpu.memory_space<vmem>>, vector<8x32xf32>,
    %179 = arith.index_cast %c2_i32 : i32 to index
    %c0_90 = arith.constant 0 : index
    %c0_91 = arith.constant 0 : index
    %180 = vector.load %arg14[%179, %c0_90, %c0_91] : memref<8x8x64xf32, #tpu.memory_space<vmem>>, vector<1x8x32xf32>
    %181 = vector.shape_cast %180 : vector<1x8x32xf32> to vector<8x32xf32>
    %182 = vector.shape_cast %171 : vector<8x32xf32> to vector<1x8x32xf32>
    tpu.vector_store %arg14[%179, %c0_90, %c0_91], %182 {strides = array<i32>} : memref<8x8x64xf32, #tpu.memory_space<vmem>>, vector<1x8x32xf32>,
    %c7_i32_92 = arith.constant 7 : i32
    %183 = arith.subi %c7_i32_92, %c2_i32 : i32
    %184 = arith.index_cast %183 : i32 to index
    %c0_93 = arith.constant 0 : index
    %c32_94 = arith.constant 32 : index
    %185 = vector.load %arg14[%184, %c0_93, %c32_94] : memref<8x8x64xf32, #tpu.memory_space<vmem>>, vector<1x8x32xf32>
    %186 = vector.shape_cast %185 : vector<1x8x32xf32> to vector<8x32xf32>
    %187 = vector.shape_cast %174 : vector<8x32xf32> to vector<1x8x32xf32>
    tpu.vector_store %arg14[%184, %c0_93, %c32_94], %187 {strides = array<i32>} : memref<8x8x64xf32, #tpu.memory_space<vmem>>, vector<1x8x32xf32>,
    %c3_i32 = arith.constant 3 : i32
    %c0_95 = arith.constant 0 : index
    %c0_96 = arith.constant 0 : index
    %188 = vector.load %arg15[%c0_95, %c0_96] : memref<8x64xf32, #tpu.memory_space<vmem>>, vector<8x64xf32>
    %cst_97 = arith.constant dense<0.000000e+00> : vector<8x256xf32>
    %189 = tpu.matmul %188, %3, %cst_97 {dimension_numbers = #tpu.dot_dimension_numbers<[1], [0], [0], [1], [0, 0, 1, 1], [], []>} : vector<8x64xf32>, vector<64x256xf32>, vector<8x256xf32> -> vector<8x256xf32>
    %190 = arith.index_cast %c3_i32 : i32 to index
    %c0_98 = arith.constant 0 : index
    %c0_99 = arith.constant 0 : index
    %191 = vector.load %arg13[%190, %c0_98, %c0_99] : memref<8x8x256xf32, #tpu.memory_space<vmem>>, vector<1x8x128xf32>
    %192 = vector.shape_cast %191 : vector<1x8x128xf32> to vector<8x128xf32>
    %193 = vector.extract_strided_slice %189 {offsets = [0, 0], sizes = [8, 128], strides = [1, 1]} : vector<8x256xf32> to vector<8x128xf32>
    %194 = arith.addf %192, %193 : vector<8x128xf32>
    %c7_i32_100 = arith.constant 7 : i32
    %195 = arith.subi %c7_i32_100, %c3_i32 : i32
    %196 = arith.index_cast %195 : i32 to index
    %c0_101 = arith.constant 0 : index
    %c128_102 = arith.constant 128 : index
    %197 = vector.load %arg13[%196, %c0_101, %c128_102] : memref<8x8x256xf32, #tpu.memory_space<vmem>>, vector<1x8x128xf32>
    %198 = vector.shape_cast %197 : vector<1x8x128xf32> to vector<8x128xf32>
    %199 = vector.extract_strided_slice %189 {offsets = [0, 128], sizes = [8, 128], strides = [1, 1]} : vector<8x256xf32> to vector<8x128xf32>
    %200 = arith.addf %198, %199 : vector<8x128xf32>
    %201 = arith.negf %194 : vector<8x128xf32>
    %202 = math.exp %201 : vector<8x128xf32>
    %cst_103 = arith.constant 1.000000e+00 : f32
    %203 = vector.broadcast %cst_103 : f32 to vector<8x128xf32>
    %204 = arith.addf %203, %202 : vector<8x128xf32>
    %205 = arith.divf %203, %204 : vector<8x128xf32>
    %206 = math.tanh %194 : vector<8x128xf32>
    %207 = arith.negf %200 : vector<8x128xf32>
    %208 = math.exp %207 : vector<8x128xf32>
    %cst_104 = arith.constant 1.000000e+00 : f32
    %209 = vector.broadcast %cst_104 : f32 to vector<8x128xf32>
    %210 = arith.addf %209, %208 : vector<8x128xf32>
    %211 = arith.divf %209, %210 : vector<8x128xf32>
    %212 = math.tanh %200 : vector<8x128xf32>
    %213 = vector.extract_strided_slice %205 {offsets = [0, 32], sizes = [8, 32], strides = [1, 1]} : vector<8x128xf32> to vector<8x32xf32>
    %c0_105 = arith.constant 0 : index
    %c0_106 = arith.constant 0 : index
    %214 = vector.load %arg16[%c0_105, %c0_106] : memref<8x64xf32, #tpu.memory_space<vmem>>, vector<8x32xf32>
    %215 = arith.mulf %213, %214 : vector<8x32xf32>
    %216 = vector.extract_strided_slice %205 {offsets = [0, 0], sizes = [8, 32], strides = [1, 1]} : vector<8x128xf32> to vector<8x32xf32>
    %217 = vector.extract_strided_slice %206 {offsets = [0, 64], sizes = [8, 32], strides = [1, 1]} : vector<8x128xf32> to vector<8x32xf32>
    %218 = arith.mulf %216, %217 : vector<8x32xf32>
    %219 = arith.addf %215, %218 : vector<8x32xf32>
    %220 = vector.extract_strided_slice %211 {offsets = [0, 32], sizes = [8, 32], strides = [1, 1]} : vector<8x128xf32> to vector<8x32xf32>
    %c0_107 = arith.constant 0 : index
    %c32_108 = arith.constant 32 : index
    %221 = vector.load %arg16[%c0_107, %c32_108] : memref<8x64xf32, #tpu.memory_space<vmem>>, vector<8x32xf32>
    %222 = arith.mulf %220, %221 : vector<8x32xf32>
    %223 = vector.extract_strided_slice %211 {offsets = [0, 0], sizes = [8, 32], strides = [1, 1]} : vector<8x128xf32> to vector<8x32xf32>
    %224 = vector.extract_strided_slice %212 {offsets = [0, 64], sizes = [8, 32], strides = [1, 1]} : vector<8x128xf32> to vector<8x32xf32>
    %225 = arith.mulf %223, %224 : vector<8x32xf32>
    %226 = arith.addf %222, %225 : vector<8x32xf32>
    %227 = vector.extract_strided_slice %205 {offsets = [0, 96], sizes = [8, 32], strides = [1, 1]} : vector<8x128xf32> to vector<8x32xf32>
    %228 = math.tanh %219 : vector<8x32xf32>
    %229 = arith.mulf %227, %228 : vector<8x32xf32>
    %230 = vector.extract_strided_slice %211 {offsets = [0, 96], sizes = [8, 32], strides = [1, 1]} : vector<8x128xf32> to vector<8x32xf32>
    %231 = math.tanh %226 : vector<8x32xf32>
    %232 = arith.mulf %230, %231 : vector<8x32xf32>
    %c0_109 = arith.constant 0 : index
    %c0_110 = arith.constant 0 : index
    %233 = vector.load %arg16[%c0_109, %c0_110] : memref<8x64xf32, #tpu.memory_space<vmem>>, vector<8x32xf32>
    tpu.vector_store %arg16[%c0_109, %c0_110], %219 {strides = array<i32>} : memref<8x64xf32, #tpu.memory_space<vmem>>, vector<8x32xf32>,
    %c0_111 = arith.constant 0 : index
    %c32_112 = arith.constant 32 : index
    %234 = vector.load %arg16[%c0_111, %c32_112] : memref<8x64xf32, #tpu.memory_space<vmem>>, vector<8x32xf32>
    tpu.vector_store %arg16[%c0_111, %c32_112], %226 {strides = array<i32>} : memref<8x64xf32, #tpu.memory_space<vmem>>, vector<8x32xf32>,
    %c0_113 = arith.constant 0 : index
    %c0_114 = arith.constant 0 : index
    %235 = vector.load %arg15[%c0_113, %c0_114] : memref<8x64xf32, #tpu.memory_space<vmem>>, vector<8x32xf32>
    tpu.vector_store %arg15[%c0_113, %c0_114], %229 {strides = array<i32>} : memref<8x64xf32, #tpu.memory_space<vmem>>, vector<8x32xf32>,
    %c0_115 = arith.constant 0 : index
    %c32_116 = arith.constant 32 : index
    %236 = vector.load %arg15[%c0_115, %c32_116] : memref<8x64xf32, #tpu.memory_space<vmem>>, vector<8x32xf32>
    tpu.vector_store %arg15[%c0_115, %c32_116], %232 {strides = array<i32>} : memref<8x64xf32, #tpu.memory_space<vmem>>, vector<8x32xf32>,
    %237 = arith.index_cast %c3_i32 : i32 to index
    %c0_117 = arith.constant 0 : index
    %c0_118 = arith.constant 0 : index
    %238 = vector.load %arg14[%237, %c0_117, %c0_118] : memref<8x8x64xf32, #tpu.memory_space<vmem>>, vector<1x8x32xf32>
    %239 = vector.shape_cast %238 : vector<1x8x32xf32> to vector<8x32xf32>
    %240 = vector.shape_cast %229 : vector<8x32xf32> to vector<1x8x32xf32>
    tpu.vector_store %arg14[%237, %c0_117, %c0_118], %240 {strides = array<i32>} : memref<8x8x64xf32, #tpu.memory_space<vmem>>, vector<1x8x32xf32>,
    %c7_i32_119 = arith.constant 7 : i32
    %241 = arith.subi %c7_i32_119, %c3_i32 : i32
    %242 = arith.index_cast %241 : i32 to index
    %c0_120 = arith.constant 0 : index
    %c32_121 = arith.constant 32 : index
    %243 = vector.load %arg14[%242, %c0_120, %c32_121] : memref<8x8x64xf32, #tpu.memory_space<vmem>>, vector<1x8x32xf32>
    %244 = vector.shape_cast %243 : vector<1x8x32xf32> to vector<8x32xf32>
    %245 = vector.shape_cast %232 : vector<8x32xf32> to vector<1x8x32xf32>
    tpu.vector_store %arg14[%242, %c0_120, %c32_121], %245 {strides = array<i32>} : memref<8x8x64xf32, #tpu.memory_space<vmem>>, vector<1x8x32xf32>,
    %c4_i32 = arith.constant 4 : i32
    %c0_122 = arith.constant 0 : index
    %c0_123 = arith.constant 0 : index
    %246 = vector.load %arg15[%c0_122, %c0_123] : memref<8x64xf32, #tpu.memory_space<vmem>>, vector<8x64xf32>
    %cst_124 = arith.constant dense<0.000000e+00> : vector<8x256xf32>
    %247 = tpu.matmul %246, %3, %cst_124 {dimension_numbers = #tpu.dot_dimension_numbers<[1], [0], [0], [1], [0, 0, 1, 1], [], []>} : vector<8x64xf32>, vector<64x256xf32>, vector<8x256xf32> -> vector<8x256xf32>
    %248 = arith.index_cast %c4_i32 : i32 to index
    %c0_125 = arith.constant 0 : index
    %c0_126 = arith.constant 0 : index
    %249 = vector.load %arg13[%248, %c0_125, %c0_126] : memref<8x8x256xf32, #tpu.memory_space<vmem>>, vector<1x8x128xf32>
    %250 = vector.shape_cast %249 : vector<1x8x128xf32> to vector<8x128xf32>
    %251 = vector.extract_strided_slice %247 {offsets = [0, 0], sizes = [8, 128], strides = [1, 1]} : vector<8x256xf32> to vector<8x128xf32>
    %252 = arith.addf %250, %251 : vector<8x128xf32>
    %c7_i32_127 = arith.constant 7 : i32
    %253 = arith.subi %c7_i32_127, %c4_i32 : i32
    %254 = arith.index_cast %253 : i32 to index
    %c0_128 = arith.constant 0 : index
    %c128_129 = arith.constant 128 : index
    %255 = vector.load %arg13[%254, %c0_128, %c128_129] : memref<8x8x256xf32, #tpu.memory_space<vmem>>, vector<1x8x128xf32>
    %256 = vector.shape_cast %255 : vector<1x8x128xf32> to vector<8x128xf32>
    %257 = vector.extract_strided_slice %247 {offsets = [0, 128], sizes = [8, 128], strides = [1, 1]} : vector<8x256xf32> to vector<8x128xf32>
    %258 = arith.addf %256, %257 : vector<8x128xf32>
    %259 = arith.negf %252 : vector<8x128xf32>
    %260 = math.exp %259 : vector<8x128xf32>
    %cst_130 = arith.constant 1.000000e+00 : f32
    %261 = vector.broadcast %cst_130 : f32 to vector<8x128xf32>
    %262 = arith.addf %261, %260 : vector<8x128xf32>
    %263 = arith.divf %261, %262 : vector<8x128xf32>
    %264 = math.tanh %252 : vector<8x128xf32>
    %265 = arith.negf %258 : vector<8x128xf32>
    %266 = math.exp %265 : vector<8x128xf32>
    %cst_131 = arith.constant 1.000000e+00 : f32
    %267 = vector.broadcast %cst_131 : f32 to vector<8x128xf32>
    %268 = arith.addf %267, %266 : vector<8x128xf32>
    %269 = arith.divf %267, %268 : vector<8x128xf32>
    %270 = math.tanh %258 : vector<8x128xf32>
    %271 = vector.extract_strided_slice %263 {offsets = [0, 32], sizes = [8, 32], strides = [1, 1]} : vector<8x128xf32> to vector<8x32xf32>
    %c0_132 = arith.constant 0 : index
    %c0_133 = arith.constant 0 : index
    %272 = vector.load %arg16[%c0_132, %c0_133] : memref<8x64xf32, #tpu.memory_space<vmem>>, vector<8x32xf32>
    %273 = arith.mulf %271, %272 : vector<8x32xf32>
    %274 = vector.extract_strided_slice %263 {offsets = [0, 0], sizes = [8, 32], strides = [1, 1]} : vector<8x128xf32> to vector<8x32xf32>
    %275 = vector.extract_strided_slice %264 {offsets = [0, 64], sizes = [8, 32], strides = [1, 1]} : vector<8x128xf32> to vector<8x32xf32>
    %276 = arith.mulf %274, %275 : vector<8x32xf32>
    %277 = arith.addf %273, %276 : vector<8x32xf32>
    %278 = vector.extract_strided_slice %269 {offsets = [0, 32], sizes = [8, 32], strides = [1, 1]} : vector<8x128xf32> to vector<8x32xf32>
    %c0_134 = arith.constant 0 : index
    %c32_135 = arith.constant 32 : index
    %279 = vector.load %arg16[%c0_134, %c32_135] : memref<8x64xf32, #tpu.memory_space<vmem>>, vector<8x32xf32>
    %280 = arith.mulf %278, %279 : vector<8x32xf32>
    %281 = vector.extract_strided_slice %269 {offsets = [0, 0], sizes = [8, 32], strides = [1, 1]} : vector<8x128xf32> to vector<8x32xf32>
    %282 = vector.extract_strided_slice %270 {offsets = [0, 64], sizes = [8, 32], strides = [1, 1]} : vector<8x128xf32> to vector<8x32xf32>
    %283 = arith.mulf %281, %282 : vector<8x32xf32>
    %284 = arith.addf %280, %283 : vector<8x32xf32>
    %285 = vector.extract_strided_slice %263 {offsets = [0, 96], sizes = [8, 32], strides = [1, 1]} : vector<8x128xf32> to vector<8x32xf32>
    %286 = math.tanh %277 : vector<8x32xf32>
    %287 = arith.mulf %285, %286 : vector<8x32xf32>
    %288 = vector.extract_strided_slice %269 {offsets = [0, 96], sizes = [8, 32], strides = [1, 1]} : vector<8x128xf32> to vector<8x32xf32>
    %289 = math.tanh %284 : vector<8x32xf32>
    %290 = arith.mulf %288, %289 : vector<8x32xf32>
    %c0_136 = arith.constant 0 : index
    %c0_137 = arith.constant 0 : index
    %291 = vector.load %arg16[%c0_136, %c0_137] : memref<8x64xf32, #tpu.memory_space<vmem>>, vector<8x32xf32>
    tpu.vector_store %arg16[%c0_136, %c0_137], %277 {strides = array<i32>} : memref<8x64xf32, #tpu.memory_space<vmem>>, vector<8x32xf32>,
    %c0_138 = arith.constant 0 : index
    %c32_139 = arith.constant 32 : index
    %292 = vector.load %arg16[%c0_138, %c32_139] : memref<8x64xf32, #tpu.memory_space<vmem>>, vector<8x32xf32>
    tpu.vector_store %arg16[%c0_138, %c32_139], %284 {strides = array<i32>} : memref<8x64xf32, #tpu.memory_space<vmem>>, vector<8x32xf32>,
    %c0_140 = arith.constant 0 : index
    %c0_141 = arith.constant 0 : index
    %293 = vector.load %arg15[%c0_140, %c0_141] : memref<8x64xf32, #tpu.memory_space<vmem>>, vector<8x32xf32>
    tpu.vector_store %arg15[%c0_140, %c0_141], %287 {strides = array<i32>} : memref<8x64xf32, #tpu.memory_space<vmem>>, vector<8x32xf32>,
    %c0_142 = arith.constant 0 : index
    %c32_143 = arith.constant 32 : index
    %294 = vector.load %arg15[%c0_142, %c32_143] : memref<8x64xf32, #tpu.memory_space<vmem>>, vector<8x32xf32>
    tpu.vector_store %arg15[%c0_142, %c32_143], %290 {strides = array<i32>} : memref<8x64xf32, #tpu.memory_space<vmem>>, vector<8x32xf32>,
    %295 = arith.index_cast %c4_i32 : i32 to index
    %c0_144 = arith.constant 0 : index
    %c0_145 = arith.constant 0 : index
    %296 = vector.load %arg14[%295, %c0_144, %c0_145] : memref<8x8x64xf32, #tpu.memory_space<vmem>>, vector<1x8x32xf32>
    %297 = vector.shape_cast %296 : vector<1x8x32xf32> to vector<8x32xf32>
    %298 = vector.shape_cast %287 : vector<8x32xf32> to vector<1x8x32xf32>
    tpu.vector_store %arg14[%295, %c0_144, %c0_145], %298 {strides = array<i32>} : memref<8x8x64xf32, #tpu.memory_space<vmem>>, vector<1x8x32xf32>,
    %c7_i32_146 = arith.constant 7 : i32
    %299 = arith.subi %c7_i32_146, %c4_i32 : i32
    %300 = arith.index_cast %299 : i32 to index
    %c0_147 = arith.constant 0 : index
    %c32_148 = arith.constant 32 : index
    %301 = vector.load %arg14[%300, %c0_147, %c32_148] : memref<8x8x64xf32, #tpu.memory_space<vmem>>, vector<1x8x32xf32>
    %302 = vector.shape_cast %301 : vector<1x8x32xf32> to vector<8x32xf32>
    %303 = vector.shape_cast %290 : vector<8x32xf32> to vector<1x8x32xf32>
    tpu.vector_store %arg14[%300, %c0_147, %c32_148], %303 {strides = array<i32>} : memref<8x8x64xf32, #tpu.memory_space<vmem>>, vector<1x8x32xf32>,
    %c5_i32 = arith.constant 5 : i32
    %c0_149 = arith.constant 0 : index
    %c0_150 = arith.constant 0 : index
    %304 = vector.load %arg15[%c0_149, %c0_150] : memref<8x64xf32, #tpu.memory_space<vmem>>, vector<8x64xf32>
    %cst_151 = arith.constant dense<0.000000e+00> : vector<8x256xf32>
    %305 = tpu.matmul %304, %3, %cst_151 {dimension_numbers = #tpu.dot_dimension_numbers<[1], [0], [0], [1], [0, 0, 1, 1], [], []>} : vector<8x64xf32>, vector<64x256xf32>, vector<8x256xf32> -> vector<8x256xf32>
    %306 = arith.index_cast %c5_i32 : i32 to index
    %c0_152 = arith.constant 0 : index
    %c0_153 = arith.constant 0 : index
    %307 = vector.load %arg13[%306, %c0_152, %c0_153] : memref<8x8x256xf32, #tpu.memory_space<vmem>>, vector<1x8x128xf32>
    %308 = vector.shape_cast %307 : vector<1x8x128xf32> to vector<8x128xf32>
    %309 = vector.extract_strided_slice %305 {offsets = [0, 0], sizes = [8, 128], strides = [1, 1]} : vector<8x256xf32> to vector<8x128xf32>
    %310 = arith.addf %308, %309 : vector<8x128xf32>
    %c7_i32_154 = arith.constant 7 : i32
    %311 = arith.subi %c7_i32_154, %c5_i32 : i32
    %312 = arith.index_cast %311 : i32 to index
    %c0_155 = arith.constant 0 : index
    %c128_156 = arith.constant 128 : index
    %313 = vector.load %arg13[%312, %c0_155, %c128_156] : memref<8x8x256xf32, #tpu.memory_space<vmem>>, vector<1x8x128xf32>
    %314 = vector.shape_cast %313 : vector<1x8x128xf32> to vector<8x128xf32>
    %315 = vector.extract_strided_slice %305 {offsets = [0, 128], sizes = [8, 128], strides = [1, 1]} : vector<8x256xf32> to vector<8x128xf32>
    %316 = arith.addf %314, %315 : vector<8x128xf32>
    %317 = arith.negf %310 : vector<8x128xf32>
    %318 = math.exp %317 : vector<8x128xf32>
    %cst_157 = arith.constant 1.000000e+00 : f32
    %319 = vector.broadcast %cst_157 : f32 to vector<8x128xf32>
    %320 = arith.addf %319, %318 : vector<8x128xf32>
    %321 = arith.divf %319, %320 : vector<8x128xf32>
    %322 = math.tanh %310 : vector<8x128xf32>
    %323 = arith.negf %316 : vector<8x128xf32>
    %324 = math.exp %323 : vector<8x128xf32>
    %cst_158 = arith.constant 1.000000e+00 : f32
    %325 = vector.broadcast %cst_158 : f32 to vector<8x128xf32>
    %326 = arith.addf %325, %324 : vector<8x128xf32>
    %327 = arith.divf %325, %326 : vector<8x128xf32>
    %328 = math.tanh %316 : vector<8x128xf32>
    %329 = vector.extract_strided_slice %321 {offsets = [0, 32], sizes = [8, 32], strides = [1, 1]} : vector<8x128xf32> to vector<8x32xf32>
    %c0_159 = arith.constant 0 : index
    %c0_160 = arith.constant 0 : index
    %330 = vector.load %arg16[%c0_159, %c0_160] : memref<8x64xf32, #tpu.memory_space<vmem>>, vector<8x32xf32>
    %331 = arith.mulf %329, %330 : vector<8x32xf32>
    %332 = vector.extract_strided_slice %321 {offsets = [0, 0], sizes = [8, 32], strides = [1, 1]} : vector<8x128xf32> to vector<8x32xf32>
    %333 = vector.extract_strided_slice %322 {offsets = [0, 64], sizes = [8, 32], strides = [1, 1]} : vector<8x128xf32> to vector<8x32xf32>
    %334 = arith.mulf %332, %333 : vector<8x32xf32>
    %335 = arith.addf %331, %334 : vector<8x32xf32>
    %336 = vector.extract_strided_slice %327 {offsets = [0, 32], sizes = [8, 32], strides = [1, 1]} : vector<8x128xf32> to vector<8x32xf32>
    %c0_161 = arith.constant 0 : index
    %c32_162 = arith.constant 32 : index
    %337 = vector.load %arg16[%c0_161, %c32_162] : memref<8x64xf32, #tpu.memory_space<vmem>>, vector<8x32xf32>
    %338 = arith.mulf %336, %337 : vector<8x32xf32>
    %339 = vector.extract_strided_slice %327 {offsets = [0, 0], sizes = [8, 32], strides = [1, 1]} : vector<8x128xf32> to vector<8x32xf32>
    %340 = vector.extract_strided_slice %328 {offsets = [0, 64], sizes = [8, 32], strides = [1, 1]} : vector<8x128xf32> to vector<8x32xf32>
    %341 = arith.mulf %339, %340 : vector<8x32xf32>
    %342 = arith.addf %338, %341 : vector<8x32xf32>
    %343 = vector.extract_strided_slice %321 {offsets = [0, 96], sizes = [8, 32], strides = [1, 1]} : vector<8x128xf32> to vector<8x32xf32>
    %344 = math.tanh %335 : vector<8x32xf32>
    %345 = arith.mulf %343, %344 : vector<8x32xf32>
    %346 = vector.extract_strided_slice %327 {offsets = [0, 96], sizes = [8, 32], strides = [1, 1]} : vector<8x128xf32> to vector<8x32xf32>
    %347 = math.tanh %342 : vector<8x32xf32>
    %348 = arith.mulf %346, %347 : vector<8x32xf32>
    %c0_163 = arith.constant 0 : index
    %c0_164 = arith.constant 0 : index
    %349 = vector.load %arg16[%c0_163, %c0_164] : memref<8x64xf32, #tpu.memory_space<vmem>>, vector<8x32xf32>
    tpu.vector_store %arg16[%c0_163, %c0_164], %335 {strides = array<i32>} : memref<8x64xf32, #tpu.memory_space<vmem>>, vector<8x32xf32>,
    %c0_165 = arith.constant 0 : index
    %c32_166 = arith.constant 32 : index
    %350 = vector.load %arg16[%c0_165, %c32_166] : memref<8x64xf32, #tpu.memory_space<vmem>>, vector<8x32xf32>
    tpu.vector_store %arg16[%c0_165, %c32_166], %342 {strides = array<i32>} : memref<8x64xf32, #tpu.memory_space<vmem>>, vector<8x32xf32>,
    %c0_167 = arith.constant 0 : index
    %c0_168 = arith.constant 0 : index
    %351 = vector.load %arg15[%c0_167, %c0_168] : memref<8x64xf32, #tpu.memory_space<vmem>>, vector<8x32xf32>
    tpu.vector_store %arg15[%c0_167, %c0_168], %345 {strides = array<i32>} : memref<8x64xf32, #tpu.memory_space<vmem>>, vector<8x32xf32>,
    %c0_169 = arith.constant 0 : index
    %c32_170 = arith.constant 32 : index
    %352 = vector.load %arg15[%c0_169, %c32_170] : memref<8x64xf32, #tpu.memory_space<vmem>>, vector<8x32xf32>
    tpu.vector_store %arg15[%c0_169, %c32_170], %348 {strides = array<i32>} : memref<8x64xf32, #tpu.memory_space<vmem>>, vector<8x32xf32>,
    %353 = arith.index_cast %c5_i32 : i32 to index
    %c0_171 = arith.constant 0 : index
    %c0_172 = arith.constant 0 : index
    %354 = vector.load %arg14[%353, %c0_171, %c0_172] : memref<8x8x64xf32, #tpu.memory_space<vmem>>, vector<1x8x32xf32>
    %355 = vector.shape_cast %354 : vector<1x8x32xf32> to vector<8x32xf32>
    %356 = vector.shape_cast %345 : vector<8x32xf32> to vector<1x8x32xf32>
    tpu.vector_store %arg14[%353, %c0_171, %c0_172], %356 {strides = array<i32>} : memref<8x8x64xf32, #tpu.memory_space<vmem>>, vector<1x8x32xf32>,
    %c7_i32_173 = arith.constant 7 : i32
    %357 = arith.subi %c7_i32_173, %c5_i32 : i32
    %358 = arith.index_cast %357 : i32 to index
    %c0_174 = arith.constant 0 : index
    %c32_175 = arith.constant 32 : index
    %359 = vector.load %arg14[%358, %c0_174, %c32_175] : memref<8x8x64xf32, #tpu.memory_space<vmem>>, vector<1x8x32xf32>
    %360 = vector.shape_cast %359 : vector<1x8x32xf32> to vector<8x32xf32>
    %361 = vector.shape_cast %348 : vector<8x32xf32> to vector<1x8x32xf32>
    tpu.vector_store %arg14[%358, %c0_174, %c32_175], %361 {strides = array<i32>} : memref<8x8x64xf32, #tpu.memory_space<vmem>>, vector<1x8x32xf32>,
    %c6_i32 = arith.constant 6 : i32
    %c0_176 = arith.constant 0 : index
    %c0_177 = arith.constant 0 : index
    %362 = vector.load %arg15[%c0_176, %c0_177] : memref<8x64xf32, #tpu.memory_space<vmem>>, vector<8x64xf32>
    %cst_178 = arith.constant dense<0.000000e+00> : vector<8x256xf32>
    %363 = tpu.matmul %362, %3, %cst_178 {dimension_numbers = #tpu.dot_dimension_numbers<[1], [0], [0], [1], [0, 0, 1, 1], [], []>} : vector<8x64xf32>, vector<64x256xf32>, vector<8x256xf32> -> vector<8x256xf32>
    %364 = arith.index_cast %c6_i32 : i32 to index
    %c0_179 = arith.constant 0 : index
    %c0_180 = arith.constant 0 : index
    %365 = vector.load %arg13[%364, %c0_179, %c0_180] : memref<8x8x256xf32, #tpu.memory_space<vmem>>, vector<1x8x128xf32>
    %366 = vector.shape_cast %365 : vector<1x8x128xf32> to vector<8x128xf32>
    %367 = vector.extract_strided_slice %363 {offsets = [0, 0], sizes = [8, 128], strides = [1, 1]} : vector<8x256xf32> to vector<8x128xf32>
    %368 = arith.addf %366, %367 : vector<8x128xf32>
    %c7_i32_181 = arith.constant 7 : i32
    %369 = arith.subi %c7_i32_181, %c6_i32 : i32
    %370 = arith.index_cast %369 : i32 to index
    %c0_182 = arith.constant 0 : index
    %c128_183 = arith.constant 128 : index
    %371 = vector.load %arg13[%370, %c0_182, %c128_183] : memref<8x8x256xf32, #tpu.memory_space<vmem>>, vector<1x8x128xf32>
    %372 = vector.shape_cast %371 : vector<1x8x128xf32> to vector<8x128xf32>
    %373 = vector.extract_strided_slice %363 {offsets = [0, 128], sizes = [8, 128], strides = [1, 1]} : vector<8x256xf32> to vector<8x128xf32>
    %374 = arith.addf %372, %373 : vector<8x128xf32>
    %375 = arith.negf %368 : vector<8x128xf32>
    %376 = math.exp %375 : vector<8x128xf32>
    %cst_184 = arith.constant 1.000000e+00 : f32
    %377 = vector.broadcast %cst_184 : f32 to vector<8x128xf32>
    %378 = arith.addf %377, %376 : vector<8x128xf32>
    %379 = arith.divf %377, %378 : vector<8x128xf32>
    %380 = math.tanh %368 : vector<8x128xf32>
    %381 = arith.negf %374 : vector<8x128xf32>
    %382 = math.exp %381 : vector<8x128xf32>
    %cst_185 = arith.constant 1.000000e+00 : f32
    %383 = vector.broadcast %cst_185 : f32 to vector<8x128xf32>
    %384 = arith.addf %383, %382 : vector<8x128xf32>
    %385 = arith.divf %383, %384 : vector<8x128xf32>
    %386 = math.tanh %374 : vector<8x128xf32>
    %387 = vector.extract_strided_slice %379 {offsets = [0, 32], sizes = [8, 32], strides = [1, 1]} : vector<8x128xf32> to vector<8x32xf32>
    %c0_186 = arith.constant 0 : index
    %c0_187 = arith.constant 0 : index
    %388 = vector.load %arg16[%c0_186, %c0_187] : memref<8x64xf32, #tpu.memory_space<vmem>>, vector<8x32xf32>
    %389 = arith.mulf %387, %388 : vector<8x32xf32>
    %390 = vector.extract_strided_slice %379 {offsets = [0, 0], sizes = [8, 32], strides = [1, 1]} : vector<8x128xf32> to vector<8x32xf32>
    %391 = vector.extract_strided_slice %380 {offsets = [0, 64], sizes = [8, 32], strides = [1, 1]} : vector<8x128xf32> to vector<8x32xf32>
    %392 = arith.mulf %390, %391 : vector<8x32xf32>
    %393 = arith.addf %389, %392 : vector<8x32xf32>
    %394 = vector.extract_strided_slice %385 {offsets = [0, 32], sizes = [8, 32], strides = [1, 1]} : vector<8x128xf32> to vector<8x32xf32>
    %c0_188 = arith.constant 0 : index
    %c32_189 = arith.constant 32 : index
    %395 = vector.load %arg16[%c0_188, %c32_189] : memref<8x64xf32, #tpu.memory_space<vmem>>, vector<8x32xf32>
    %396 = arith.mulf %394, %395 : vector<8x32xf32>
    %397 = vector.extract_strided_slice %385 {offsets = [0, 0], sizes = [8, 32], strides = [1, 1]} : vector<8x128xf32> to vector<8x32xf32>
    %398 = vector.extract_strided_slice %386 {offsets = [0, 64], sizes = [8, 32], strides = [1, 1]} : vector<8x128xf32> to vector<8x32xf32>
    %399 = arith.mulf %397, %398 : vector<8x32xf32>
    %400 = arith.addf %396, %399 : vector<8x32xf32>
    %401 = vector.extract_strided_slice %379 {offsets = [0, 96], sizes = [8, 32], strides = [1, 1]} : vector<8x128xf32> to vector<8x32xf32>
    %402 = math.tanh %393 : vector<8x32xf32>
    %403 = arith.mulf %401, %402 : vector<8x32xf32>
    %404 = vector.extract_strided_slice %385 {offsets = [0, 96], sizes = [8, 32], strides = [1, 1]} : vector<8x128xf32> to vector<8x32xf32>
    %405 = math.tanh %400 : vector<8x32xf32>
    %406 = arith.mulf %404, %405 : vector<8x32xf32>
    %c0_190 = arith.constant 0 : index
    %c0_191 = arith.constant 0 : index
    %407 = vector.load %arg16[%c0_190, %c0_191] : memref<8x64xf32, #tpu.memory_space<vmem>>, vector<8x32xf32>
    tpu.vector_store %arg16[%c0_190, %c0_191], %393 {strides = array<i32>} : memref<8x64xf32, #tpu.memory_space<vmem>>, vector<8x32xf32>,
    %c0_192 = arith.constant 0 : index
    %c32_193 = arith.constant 32 : index
    %408 = vector.load %arg16[%c0_192, %c32_193] : memref<8x64xf32, #tpu.memory_space<vmem>>, vector<8x32xf32>
    tpu.vector_store %arg16[%c0_192, %c32_193], %400 {strides = array<i32>} : memref<8x64xf32, #tpu.memory_space<vmem>>, vector<8x32xf32>,
    %c0_194 = arith.constant 0 : index
    %c0_195 = arith.constant 0 : index
    %409 = vector.load %arg15[%c0_194, %c0_195] : memref<8x64xf32, #tpu.memory_space<vmem>>, vector<8x32xf32>
    tpu.vector_store %arg15[%c0_194, %c0_195], %403 {strides = array<i32>} : memref<8x64xf32, #tpu.memory_space<vmem>>, vector<8x32xf32>,
    %c0_196 = arith.constant 0 : index
    %c32_197 = arith.constant 32 : index
    %410 = vector.load %arg15[%c0_196, %c32_197] : memref<8x64xf32, #tpu.memory_space<vmem>>, vector<8x32xf32>
    tpu.vector_store %arg15[%c0_196, %c32_197], %406 {strides = array<i32>} : memref<8x64xf32, #tpu.memory_space<vmem>>, vector<8x32xf32>,
    %411 = arith.index_cast %c6_i32 : i32 to index
    %c0_198 = arith.constant 0 : index
    %c0_199 = arith.constant 0 : index
    %412 = vector.load %arg14[%411, %c0_198, %c0_199] : memref<8x8x64xf32, #tpu.memory_space<vmem>>, vector<1x8x32xf32>
    %413 = vector.shape_cast %412 : vector<1x8x32xf32> to vector<8x32xf32>
    %414 = vector.shape_cast %403 : vector<8x32xf32> to vector<1x8x32xf32>
    tpu.vector_store %arg14[%411, %c0_198, %c0_199], %414 {strides = array<i32>} : memref<8x8x64xf32, #tpu.memory_space<vmem>>, vector<1x8x32xf32>,
    %c7_i32_200 = arith.constant 7 : i32
    %415 = arith.subi %c7_i32_200, %c6_i32 : i32
    %416 = arith.index_cast %415 : i32 to index
    %c0_201 = arith.constant 0 : index
    %c32_202 = arith.constant 32 : index
    %417 = vector.load %arg14[%416, %c0_201, %c32_202] : memref<8x8x64xf32, #tpu.memory_space<vmem>>, vector<1x8x32xf32>
    %418 = vector.shape_cast %417 : vector<1x8x32xf32> to vector<8x32xf32>
    %419 = vector.shape_cast %406 : vector<8x32xf32> to vector<1x8x32xf32>
    tpu.vector_store %arg14[%416, %c0_201, %c32_202], %419 {strides = array<i32>} : memref<8x8x64xf32, #tpu.memory_space<vmem>>, vector<1x8x32xf32>,
    %c7_i32_203 = arith.constant 7 : i32
    %c0_204 = arith.constant 0 : index
    %c0_205 = arith.constant 0 : index
    %420 = vector.load %arg15[%c0_204, %c0_205] : memref<8x64xf32, #tpu.memory_space<vmem>>, vector<8x64xf32>
    %cst_206 = arith.constant dense<0.000000e+00> : vector<8x256xf32>
    %421 = tpu.matmul %420, %3, %cst_206 {dimension_numbers = #tpu.dot_dimension_numbers<[1], [0], [0], [1], [0, 0, 1, 1], [], []>} : vector<8x64xf32>, vector<64x256xf32>, vector<8x256xf32> -> vector<8x256xf32>
    %422 = arith.index_cast %c7_i32_203 : i32 to index
    %c0_207 = arith.constant 0 : index
    %c0_208 = arith.constant 0 : index
    %423 = vector.load %arg13[%422, %c0_207, %c0_208] : memref<8x8x256xf32, #tpu.memory_space<vmem>>, vector<1x8x128xf32>
    %424 = vector.shape_cast %423 : vector<1x8x128xf32> to vector<8x128xf32>
    %425 = vector.extract_strided_slice %421 {offsets = [0, 0], sizes = [8, 128], strides = [1, 1]} : vector<8x256xf32> to vector<8x128xf32>
    %426 = arith.addf %424, %425 : vector<8x128xf32>
    %c7_i32_209 = arith.constant 7 : i32
    %427 = arith.subi %c7_i32_209, %c7_i32_203 : i32
    %428 = arith.index_cast %427 : i32 to index
    %c0_210 = arith.constant 0 : index
    %c128_211 = arith.constant 128 : index
    %429 = vector.load %arg13[%428, %c0_210, %c128_211] : memref<8x8x256xf32, #tpu.memory_space<vmem>>, vector<1x8x128xf32>
    %430 = vector.shape_cast %429 : vector<1x8x128xf32> to vector<8x128xf32>
    %431 = vector.extract_strided_slice %421 {offsets = [0, 128], sizes = [8, 128], strides = [1, 1]} : vector<8x256xf32> to vector<8x128xf32>
    %432 = arith.addf %430, %431 : vector<8x128xf32>
    %433 = arith.negf %426 : vector<8x128xf32>
    %434 = math.exp %433 : vector<8x128xf32>
    %cst_212 = arith.constant 1.000000e+00 : f32
    %435 = vector.broadcast %cst_212 : f32 to vector<8x128xf32>
    %436 = arith.addf %435, %434 : vector<8x128xf32>
    %437 = arith.divf %435, %436 : vector<8x128xf32>
    %438 = math.tanh %426 : vector<8x128xf32>
    %439 = arith.negf %432 : vector<8x128xf32>
    %440 = math.exp %439 : vector<8x128xf32>
    %cst_213 = arith.constant 1.000000e+00 : f32
    %441 = vector.broadcast %cst_213 : f32 to vector<8x128xf32>
    %442 = arith.addf %441, %440 : vector<8x128xf32>
    %443 = arith.divf %441, %442 : vector<8x128xf32>
    %444 = math.tanh %432 : vector<8x128xf32>
    %445 = vector.extract_strided_slice %437 {offsets = [0, 32], sizes = [8, 32], strides = [1, 1]} : vector<8x128xf32> to vector<8x32xf32>
    %c0_214 = arith.constant 0 : index
    %c0_215 = arith.constant 0 : index
    %446 = vector.load %arg16[%c0_214, %c0_215] : memref<8x64xf32, #tpu.memory_space<vmem>>, vector<8x32xf32>
    %447 = arith.mulf %445, %446 : vector<8x32xf32>
    %448 = vector.extract_strided_slice %437 {offsets = [0, 0], sizes = [8, 32], strides = [1, 1]} : vector<8x128xf32> to vector<8x32xf32>
    %449 = vector.extract_strided_slice %438 {offsets = [0, 64], sizes = [8, 32], strides = [1, 1]} : vector<8x128xf32> to vector<8x32xf32>
    %450 = arith.mulf %448, %449 : vector<8x32xf32>
    %451 = arith.addf %447, %450 : vector<8x32xf32>
    %452 = vector.extract_strided_slice %443 {offsets = [0, 32], sizes = [8, 32], strides = [1, 1]} : vector<8x128xf32> to vector<8x32xf32>
    %c0_216 = arith.constant 0 : index
    %c32_217 = arith.constant 32 : index
    %453 = vector.load %arg16[%c0_216, %c32_217] : memref<8x64xf32, #tpu.memory_space<vmem>>, vector<8x32xf32>
    %454 = arith.mulf %452, %453 : vector<8x32xf32>
    %455 = vector.extract_strided_slice %443 {offsets = [0, 0], sizes = [8, 32], strides = [1, 1]} : vector<8x128xf32> to vector<8x32xf32>
    %456 = vector.extract_strided_slice %444 {offsets = [0, 64], sizes = [8, 32], strides = [1, 1]} : vector<8x128xf32> to vector<8x32xf32>
    %457 = arith.mulf %455, %456 : vector<8x32xf32>
    %458 = arith.addf %454, %457 : vector<8x32xf32>
    %459 = vector.extract_strided_slice %437 {offsets = [0, 96], sizes = [8, 32], strides = [1, 1]} : vector<8x128xf32> to vector<8x32xf32>
    %460 = math.tanh %451 : vector<8x32xf32>
    %461 = arith.mulf %459, %460 : vector<8x32xf32>
    %462 = vector.extract_strided_slice %443 {offsets = [0, 96], sizes = [8, 32], strides = [1, 1]} : vector<8x128xf32> to vector<8x32xf32>
    %463 = math.tanh %458 : vector<8x32xf32>
    %464 = arith.mulf %462, %463 : vector<8x32xf32>
    %c0_218 = arith.constant 0 : index
    %c0_219 = arith.constant 0 : index
    %465 = vector.load %arg16[%c0_218, %c0_219] : memref<8x64xf32, #tpu.memory_space<vmem>>, vector<8x32xf32>
    tpu.vector_store %arg16[%c0_218, %c0_219], %451 {strides = array<i32>} : memref<8x64xf32, #tpu.memory_space<vmem>>, vector<8x32xf32>,
    %c0_220 = arith.constant 0 : index
    %c32_221 = arith.constant 32 : index
    %466 = vector.load %arg16[%c0_220, %c32_221] : memref<8x64xf32, #tpu.memory_space<vmem>>, vector<8x32xf32>
    tpu.vector_store %arg16[%c0_220, %c32_221], %458 {strides = array<i32>} : memref<8x64xf32, #tpu.memory_space<vmem>>, vector<8x32xf32>,
    %c0_222 = arith.constant 0 : index
    %c0_223 = arith.constant 0 : index
    %467 = vector.load %arg15[%c0_222, %c0_223] : memref<8x64xf32, #tpu.memory_space<vmem>>, vector<8x32xf32>
    tpu.vector_store %arg15[%c0_222, %c0_223], %461 {strides = array<i32>} : memref<8x64xf32, #tpu.memory_space<vmem>>, vector<8x32xf32>,
    %c0_224 = arith.constant 0 : index
    %c32_225 = arith.constant 32 : index
    %468 = vector.load %arg15[%c0_224, %c32_225] : memref<8x64xf32, #tpu.memory_space<vmem>>, vector<8x32xf32>
    tpu.vector_store %arg15[%c0_224, %c32_225], %464 {strides = array<i32>} : memref<8x64xf32, #tpu.memory_space<vmem>>, vector<8x32xf32>,
    %469 = arith.index_cast %c7_i32_203 : i32 to index
    %c0_226 = arith.constant 0 : index
    %c0_227 = arith.constant 0 : index
    %470 = vector.load %arg14[%469, %c0_226, %c0_227] : memref<8x8x64xf32, #tpu.memory_space<vmem>>, vector<1x8x32xf32>
    %471 = vector.shape_cast %470 : vector<1x8x32xf32> to vector<8x32xf32>
    %472 = vector.shape_cast %461 : vector<8x32xf32> to vector<1x8x32xf32>
    tpu.vector_store %arg14[%469, %c0_226, %c0_227], %472 {strides = array<i32>} : memref<8x8x64xf32, #tpu.memory_space<vmem>>, vector<1x8x32xf32>,
    %c7_i32_228 = arith.constant 7 : i32
    %473 = arith.subi %c7_i32_228, %c7_i32_203 : i32
    %474 = arith.index_cast %473 : i32 to index
    %c0_229 = arith.constant 0 : index
    %c32_230 = arith.constant 32 : index
    %475 = vector.load %arg14[%474, %c0_229, %c32_230] : memref<8x8x64xf32, #tpu.memory_space<vmem>>, vector<1x8x32xf32>
    %476 = vector.shape_cast %475 : vector<1x8x32xf32> to vector<8x32xf32>
    %477 = vector.shape_cast %464 : vector<8x32xf32> to vector<1x8x32xf32>
    tpu.vector_store %arg14[%474, %c0_229, %c32_230], %477 {strides = array<i32>} : memref<8x8x64xf32, #tpu.memory_space<vmem>>, vector<1x8x32xf32>,
    %c8_i32 = arith.constant 8 : i32
    %c0_231 = arith.constant 0 : index
    %c0_232 = arith.constant 0 : index
    %c0_233 = arith.constant 0 : index
    %478 = vector.load %arg14[%c0_231, %c0_232, %c0_233] : memref<8x8x64xf32, #tpu.memory_space<vmem>>, vector<8x8x64xf32>
    %c0_234 = arith.constant 0 : index
    %c0_235 = arith.constant 0 : index
    %479 = vector.load %arg5[%c0_234, %c0_235] : memref<64x256xf32, #tpu.memory_space<vmem>>, vector<64x256xf32>
    %c0_236 = arith.constant 0 : index
    %c0_237 = arith.constant 0 : index
    %480 = vector.load %arg6[%c0_236, %c0_237] : memref<1x256xf32, #tpu.memory_space<vmem>>, vector<1x256xf32>
    %c0_238 = arith.constant 0 : index
    %c0_239 = arith.constant 0 : index
    %481 = vector.load %arg7[%c0_238, %c0_239] : memref<64x256xf32, #tpu.memory_space<vmem>>, vector<64x256xf32>
    %482 = vector.shape_cast %478 : vector<8x8x64xf32> to vector<64x64xf32>
    %cst_240 = arith.constant dense<0.000000e+00> : vector<64x256xf32>
    %483 = tpu.matmul %482, %479, %cst_240 {dimension_numbers = #tpu.dot_dimension_numbers<[1], [0], [0], [1], [0, 0, 1, 1], [], []>} : vector<64x64xf32>, vector<64x256xf32>, vector<64x256xf32> -> vector<64x256xf32>
    %484 = vector.broadcast %480 : vector<1x256xf32> to vector<64x256xf32>
    %485 = arith.addf %483, %484 : vector<64x256xf32>
    %486 = vector.shape_cast %485 : vector<64x256xf32> to vector<8x8x256xf32>
    %c0_241 = arith.constant 0 : index
    %c0_242 = arith.constant 0 : index
    %c0_243 = arith.constant 0 : index
    %487 = vector.load %arg13[%c0_241, %c0_242, %c0_243] : memref<8x8x256xf32, #tpu.memory_space<vmem>>, vector<8x8x256xf32>
    tpu.vector_store %arg13[%c0_241, %c0_242, %c0_243], %486 {strides = array<i32>} : memref<8x8x256xf32, #tpu.memory_space<vmem>>, vector<8x8x256xf32>,
    %cst_244 = arith.constant 0.000000e+00 : f32
    %488 = vector.broadcast %cst_244 : f32 to vector<8x64xf32>
    %c0_245 = arith.constant 0 : index
    %c0_246 = arith.constant 0 : index
    %489 = vector.load %arg15[%c0_245, %c0_246] : memref<8x64xf32, #tpu.memory_space<vmem>>, vector<8x64xf32>
    tpu.vector_store %arg15[%c0_245, %c0_246], %488 {strides = array<i32>} : memref<8x64xf32, #tpu.memory_space<vmem>>, vector<8x64xf32>,
    %cst_247 = arith.constant 0.000000e+00 : f32
    %490 = vector.broadcast %cst_247 : f32 to vector<8x64xf32>
    %c0_248 = arith.constant 0 : index
    %c0_249 = arith.constant 0 : index
    %491 = vector.load %arg16[%c0_248, %c0_249] : memref<8x64xf32, #tpu.memory_space<vmem>>, vector<8x64xf32>
    tpu.vector_store %arg16[%c0_248, %c0_249], %490 {strides = array<i32>} : memref<8x64xf32, #tpu.memory_space<vmem>>, vector<8x64xf32>,
    %c0_i32_250 = arith.constant 0 : i32
    %c0_251 = arith.constant 0 : index
    %c0_252 = arith.constant 0 : index
    %492 = vector.load %arg15[%c0_251, %c0_252] : memref<8x64xf32, #tpu.memory_space<vmem>>, vector<8x64xf32>
    %cst_253 = arith.constant dense<0.000000e+00> : vector<8x256xf32>
    %493 = tpu.matmul %492, %481, %cst_253 {dimension_numbers = #tpu.dot_dimension_numbers<[1], [0], [0], [1], [0, 0, 1, 1], [], []>} : vector<8x64xf32>, vector<64x256xf32>, vector<8x256xf32> -> vector<8x256xf32>
    %494 = arith.index_cast %c0_i32_250 : i32 to index
    %c0_254 = arith.constant 0 : index
    %c0_255 = arith.constant 0 : index
    %495 = vector.load %arg13[%494, %c0_254, %c0_255] : memref<8x8x256xf32, #tpu.memory_space<vmem>>, vector<1x8x128xf32>
    %496 = vector.shape_cast %495 : vector<1x8x128xf32> to vector<8x128xf32>
    %497 = vector.extract_strided_slice %493 {offsets = [0, 0], sizes = [8, 128], strides = [1, 1]} : vector<8x256xf32> to vector<8x128xf32>
    %498 = arith.addf %496, %497 : vector<8x128xf32>
    %c7_i32_256 = arith.constant 7 : i32
    %499 = arith.subi %c7_i32_256, %c0_i32_250 : i32
    %500 = arith.index_cast %499 : i32 to index
    %c0_257 = arith.constant 0 : index
    %c128_258 = arith.constant 128 : index
    %501 = vector.load %arg13[%500, %c0_257, %c128_258] : memref<8x8x256xf32, #tpu.memory_space<vmem>>, vector<1x8x128xf32>
    %502 = vector.shape_cast %501 : vector<1x8x128xf32> to vector<8x128xf32>
    %503 = vector.extract_strided_slice %493 {offsets = [0, 128], sizes = [8, 128], strides = [1, 1]} : vector<8x256xf32> to vector<8x128xf32>
    %504 = arith.addf %502, %503 : vector<8x128xf32>
    %505 = arith.negf %498 : vector<8x128xf32>
    %506 = math.exp %505 : vector<8x128xf32>
    %cst_259 = arith.constant 1.000000e+00 : f32
    %507 = vector.broadcast %cst_259 : f32 to vector<8x128xf32>
    %508 = arith.addf %507, %506 : vector<8x128xf32>
    %509 = arith.divf %507, %508 : vector<8x128xf32>
    %510 = math.tanh %498 : vector<8x128xf32>
    %511 = arith.negf %504 : vector<8x128xf32>
    %512 = math.exp %511 : vector<8x128xf32>
    %cst_260 = arith.constant 1.000000e+00 : f32
    %513 = vector.broadcast %cst_260 : f32 to vector<8x128xf32>
    %514 = arith.addf %513, %512 : vector<8x128xf32>
    %515 = arith.divf %513, %514 : vector<8x128xf32>
    %516 = math.tanh %504 : vector<8x128xf32>
    %517 = vector.extract_strided_slice %509 {offsets = [0, 32], sizes = [8, 32], strides = [1, 1]} : vector<8x128xf32> to vector<8x32xf32>
    %c0_261 = arith.constant 0 : index
    %c0_262 = arith.constant 0 : index
    %518 = vector.load %arg16[%c0_261, %c0_262] : memref<8x64xf32, #tpu.memory_space<vmem>>, vector<8x32xf32>
    %519 = arith.mulf %517, %518 : vector<8x32xf32>
    %520 = vector.extract_strided_slice %509 {offsets = [0, 0], sizes = [8, 32], strides = [1, 1]} : vector<8x128xf32> to vector<8x32xf32>
    %521 = vector.extract_strided_slice %510 {offsets = [0, 64], sizes = [8, 32], strides = [1, 1]} : vector<8x128xf32> to vector<8x32xf32>
    %522 = arith.mulf %520, %521 : vector<8x32xf32>
    %523 = arith.addf %519, %522 : vector<8x32xf32>
    %524 = vector.extract_strided_slice %515 {offsets = [0, 32], sizes = [8, 32], strides = [1, 1]} : vector<8x128xf32> to vector<8x32xf32>
    %c0_263 = arith.constant 0 : index
    %c32_264 = arith.constant 32 : index
    %525 = vector.load %arg16[%c0_263, %c32_264] : memref<8x64xf32, #tpu.memory_space<vmem>>, vector<8x32xf32>
    %526 = arith.mulf %524, %525 : vector<8x32xf32>
    %527 = vector.extract_strided_slice %515 {offsets = [0, 0], sizes = [8, 32], strides = [1, 1]} : vector<8x128xf32> to vector<8x32xf32>
    %528 = vector.extract_strided_slice %516 {offsets = [0, 64], sizes = [8, 32], strides = [1, 1]} : vector<8x128xf32> to vector<8x32xf32>
    %529 = arith.mulf %527, %528 : vector<8x32xf32>
    %530 = arith.addf %526, %529 : vector<8x32xf32>
    %531 = vector.extract_strided_slice %509 {offsets = [0, 96], sizes = [8, 32], strides = [1, 1]} : vector<8x128xf32> to vector<8x32xf32>
    %532 = math.tanh %523 : vector<8x32xf32>
    %533 = arith.mulf %531, %532 : vector<8x32xf32>
    %534 = vector.extract_strided_slice %515 {offsets = [0, 96], sizes = [8, 32], strides = [1, 1]} : vector<8x128xf32> to vector<8x32xf32>
    %535 = math.tanh %530 : vector<8x32xf32>
    %536 = arith.mulf %534, %535 : vector<8x32xf32>
    %c0_265 = arith.constant 0 : index
    %c0_266 = arith.constant 0 : index
    %537 = vector.load %arg16[%c0_265, %c0_266] : memref<8x64xf32, #tpu.memory_space<vmem>>, vector<8x32xf32>
    tpu.vector_store %arg16[%c0_265, %c0_266], %523 {strides = array<i32>} : memref<8x64xf32, #tpu.memory_space<vmem>>, vector<8x32xf32>,
    %c0_267 = arith.constant 0 : index
    %c32_268 = arith.constant 32 : index
    %538 = vector.load %arg16[%c0_267, %c32_268] : memref<8x64xf32, #tpu.memory_space<vmem>>, vector<8x32xf32>
    tpu.vector_store %arg16[%c0_267, %c32_268], %530 {strides = array<i32>} : memref<8x64xf32, #tpu.memory_space<vmem>>, vector<8x32xf32>,
    %c0_269 = arith.constant 0 : index
    %c0_270 = arith.constant 0 : index
    %539 = vector.load %arg15[%c0_269, %c0_270] : memref<8x64xf32, #tpu.memory_space<vmem>>, vector<8x32xf32>
    tpu.vector_store %arg15[%c0_269, %c0_270], %533 {strides = array<i32>} : memref<8x64xf32, #tpu.memory_space<vmem>>, vector<8x32xf32>,
    %c0_271 = arith.constant 0 : index
    %c32_272 = arith.constant 32 : index
    %540 = vector.load %arg15[%c0_271, %c32_272] : memref<8x64xf32, #tpu.memory_space<vmem>>, vector<8x32xf32>
    tpu.vector_store %arg15[%c0_271, %c32_272], %536 {strides = array<i32>} : memref<8x64xf32, #tpu.memory_space<vmem>>, vector<8x32xf32>,
    %541 = arith.index_cast %c0_i32_250 : i32 to index
    %c0_273 = arith.constant 0 : index
    %c0_274 = arith.constant 0 : index
    %542 = vector.load %arg14[%541, %c0_273, %c0_274] : memref<8x8x64xf32, #tpu.memory_space<vmem>>, vector<1x8x32xf32>
    %543 = vector.shape_cast %542 : vector<1x8x32xf32> to vector<8x32xf32>
    %544 = vector.shape_cast %533 : vector<8x32xf32> to vector<1x8x32xf32>
    tpu.vector_store %arg14[%541, %c0_273, %c0_274], %544 {strides = array<i32>} : memref<8x8x64xf32, #tpu.memory_space<vmem>>, vector<1x8x32xf32>,
    %c7_i32_275 = arith.constant 7 : i32
    %545 = arith.subi %c7_i32_275, %c0_i32_250 : i32
    %546 = arith.index_cast %545 : i32 to index
    %c0_276 = arith.constant 0 : index
    %c32_277 = arith.constant 32 : index
    %547 = vector.load %arg14[%546, %c0_276, %c32_277] : memref<8x8x64xf32, #tpu.memory_space<vmem>>, vector<1x8x32xf32>
    %548 = vector.shape_cast %547 : vector<1x8x32xf32> to vector<8x32xf32>
    %549 = vector.shape_cast %536 : vector<8x32xf32> to vector<1x8x32xf32>
    tpu.vector_store %arg14[%546, %c0_276, %c32_277], %549 {strides = array<i32>} : memref<8x8x64xf32, #tpu.memory_space<vmem>>, vector<1x8x32xf32>,
    %c1_i32_278 = arith.constant 1 : i32
    %c0_279 = arith.constant 0 : index
    %c0_280 = arith.constant 0 : index
    %550 = vector.load %arg15[%c0_279, %c0_280] : memref<8x64xf32, #tpu.memory_space<vmem>>, vector<8x64xf32>
    %cst_281 = arith.constant dense<0.000000e+00> : vector<8x256xf32>
    %551 = tpu.matmul %550, %481, %cst_281 {dimension_numbers = #tpu.dot_dimension_numbers<[1], [0], [0], [1], [0, 0, 1, 1], [], []>} : vector<8x64xf32>, vector<64x256xf32>, vector<8x256xf32> -> vector<8x256xf32>
    %552 = arith.index_cast %c1_i32_278 : i32 to index
    %c0_282 = arith.constant 0 : index
    %c0_283 = arith.constant 0 : index
    %553 = vector.load %arg13[%552, %c0_282, %c0_283] : memref<8x8x256xf32, #tpu.memory_space<vmem>>, vector<1x8x128xf32>
    %554 = vector.shape_cast %553 : vector<1x8x128xf32> to vector<8x128xf32>
    %555 = vector.extract_strided_slice %551 {offsets = [0, 0], sizes = [8, 128], strides = [1, 1]} : vector<8x256xf32> to vector<8x128xf32>
    %556 = arith.addf %554, %555 : vector<8x128xf32>
    %c7_i32_284 = arith.constant 7 : i32
    %557 = arith.subi %c7_i32_284, %c1_i32_278 : i32
    %558 = arith.index_cast %557 : i32 to index
    %c0_285 = arith.constant 0 : index
    %c128_286 = arith.constant 128 : index
    %559 = vector.load %arg13[%558, %c0_285, %c128_286] : memref<8x8x256xf32, #tpu.memory_space<vmem>>, vector<1x8x128xf32>
    %560 = vector.shape_cast %559 : vector<1x8x128xf32> to vector<8x128xf32>
    %561 = vector.extract_strided_slice %551 {offsets = [0, 128], sizes = [8, 128], strides = [1, 1]} : vector<8x256xf32> to vector<8x128xf32>
    %562 = arith.addf %560, %561 : vector<8x128xf32>
    %563 = arith.negf %556 : vector<8x128xf32>
    %564 = math.exp %563 : vector<8x128xf32>
    %cst_287 = arith.constant 1.000000e+00 : f32
    %565 = vector.broadcast %cst_287 : f32 to vector<8x128xf32>
    %566 = arith.addf %565, %564 : vector<8x128xf32>
    %567 = arith.divf %565, %566 : vector<8x128xf32>
    %568 = math.tanh %556 : vector<8x128xf32>
    %569 = arith.negf %562 : vector<8x128xf32>
    %570 = math.exp %569 : vector<8x128xf32>
    %cst_288 = arith.constant 1.000000e+00 : f32
    %571 = vector.broadcast %cst_288 : f32 to vector<8x128xf32>
    %572 = arith.addf %571, %570 : vector<8x128xf32>
    %573 = arith.divf %571, %572 : vector<8x128xf32>
    %574 = math.tanh %562 : vector<8x128xf32>
    %575 = vector.extract_strided_slice %567 {offsets = [0, 32], sizes = [8, 32], strides = [1, 1]} : vector<8x128xf32> to vector<8x32xf32>
    %c0_289 = arith.constant 0 : index
    %c0_290 = arith.constant 0 : index
    %576 = vector.load %arg16[%c0_289, %c0_290] : memref<8x64xf32, #tpu.memory_space<vmem>>, vector<8x32xf32>
    %577 = arith.mulf %575, %576 : vector<8x32xf32>
    %578 = vector.extract_strided_slice %567 {offsets = [0, 0], sizes = [8, 32], strides = [1, 1]} : vector<8x128xf32> to vector<8x32xf32>
    %579 = vector.extract_strided_slice %568 {offsets = [0, 64], sizes = [8, 32], strides = [1, 1]} : vector<8x128xf32> to vector<8x32xf32>
    %580 = arith.mulf %578, %579 : vector<8x32xf32>
    %581 = arith.addf %577, %580 : vector<8x32xf32>
    %582 = vector.extract_strided_slice %573 {offsets = [0, 32], sizes = [8, 32], strides = [1, 1]} : vector<8x128xf32> to vector<8x32xf32>
    %c0_291 = arith.constant 0 : index
    %c32_292 = arith.constant 32 : index
    %583 = vector.load %arg16[%c0_291, %c32_292] : memref<8x64xf32, #tpu.memory_space<vmem>>, vector<8x32xf32>
    %584 = arith.mulf %582, %583 : vector<8x32xf32>
    %585 = vector.extract_strided_slice %573 {offsets = [0, 0], sizes = [8, 32], strides = [1, 1]} : vector<8x128xf32> to vector<8x32xf32>
    %586 = vector.extract_strided_slice %574 {offsets = [0, 64], sizes = [8, 32], strides = [1, 1]} : vector<8x128xf32> to vector<8x32xf32>
    %587 = arith.mulf %585, %586 : vector<8x32xf32>
    %588 = arith.addf %584, %587 : vector<8x32xf32>
    %589 = vector.extract_strided_slice %567 {offsets = [0, 96], sizes = [8, 32], strides = [1, 1]} : vector<8x128xf32> to vector<8x32xf32>
    %590 = math.tanh %581 : vector<8x32xf32>
    %591 = arith.mulf %589, %590 : vector<8x32xf32>
    %592 = vector.extract_strided_slice %573 {offsets = [0, 96], sizes = [8, 32], strides = [1, 1]} : vector<8x128xf32> to vector<8x32xf32>
    %593 = math.tanh %588 : vector<8x32xf32>
    %594 = arith.mulf %592, %593 : vector<8x32xf32>
    %c0_293 = arith.constant 0 : index
    %c0_294 = arith.constant 0 : index
    %595 = vector.load %arg16[%c0_293, %c0_294] : memref<8x64xf32, #tpu.memory_space<vmem>>, vector<8x32xf32>
    tpu.vector_store %arg16[%c0_293, %c0_294], %581 {strides = array<i32>} : memref<8x64xf32, #tpu.memory_space<vmem>>, vector<8x32xf32>,
    %c0_295 = arith.constant 0 : index
    %c32_296 = arith.constant 32 : index
    %596 = vector.load %arg16[%c0_295, %c32_296] : memref<8x64xf32, #tpu.memory_space<vmem>>, vector<8x32xf32>
    tpu.vector_store %arg16[%c0_295, %c32_296], %588 {strides = array<i32>} : memref<8x64xf32, #tpu.memory_space<vmem>>, vector<8x32xf32>,
    %c0_297 = arith.constant 0 : index
    %c0_298 = arith.constant 0 : index
    %597 = vector.load %arg15[%c0_297, %c0_298] : memref<8x64xf32, #tpu.memory_space<vmem>>, vector<8x32xf32>
    tpu.vector_store %arg15[%c0_297, %c0_298], %591 {strides = array<i32>} : memref<8x64xf32, #tpu.memory_space<vmem>>, vector<8x32xf32>,
    %c0_299 = arith.constant 0 : index
    %c32_300 = arith.constant 32 : index
    %598 = vector.load %arg15[%c0_299, %c32_300] : memref<8x64xf32, #tpu.memory_space<vmem>>, vector<8x32xf32>
    tpu.vector_store %arg15[%c0_299, %c32_300], %594 {strides = array<i32>} : memref<8x64xf32, #tpu.memory_space<vmem>>, vector<8x32xf32>,
    %599 = arith.index_cast %c1_i32_278 : i32 to index
    %c0_301 = arith.constant 0 : index
    %c0_302 = arith.constant 0 : index
    %600 = vector.load %arg14[%599, %c0_301, %c0_302] : memref<8x8x64xf32, #tpu.memory_space<vmem>>, vector<1x8x32xf32>
    %601 = vector.shape_cast %600 : vector<1x8x32xf32> to vector<8x32xf32>
    %602 = vector.shape_cast %591 : vector<8x32xf32> to vector<1x8x32xf32>
    tpu.vector_store %arg14[%599, %c0_301, %c0_302], %602 {strides = array<i32>} : memref<8x8x64xf32, #tpu.memory_space<vmem>>, vector<1x8x32xf32>,
    %c7_i32_303 = arith.constant 7 : i32
    %603 = arith.subi %c7_i32_303, %c1_i32_278 : i32
    %604 = arith.index_cast %603 : i32 to index
    %c0_304 = arith.constant 0 : index
    %c32_305 = arith.constant 32 : index
    %605 = vector.load %arg14[%604, %c0_304, %c32_305] : memref<8x8x64xf32, #tpu.memory_space<vmem>>, vector<1x8x32xf32>
    %606 = vector.shape_cast %605 : vector<1x8x32xf32> to vector<8x32xf32>
    %607 = vector.shape_cast %594 : vector<8x32xf32> to vector<1x8x32xf32>
    tpu.vector_store %arg14[%604, %c0_304, %c32_305], %607 {strides = array<i32>} : memref<8x8x64xf32, #tpu.memory_space<vmem>>, vector<1x8x32xf32>,
    %c2_i32_306 = arith.constant 2 : i32
    %c0_307 = arith.constant 0 : index
    %c0_308 = arith.constant 0 : index
    %608 = vector.load %arg15[%c0_307, %c0_308] : memref<8x64xf32, #tpu.memory_space<vmem>>, vector<8x64xf32>
    %cst_309 = arith.constant dense<0.000000e+00> : vector<8x256xf32>
    %609 = tpu.matmul %608, %481, %cst_309 {dimension_numbers = #tpu.dot_dimension_numbers<[1], [0], [0], [1], [0, 0, 1, 1], [], []>} : vector<8x64xf32>, vector<64x256xf32>, vector<8x256xf32> -> vector<8x256xf32>
    %610 = arith.index_cast %c2_i32_306 : i32 to index
    %c0_310 = arith.constant 0 : index
    %c0_311 = arith.constant 0 : index
    %611 = vector.load %arg13[%610, %c0_310, %c0_311] : memref<8x8x256xf32, #tpu.memory_space<vmem>>, vector<1x8x128xf32>
    %612 = vector.shape_cast %611 : vector<1x8x128xf32> to vector<8x128xf32>
    %613 = vector.extract_strided_slice %609 {offsets = [0, 0], sizes = [8, 128], strides = [1, 1]} : vector<8x256xf32> to vector<8x128xf32>
    %614 = arith.addf %612, %613 : vector<8x128xf32>
    %c7_i32_312 = arith.constant 7 : i32
    %615 = arith.subi %c7_i32_312, %c2_i32_306 : i32
    %616 = arith.index_cast %615 : i32 to index
    %c0_313 = arith.constant 0 : index
    %c128_314 = arith.constant 128 : index
    %617 = vector.load %arg13[%616, %c0_313, %c128_314] : memref<8x8x256xf32, #tpu.memory_space<vmem>>, vector<1x8x128xf32>
    %618 = vector.shape_cast %617 : vector<1x8x128xf32> to vector<8x128xf32>
    %619 = vector.extract_strided_slice %609 {offsets = [0, 128], sizes = [8, 128], strides = [1, 1]} : vector<8x256xf32> to vector<8x128xf32>
    %620 = arith.addf %618, %619 : vector<8x128xf32>
    %621 = arith.negf %614 : vector<8x128xf32>
    %622 = math.exp %621 : vector<8x128xf32>
    %cst_315 = arith.constant 1.000000e+00 : f32
    %623 = vector.broadcast %cst_315 : f32 to vector<8x128xf32>
    %624 = arith.addf %623, %622 : vector<8x128xf32>
    %625 = arith.divf %623, %624 : vector<8x128xf32>
    %626 = math.tanh %614 : vector<8x128xf32>
    %627 = arith.negf %620 : vector<8x128xf32>
    %628 = math.exp %627 : vector<8x128xf32>
    %cst_316 = arith.constant 1.000000e+00 : f32
    %629 = vector.broadcast %cst_316 : f32 to vector<8x128xf32>
    %630 = arith.addf %629, %628 : vector<8x128xf32>
    %631 = arith.divf %629, %630 : vector<8x128xf32>
    %632 = math.tanh %620 : vector<8x128xf32>
    %633 = vector.extract_strided_slice %625 {offsets = [0, 32], sizes = [8, 32], strides = [1, 1]} : vector<8x128xf32> to vector<8x32xf32>
    %c0_317 = arith.constant 0 : index
    %c0_318 = arith.constant 0 : index
    %634 = vector.load %arg16[%c0_317, %c0_318] : memref<8x64xf32, #tpu.memory_space<vmem>>, vector<8x32xf32>
    %635 = arith.mulf %633, %634 : vector<8x32xf32>
    %636 = vector.extract_strided_slice %625 {offsets = [0, 0], sizes = [8, 32], strides = [1, 1]} : vector<8x128xf32> to vector<8x32xf32>
    %637 = vector.extract_strided_slice %626 {offsets = [0, 64], sizes = [8, 32], strides = [1, 1]} : vector<8x128xf32> to vector<8x32xf32>
    %638 = arith.mulf %636, %637 : vector<8x32xf32>
    %639 = arith.addf %635, %638 : vector<8x32xf32>
    %640 = vector.extract_strided_slice %631 {offsets = [0, 32], sizes = [8, 32], strides = [1, 1]} : vector<8x128xf32> to vector<8x32xf32>
    %c0_319 = arith.constant 0 : index
    %c32_320 = arith.constant 32 : index
    %641 = vector.load %arg16[%c0_319, %c32_320] : memref<8x64xf32, #tpu.memory_space<vmem>>, vector<8x32xf32>
    %642 = arith.mulf %640, %641 : vector<8x32xf32>
    %643 = vector.extract_strided_slice %631 {offsets = [0, 0], sizes = [8, 32], strides = [1, 1]} : vector<8x128xf32> to vector<8x32xf32>
    %644 = vector.extract_strided_slice %632 {offsets = [0, 64], sizes = [8, 32], strides = [1, 1]} : vector<8x128xf32> to vector<8x32xf32>
    %645 = arith.mulf %643, %644 : vector<8x32xf32>
    %646 = arith.addf %642, %645 : vector<8x32xf32>
    %647 = vector.extract_strided_slice %625 {offsets = [0, 96], sizes = [8, 32], strides = [1, 1]} : vector<8x128xf32> to vector<8x32xf32>
    %648 = math.tanh %639 : vector<8x32xf32>
    %649 = arith.mulf %647, %648 : vector<8x32xf32>
    %650 = vector.extract_strided_slice %631 {offsets = [0, 96], sizes = [8, 32], strides = [1, 1]} : vector<8x128xf32> to vector<8x32xf32>
    %651 = math.tanh %646 : vector<8x32xf32>
    %652 = arith.mulf %650, %651 : vector<8x32xf32>
    %c0_321 = arith.constant 0 : index
    %c0_322 = arith.constant 0 : index
    %653 = vector.load %arg16[%c0_321, %c0_322] : memref<8x64xf32, #tpu.memory_space<vmem>>, vector<8x32xf32>
    tpu.vector_store %arg16[%c0_321, %c0_322], %639 {strides = array<i32>} : memref<8x64xf32, #tpu.memory_space<vmem>>, vector<8x32xf32>,
    %c0_323 = arith.constant 0 : index
    %c32_324 = arith.constant 32 : index
    %654 = vector.load %arg16[%c0_323, %c32_324] : memref<8x64xf32, #tpu.memory_space<vmem>>, vector<8x32xf32>
    tpu.vector_store %arg16[%c0_323, %c32_324], %646 {strides = array<i32>} : memref<8x64xf32, #tpu.memory_space<vmem>>, vector<8x32xf32>,
    %c0_325 = arith.constant 0 : index
    %c0_326 = arith.constant 0 : index
    %655 = vector.load %arg15[%c0_325, %c0_326] : memref<8x64xf32, #tpu.memory_space<vmem>>, vector<8x32xf32>
    tpu.vector_store %arg15[%c0_325, %c0_326], %649 {strides = array<i32>} : memref<8x64xf32, #tpu.memory_space<vmem>>, vector<8x32xf32>,
    %c0_327 = arith.constant 0 : index
    %c32_328 = arith.constant 32 : index
    %656 = vector.load %arg15[%c0_327, %c32_328] : memref<8x64xf32, #tpu.memory_space<vmem>>, vector<8x32xf32>
    tpu.vector_store %arg15[%c0_327, %c32_328], %652 {strides = array<i32>} : memref<8x64xf32, #tpu.memory_space<vmem>>, vector<8x32xf32>,
    %657 = arith.index_cast %c2_i32_306 : i32 to index
    %c0_329 = arith.constant 0 : index
    %c0_330 = arith.constant 0 : index
    %658 = vector.load %arg14[%657, %c0_329, %c0_330] : memref<8x8x64xf32, #tpu.memory_space<vmem>>, vector<1x8x32xf32>
    %659 = vector.shape_cast %658 : vector<1x8x32xf32> to vector<8x32xf32>
    %660 = vector.shape_cast %649 : vector<8x32xf32> to vector<1x8x32xf32>
    tpu.vector_store %arg14[%657, %c0_329, %c0_330], %660 {strides = array<i32>} : memref<8x8x64xf32, #tpu.memory_space<vmem>>, vector<1x8x32xf32>,
    %c7_i32_331 = arith.constant 7 : i32
    %661 = arith.subi %c7_i32_331, %c2_i32_306 : i32
    %662 = arith.index_cast %661 : i32 to index
    %c0_332 = arith.constant 0 : index
    %c32_333 = arith.constant 32 : index
    %663 = vector.load %arg14[%662, %c0_332, %c32_333] : memref<8x8x64xf32, #tpu.memory_space<vmem>>, vector<1x8x32xf32>
    %664 = vector.shape_cast %663 : vector<1x8x32xf32> to vector<8x32xf32>
    %665 = vector.shape_cast %652 : vector<8x32xf32> to vector<1x8x32xf32>
    tpu.vector_store %arg14[%662, %c0_332, %c32_333], %665 {strides = array<i32>} : memref<8x8x64xf32, #tpu.memory_space<vmem>>, vector<1x8x32xf32>,
    %c3_i32_334 = arith.constant 3 : i32
    %c0_335 = arith.constant 0 : index
    %c0_336 = arith.constant 0 : index
    %666 = vector.load %arg15[%c0_335, %c0_336] : memref<8x64xf32, #tpu.memory_space<vmem>>, vector<8x64xf32>
    %cst_337 = arith.constant dense<0.000000e+00> : vector<8x256xf32>
    %667 = tpu.matmul %666, %481, %cst_337 {dimension_numbers = #tpu.dot_dimension_numbers<[1], [0], [0], [1], [0, 0, 1, 1], [], []>} : vector<8x64xf32>, vector<64x256xf32>, vector<8x256xf32> -> vector<8x256xf32>
    %668 = arith.index_cast %c3_i32_334 : i32 to index
    %c0_338 = arith.constant 0 : index
    %c0_339 = arith.constant 0 : index
    %669 = vector.load %arg13[%668, %c0_338, %c0_339] : memref<8x8x256xf32, #tpu.memory_space<vmem>>, vector<1x8x128xf32>
    %670 = vector.shape_cast %669 : vector<1x8x128xf32> to vector<8x128xf32>
    %671 = vector.extract_strided_slice %667 {offsets = [0, 0], sizes = [8, 128], strides = [1, 1]} : vector<8x256xf32> to vector<8x128xf32>
    %672 = arith.addf %670, %671 : vector<8x128xf32>
    %c7_i32_340 = arith.constant 7 : i32
    %673 = arith.subi %c7_i32_340, %c3_i32_334 : i32
    %674 = arith.index_cast %673 : i32 to index
    %c0_341 = arith.constant 0 : index
    %c128_342 = arith.constant 128 : index
    %675 = vector.load %arg13[%674, %c0_341, %c128_342] : memref<8x8x256xf32, #tpu.memory_space<vmem>>, vector<1x8x128xf32>
    %676 = vector.shape_cast %675 : vector<1x8x128xf32> to vector<8x128xf32>
    %677 = vector.extract_strided_slice %667 {offsets = [0, 128], sizes = [8, 128], strides = [1, 1]} : vector<8x256xf32> to vector<8x128xf32>
    %678 = arith.addf %676, %677 : vector<8x128xf32>
    %679 = arith.negf %672 : vector<8x128xf32>
    %680 = math.exp %679 : vector<8x128xf32>
    %cst_343 = arith.constant 1.000000e+00 : f32
    %681 = vector.broadcast %cst_343 : f32 to vector<8x128xf32>
    %682 = arith.addf %681, %680 : vector<8x128xf32>
    %683 = arith.divf %681, %682 : vector<8x128xf32>
    %684 = math.tanh %672 : vector<8x128xf32>
    %685 = arith.negf %678 : vector<8x128xf32>
    %686 = math.exp %685 : vector<8x128xf32>
    %cst_344 = arith.constant 1.000000e+00 : f32
    %687 = vector.broadcast %cst_344 : f32 to vector<8x128xf32>
    %688 = arith.addf %687, %686 : vector<8x128xf32>
    %689 = arith.divf %687, %688 : vector<8x128xf32>
    %690 = math.tanh %678 : vector<8x128xf32>
    %691 = vector.extract_strided_slice %683 {offsets = [0, 32], sizes = [8, 32], strides = [1, 1]} : vector<8x128xf32> to vector<8x32xf32>
    %c0_345 = arith.constant 0 : index
    %c0_346 = arith.constant 0 : index
    %692 = vector.load %arg16[%c0_345, %c0_346] : memref<8x64xf32, #tpu.memory_space<vmem>>, vector<8x32xf32>
    %693 = arith.mulf %691, %692 : vector<8x32xf32>
    %694 = vector.extract_strided_slice %683 {offsets = [0, 0], sizes = [8, 32], strides = [1, 1]} : vector<8x128xf32> to vector<8x32xf32>
    %695 = vector.extract_strided_slice %684 {offsets = [0, 64], sizes = [8, 32], strides = [1, 1]} : vector<8x128xf32> to vector<8x32xf32>
    %696 = arith.mulf %694, %695 : vector<8x32xf32>
    %697 = arith.addf %693, %696 : vector<8x32xf32>
    %698 = vector.extract_strided_slice %689 {offsets = [0, 32], sizes = [8, 32], strides = [1, 1]} : vector<8x128xf32> to vector<8x32xf32>
    %c0_347 = arith.constant 0 : index
    %c32_348 = arith.constant 32 : index
    %699 = vector.load %arg16[%c0_347, %c32_348] : memref<8x64xf32, #tpu.memory_space<vmem>>, vector<8x32xf32>
    %700 = arith.mulf %698, %699 : vector<8x32xf32>
    %701 = vector.extract_strided_slice %689 {offsets = [0, 0], sizes = [8, 32], strides = [1, 1]} : vector<8x128xf32> to vector<8x32xf32>
    %702 = vector.extract_strided_slice %690 {offsets = [0, 64], sizes = [8, 32], strides = [1, 1]} : vector<8x128xf32> to vector<8x32xf32>
    %703 = arith.mulf %701, %702 : vector<8x32xf32>
    %704 = arith.addf %700, %703 : vector<8x32xf32>
    %705 = vector.extract_strided_slice %683 {offsets = [0, 96], sizes = [8, 32], strides = [1, 1]} : vector<8x128xf32> to vector<8x32xf32>
    %706 = math.tanh %697 : vector<8x32xf32>
    %707 = arith.mulf %705, %706 : vector<8x32xf32>
    %708 = vector.extract_strided_slice %689 {offsets = [0, 96], sizes = [8, 32], strides = [1, 1]} : vector<8x128xf32> to vector<8x32xf32>
    %709 = math.tanh %704 : vector<8x32xf32>
    %710 = arith.mulf %708, %709 : vector<8x32xf32>
    %c0_349 = arith.constant 0 : index
    %c0_350 = arith.constant 0 : index
    %711 = vector.load %arg16[%c0_349, %c0_350] : memref<8x64xf32, #tpu.memory_space<vmem>>, vector<8x32xf32>
    tpu.vector_store %arg16[%c0_349, %c0_350], %697 {strides = array<i32>} : memref<8x64xf32, #tpu.memory_space<vmem>>, vector<8x32xf32>,
    %c0_351 = arith.constant 0 : index
    %c32_352 = arith.constant 32 : index
    %712 = vector.load %arg16[%c0_351, %c32_352] : memref<8x64xf32, #tpu.memory_space<vmem>>, vector<8x32xf32>
    tpu.vector_store %arg16[%c0_351, %c32_352], %704 {strides = array<i32>} : memref<8x64xf32, #tpu.memory_space<vmem>>, vector<8x32xf32>,
    %c0_353 = arith.constant 0 : index
    %c0_354 = arith.constant 0 : index
    %713 = vector.load %arg15[%c0_353, %c0_354] : memref<8x64xf32, #tpu.memory_space<vmem>>, vector<8x32xf32>
    tpu.vector_store %arg15[%c0_353, %c0_354], %707 {strides = array<i32>} : memref<8x64xf32, #tpu.memory_space<vmem>>, vector<8x32xf32>,
    %c0_355 = arith.constant 0 : index
    %c32_356 = arith.constant 32 : index
    %714 = vector.load %arg15[%c0_355, %c32_356] : memref<8x64xf32, #tpu.memory_space<vmem>>, vector<8x32xf32>
    tpu.vector_store %arg15[%c0_355, %c32_356], %710 {strides = array<i32>} : memref<8x64xf32, #tpu.memory_space<vmem>>, vector<8x32xf32>,
    %715 = arith.index_cast %c3_i32_334 : i32 to index
    %c0_357 = arith.constant 0 : index
    %c0_358 = arith.constant 0 : index
    %716 = vector.load %arg14[%715, %c0_357, %c0_358] : memref<8x8x64xf32, #tpu.memory_space<vmem>>, vector<1x8x32xf32>
    %717 = vector.shape_cast %716 : vector<1x8x32xf32> to vector<8x32xf32>
    %718 = vector.shape_cast %707 : vector<8x32xf32> to vector<1x8x32xf32>
    tpu.vector_store %arg14[%715, %c0_357, %c0_358], %718 {strides = array<i32>} : memref<8x8x64xf32, #tpu.memory_space<vmem>>, vector<1x8x32xf32>,
    %c7_i32_359 = arith.constant 7 : i32
    %719 = arith.subi %c7_i32_359, %c3_i32_334 : i32
    %720 = arith.index_cast %719 : i32 to index
    %c0_360 = arith.constant 0 : index
    %c32_361 = arith.constant 32 : index
    %721 = vector.load %arg14[%720, %c0_360, %c32_361] : memref<8x8x64xf32, #tpu.memory_space<vmem>>, vector<1x8x32xf32>
    %722 = vector.shape_cast %721 : vector<1x8x32xf32> to vector<8x32xf32>
    %723 = vector.shape_cast %710 : vector<8x32xf32> to vector<1x8x32xf32>
    tpu.vector_store %arg14[%720, %c0_360, %c32_361], %723 {strides = array<i32>} : memref<8x8x64xf32, #tpu.memory_space<vmem>>, vector<1x8x32xf32>,
    %c4_i32_362 = arith.constant 4 : i32
    %c0_363 = arith.constant 0 : index
    %c0_364 = arith.constant 0 : index
    %724 = vector.load %arg15[%c0_363, %c0_364] : memref<8x64xf32, #tpu.memory_space<vmem>>, vector<8x64xf32>
    %cst_365 = arith.constant dense<0.000000e+00> : vector<8x256xf32>
    %725 = tpu.matmul %724, %481, %cst_365 {dimension_numbers = #tpu.dot_dimension_numbers<[1], [0], [0], [1], [0, 0, 1, 1], [], []>} : vector<8x64xf32>, vector<64x256xf32>, vector<8x256xf32> -> vector<8x256xf32>
    %726 = arith.index_cast %c4_i32_362 : i32 to index
    %c0_366 = arith.constant 0 : index
    %c0_367 = arith.constant 0 : index
    %727 = vector.load %arg13[%726, %c0_366, %c0_367] : memref<8x8x256xf32, #tpu.memory_space<vmem>>, vector<1x8x128xf32>
    %728 = vector.shape_cast %727 : vector<1x8x128xf32> to vector<8x128xf32>
    %729 = vector.extract_strided_slice %725 {offsets = [0, 0], sizes = [8, 128], strides = [1, 1]} : vector<8x256xf32> to vector<8x128xf32>
    %730 = arith.addf %728, %729 : vector<8x128xf32>
    %c7_i32_368 = arith.constant 7 : i32
    %731 = arith.subi %c7_i32_368, %c4_i32_362 : i32
    %732 = arith.index_cast %731 : i32 to index
    %c0_369 = arith.constant 0 : index
    %c128_370 = arith.constant 128 : index
    %733 = vector.load %arg13[%732, %c0_369, %c128_370] : memref<8x8x256xf32, #tpu.memory_space<vmem>>, vector<1x8x128xf32>
    %734 = vector.shape_cast %733 : vector<1x8x128xf32> to vector<8x128xf32>
    %735 = vector.extract_strided_slice %725 {offsets = [0, 128], sizes = [8, 128], strides = [1, 1]} : vector<8x256xf32> to vector<8x128xf32>
    %736 = arith.addf %734, %735 : vector<8x128xf32>
    %737 = arith.negf %730 : vector<8x128xf32>
    %738 = math.exp %737 : vector<8x128xf32>
    %cst_371 = arith.constant 1.000000e+00 : f32
    %739 = vector.broadcast %cst_371 : f32 to vector<8x128xf32>
    %740 = arith.addf %739, %738 : vector<8x128xf32>
    %741 = arith.divf %739, %740 : vector<8x128xf32>
    %742 = math.tanh %730 : vector<8x128xf32>
    %743 = arith.negf %736 : vector<8x128xf32>
    %744 = math.exp %743 : vector<8x128xf32>
    %cst_372 = arith.constant 1.000000e+00 : f32
    %745 = vector.broadcast %cst_372 : f32 to vector<8x128xf32>
    %746 = arith.addf %745, %744 : vector<8x128xf32>
    %747 = arith.divf %745, %746 : vector<8x128xf32>
    %748 = math.tanh %736 : vector<8x128xf32>
    %749 = vector.extract_strided_slice %741 {offsets = [0, 32], sizes = [8, 32], strides = [1, 1]} : vector<8x128xf32> to vector<8x32xf32>
    %c0_373 = arith.constant 0 : index
    %c0_374 = arith.constant 0 : index
    %750 = vector.load %arg16[%c0_373, %c0_374] : memref<8x64xf32, #tpu.memory_space<vmem>>, vector<8x32xf32>
    %751 = arith.mulf %749, %750 : vector<8x32xf32>
    %752 = vector.extract_strided_slice %741 {offsets = [0, 0], sizes = [8, 32], strides = [1, 1]} : vector<8x128xf32> to vector<8x32xf32>
    %753 = vector.extract_strided_slice %742 {offsets = [0, 64], sizes = [8, 32], strides = [1, 1]} : vector<8x128xf32> to vector<8x32xf32>
    %754 = arith.mulf %752, %753 : vector<8x32xf32>
    %755 = arith.addf %751, %754 : vector<8x32xf32>
    %756 = vector.extract_strided_slice %747 {offsets = [0, 32], sizes = [8, 32], strides = [1, 1]} : vector<8x128xf32> to vector<8x32xf32>
    %c0_375 = arith.constant 0 : index
    %c32_376 = arith.constant 32 : index
    %757 = vector.load %arg16[%c0_375, %c32_376] : memref<8x64xf32, #tpu.memory_space<vmem>>, vector<8x32xf32>
    %758 = arith.mulf %756, %757 : vector<8x32xf32>
    %759 = vector.extract_strided_slice %747 {offsets = [0, 0], sizes = [8, 32], strides = [1, 1]} : vector<8x128xf32> to vector<8x32xf32>
    %760 = vector.extract_strided_slice %748 {offsets = [0, 64], sizes = [8, 32], strides = [1, 1]} : vector<8x128xf32> to vector<8x32xf32>
    %761 = arith.mulf %759, %760 : vector<8x32xf32>
    %762 = arith.addf %758, %761 : vector<8x32xf32>
    %763 = vector.extract_strided_slice %741 {offsets = [0, 96], sizes = [8, 32], strides = [1, 1]} : vector<8x128xf32> to vector<8x32xf32>
    %764 = math.tanh %755 : vector<8x32xf32>
    %765 = arith.mulf %763, %764 : vector<8x32xf32>
    %766 = vector.extract_strided_slice %747 {offsets = [0, 96], sizes = [8, 32], strides = [1, 1]} : vector<8x128xf32> to vector<8x32xf32>
    %767 = math.tanh %762 : vector<8x32xf32>
    %768 = arith.mulf %766, %767 : vector<8x32xf32>
    %c0_377 = arith.constant 0 : index
    %c0_378 = arith.constant 0 : index
    %769 = vector.load %arg16[%c0_377, %c0_378] : memref<8x64xf32, #tpu.memory_space<vmem>>, vector<8x32xf32>
    tpu.vector_store %arg16[%c0_377, %c0_378], %755 {strides = array<i32>} : memref<8x64xf32, #tpu.memory_space<vmem>>, vector<8x32xf32>,
    %c0_379 = arith.constant 0 : index
    %c32_380 = arith.constant 32 : index
    %770 = vector.load %arg16[%c0_379, %c32_380] : memref<8x64xf32, #tpu.memory_space<vmem>>, vector<8x32xf32>
    tpu.vector_store %arg16[%c0_379, %c32_380], %762 {strides = array<i32>} : memref<8x64xf32, #tpu.memory_space<vmem>>, vector<8x32xf32>,
    %c0_381 = arith.constant 0 : index
    %c0_382 = arith.constant 0 : index
    %771 = vector.load %arg15[%c0_381, %c0_382] : memref<8x64xf32, #tpu.memory_space<vmem>>, vector<8x32xf32>
    tpu.vector_store %arg15[%c0_381, %c0_382], %765 {strides = array<i32>} : memref<8x64xf32, #tpu.memory_space<vmem>>, vector<8x32xf32>,
    %c0_383 = arith.constant 0 : index
    %c32_384 = arith.constant 32 : index
    %772 = vector.load %arg15[%c0_383, %c32_384] : memref<8x64xf32, #tpu.memory_space<vmem>>, vector<8x32xf32>
    tpu.vector_store %arg15[%c0_383, %c32_384], %768 {strides = array<i32>} : memref<8x64xf32, #tpu.memory_space<vmem>>, vector<8x32xf32>,
    %773 = arith.index_cast %c4_i32_362 : i32 to index
    %c0_385 = arith.constant 0 : index
    %c0_386 = arith.constant 0 : index
    %774 = vector.load %arg14[%773, %c0_385, %c0_386] : memref<8x8x64xf32, #tpu.memory_space<vmem>>, vector<1x8x32xf32>
    %775 = vector.shape_cast %774 : vector<1x8x32xf32> to vector<8x32xf32>
    %776 = vector.shape_cast %765 : vector<8x32xf32> to vector<1x8x32xf32>
    tpu.vector_store %arg14[%773, %c0_385, %c0_386], %776 {strides = array<i32>} : memref<8x8x64xf32, #tpu.memory_space<vmem>>, vector<1x8x32xf32>,
    %c7_i32_387 = arith.constant 7 : i32
    %777 = arith.subi %c7_i32_387, %c4_i32_362 : i32
    %778 = arith.index_cast %777 : i32 to index
    %c0_388 = arith.constant 0 : index
    %c32_389 = arith.constant 32 : index
    %779 = vector.load %arg14[%778, %c0_388, %c32_389] : memref<8x8x64xf32, #tpu.memory_space<vmem>>, vector<1x8x32xf32>
    %780 = vector.shape_cast %779 : vector<1x8x32xf32> to vector<8x32xf32>
    %781 = vector.shape_cast %768 : vector<8x32xf32> to vector<1x8x32xf32>
    tpu.vector_store %arg14[%778, %c0_388, %c32_389], %781 {strides = array<i32>} : memref<8x8x64xf32, #tpu.memory_space<vmem>>, vector<1x8x32xf32>,
    %c5_i32_390 = arith.constant 5 : i32
    %c0_391 = arith.constant 0 : index
    %c0_392 = arith.constant 0 : index
    %782 = vector.load %arg15[%c0_391, %c0_392] : memref<8x64xf32, #tpu.memory_space<vmem>>, vector<8x64xf32>
    %cst_393 = arith.constant dense<0.000000e+00> : vector<8x256xf32>
    %783 = tpu.matmul %782, %481, %cst_393 {dimension_numbers = #tpu.dot_dimension_numbers<[1], [0], [0], [1], [0, 0, 1, 1], [], []>} : vector<8x64xf32>, vector<64x256xf32>, vector<8x256xf32> -> vector<8x256xf32>
    %784 = arith.index_cast %c5_i32_390 : i32 to index
    %c0_394 = arith.constant 0 : index
    %c0_395 = arith.constant 0 : index
    %785 = vector.load %arg13[%784, %c0_394, %c0_395] : memref<8x8x256xf32, #tpu.memory_space<vmem>>, vector<1x8x128xf32>
    %786 = vector.shape_cast %785 : vector<1x8x128xf32> to vector<8x128xf32>
    %787 = vector.extract_strided_slice %783 {offsets = [0, 0], sizes = [8, 128], strides = [1, 1]} : vector<8x256xf32> to vector<8x128xf32>
    %788 = arith.addf %786, %787 : vector<8x128xf32>
    %c7_i32_396 = arith.constant 7 : i32
    %789 = arith.subi %c7_i32_396, %c5_i32_390 : i32
    %790 = arith.index_cast %789 : i32 to index
    %c0_397 = arith.constant 0 : index
    %c128_398 = arith.constant 128 : index
    %791 = vector.load %arg13[%790, %c0_397, %c128_398] : memref<8x8x256xf32, #tpu.memory_space<vmem>>, vector<1x8x128xf32>
    %792 = vector.shape_cast %791 : vector<1x8x128xf32> to vector<8x128xf32>
    %793 = vector.extract_strided_slice %783 {offsets = [0, 128], sizes = [8, 128], strides = [1, 1]} : vector<8x256xf32> to vector<8x128xf32>
    %794 = arith.addf %792, %793 : vector<8x128xf32>
    %795 = arith.negf %788 : vector<8x128xf32>
    %796 = math.exp %795 : vector<8x128xf32>
    %cst_399 = arith.constant 1.000000e+00 : f32
    %797 = vector.broadcast %cst_399 : f32 to vector<8x128xf32>
    %798 = arith.addf %797, %796 : vector<8x128xf32>
    %799 = arith.divf %797, %798 : vector<8x128xf32>
    %800 = math.tanh %788 : vector<8x128xf32>
    %801 = arith.negf %794 : vector<8x128xf32>
    %802 = math.exp %801 : vector<8x128xf32>
    %cst_400 = arith.constant 1.000000e+00 : f32
    %803 = vector.broadcast %cst_400 : f32 to vector<8x128xf32>
    %804 = arith.addf %803, %802 : vector<8x128xf32>
    %805 = arith.divf %803, %804 : vector<8x128xf32>
    %806 = math.tanh %794 : vector<8x128xf32>
    %807 = vector.extract_strided_slice %799 {offsets = [0, 32], sizes = [8, 32], strides = [1, 1]} : vector<8x128xf32> to vector<8x32xf32>
    %c0_401 = arith.constant 0 : index
    %c0_402 = arith.constant 0 : index
    %808 = vector.load %arg16[%c0_401, %c0_402] : memref<8x64xf32, #tpu.memory_space<vmem>>, vector<8x32xf32>
    %809 = arith.mulf %807, %808 : vector<8x32xf32>
    %810 = vector.extract_strided_slice %799 {offsets = [0, 0], sizes = [8, 32], strides = [1, 1]} : vector<8x128xf32> to vector<8x32xf32>
    %811 = vector.extract_strided_slice %800 {offsets = [0, 64], sizes = [8, 32], strides = [1, 1]} : vector<8x128xf32> to vector<8x32xf32>
    %812 = arith.mulf %810, %811 : vector<8x32xf32>
    %813 = arith.addf %809, %812 : vector<8x32xf32>
    %814 = vector.extract_strided_slice %805 {offsets = [0, 32], sizes = [8, 32], strides = [1, 1]} : vector<8x128xf32> to vector<8x32xf32>
    %c0_403 = arith.constant 0 : index
    %c32_404 = arith.constant 32 : index
    %815 = vector.load %arg16[%c0_403, %c32_404] : memref<8x64xf32, #tpu.memory_space<vmem>>, vector<8x32xf32>
    %816 = arith.mulf %814, %815 : vector<8x32xf32>
    %817 = vector.extract_strided_slice %805 {offsets = [0, 0], sizes = [8, 32], strides = [1, 1]} : vector<8x128xf32> to vector<8x32xf32>
    %818 = vector.extract_strided_slice %806 {offsets = [0, 64], sizes = [8, 32], strides = [1, 1]} : vector<8x128xf32> to vector<8x32xf32>
    %819 = arith.mulf %817, %818 : vector<8x32xf32>
    %820 = arith.addf %816, %819 : vector<8x32xf32>
    %821 = vector.extract_strided_slice %799 {offsets = [0, 96], sizes = [8, 32], strides = [1, 1]} : vector<8x128xf32> to vector<8x32xf32>
    %822 = math.tanh %813 : vector<8x32xf32>
    %823 = arith.mulf %821, %822 : vector<8x32xf32>
    %824 = vector.extract_strided_slice %805 {offsets = [0, 96], sizes = [8, 32], strides = [1, 1]} : vector<8x128xf32> to vector<8x32xf32>
    %825 = math.tanh %820 : vector<8x32xf32>
    %826 = arith.mulf %824, %825 : vector<8x32xf32>
    %c0_405 = arith.constant 0 : index
    %c0_406 = arith.constant 0 : index
    %827 = vector.load %arg16[%c0_405, %c0_406] : memref<8x64xf32, #tpu.memory_space<vmem>>, vector<8x32xf32>
    tpu.vector_store %arg16[%c0_405, %c0_406], %813 {strides = array<i32>} : memref<8x64xf32, #tpu.memory_space<vmem>>, vector<8x32xf32>,
    %c0_407 = arith.constant 0 : index
    %c32_408 = arith.constant 32 : index
    %828 = vector.load %arg16[%c0_407, %c32_408] : memref<8x64xf32, #tpu.memory_space<vmem>>, vector<8x32xf32>
    tpu.vector_store %arg16[%c0_407, %c32_408], %820 {strides = array<i32>} : memref<8x64xf32, #tpu.memory_space<vmem>>, vector<8x32xf32>,
    %c0_409 = arith.constant 0 : index
    %c0_410 = arith.constant 0 : index
    %829 = vector.load %arg15[%c0_409, %c0_410] : memref<8x64xf32, #tpu.memory_space<vmem>>, vector<8x32xf32>
    tpu.vector_store %arg15[%c0_409, %c0_410], %823 {strides = array<i32>} : memref<8x64xf32, #tpu.memory_space<vmem>>, vector<8x32xf32>,
    %c0_411 = arith.constant 0 : index
    %c32_412 = arith.constant 32 : index
    %830 = vector.load %arg15[%c0_411, %c32_412] : memref<8x64xf32, #tpu.memory_space<vmem>>, vector<8x32xf32>
    tpu.vector_store %arg15[%c0_411, %c32_412], %826 {strides = array<i32>} : memref<8x64xf32, #tpu.memory_space<vmem>>, vector<8x32xf32>,
    %831 = arith.index_cast %c5_i32_390 : i32 to index
    %c0_413 = arith.constant 0 : index
    %c0_414 = arith.constant 0 : index
    %832 = vector.load %arg14[%831, %c0_413, %c0_414] : memref<8x8x64xf32, #tpu.memory_space<vmem>>, vector<1x8x32xf32>
    %833 = vector.shape_cast %832 : vector<1x8x32xf32> to vector<8x32xf32>
    %834 = vector.shape_cast %823 : vector<8x32xf32> to vector<1x8x32xf32>
    tpu.vector_store %arg14[%831, %c0_413, %c0_414], %834 {strides = array<i32>} : memref<8x8x64xf32, #tpu.memory_space<vmem>>, vector<1x8x32xf32>,
    %c7_i32_415 = arith.constant 7 : i32
    %835 = arith.subi %c7_i32_415, %c5_i32_390 : i32
    %836 = arith.index_cast %835 : i32 to index
    %c0_416 = arith.constant 0 : index
    %c32_417 = arith.constant 32 : index
    %837 = vector.load %arg14[%836, %c0_416, %c32_417] : memref<8x8x64xf32, #tpu.memory_space<vmem>>, vector<1x8x32xf32>
    %838 = vector.shape_cast %837 : vector<1x8x32xf32> to vector<8x32xf32>
    %839 = vector.shape_cast %826 : vector<8x32xf32> to vector<1x8x32xf32>
    tpu.vector_store %arg14[%836, %c0_416, %c32_417], %839 {strides = array<i32>} : memref<8x8x64xf32, #tpu.memory_space<vmem>>, vector<1x8x32xf32>,
    %c6_i32_418 = arith.constant 6 : i32
    %c0_419 = arith.constant 0 : index
    %c0_420 = arith.constant 0 : index
    %840 = vector.load %arg15[%c0_419, %c0_420] : memref<8x64xf32, #tpu.memory_space<vmem>>, vector<8x64xf32>
    %cst_421 = arith.constant dense<0.000000e+00> : vector<8x256xf32>
    %841 = tpu.matmul %840, %481, %cst_421 {dimension_numbers = #tpu.dot_dimension_numbers<[1], [0], [0], [1], [0, 0, 1, 1], [], []>} : vector<8x64xf32>, vector<64x256xf32>, vector<8x256xf32> -> vector<8x256xf32>
    %842 = arith.index_cast %c6_i32_418 : i32 to index
    %c0_422 = arith.constant 0 : index
    %c0_423 = arith.constant 0 : index
    %843 = vector.load %arg13[%842, %c0_422, %c0_423] : memref<8x8x256xf32, #tpu.memory_space<vmem>>, vector<1x8x128xf32>
    %844 = vector.shape_cast %843 : vector<1x8x128xf32> to vector<8x128xf32>
    %845 = vector.extract_strided_slice %841 {offsets = [0, 0], sizes = [8, 128], strides = [1, 1]} : vector<8x256xf32> to vector<8x128xf32>
    %846 = arith.addf %844, %845 : vector<8x128xf32>
    %c7_i32_424 = arith.constant 7 : i32
    %847 = arith.subi %c7_i32_424, %c6_i32_418 : i32
    %848 = arith.index_cast %847 : i32 to index
    %c0_425 = arith.constant 0 : index
    %c128_426 = arith.constant 128 : index
    %849 = vector.load %arg13[%848, %c0_425, %c128_426] : memref<8x8x256xf32, #tpu.memory_space<vmem>>, vector<1x8x128xf32>
    %850 = vector.shape_cast %849 : vector<1x8x128xf32> to vector<8x128xf32>
    %851 = vector.extract_strided_slice %841 {offsets = [0, 128], sizes = [8, 128], strides = [1, 1]} : vector<8x256xf32> to vector<8x128xf32>
    %852 = arith.addf %850, %851 : vector<8x128xf32>
    %853 = arith.negf %846 : vector<8x128xf32>
    %854 = math.exp %853 : vector<8x128xf32>
    %cst_427 = arith.constant 1.000000e+00 : f32
    %855 = vector.broadcast %cst_427 : f32 to vector<8x128xf32>
    %856 = arith.addf %855, %854 : vector<8x128xf32>
    %857 = arith.divf %855, %856 : vector<8x128xf32>
    %858 = math.tanh %846 : vector<8x128xf32>
    %859 = arith.negf %852 : vector<8x128xf32>
    %860 = math.exp %859 : vector<8x128xf32>
    %cst_428 = arith.constant 1.000000e+00 : f32
    %861 = vector.broadcast %cst_428 : f32 to vector<8x128xf32>
    %862 = arith.addf %861, %860 : vector<8x128xf32>
    %863 = arith.divf %861, %862 : vector<8x128xf32>
    %864 = math.tanh %852 : vector<8x128xf32>
    %865 = vector.extract_strided_slice %857 {offsets = [0, 32], sizes = [8, 32], strides = [1, 1]} : vector<8x128xf32> to vector<8x32xf32>
    %c0_429 = arith.constant 0 : index
    %c0_430 = arith.constant 0 : index
    %866 = vector.load %arg16[%c0_429, %c0_430] : memref<8x64xf32, #tpu.memory_space<vmem>>, vector<8x32xf32>
    %867 = arith.mulf %865, %866 : vector<8x32xf32>
    %868 = vector.extract_strided_slice %857 {offsets = [0, 0], sizes = [8, 32], strides = [1, 1]} : vector<8x128xf32> to vector<8x32xf32>
    %869 = vector.extract_strided_slice %858 {offsets = [0, 64], sizes = [8, 32], strides = [1, 1]} : vector<8x128xf32> to vector<8x32xf32>
    %870 = arith.mulf %868, %869 : vector<8x32xf32>
    %871 = arith.addf %867, %870 : vector<8x32xf32>
    %872 = vector.extract_strided_slice %863 {offsets = [0, 32], sizes = [8, 32], strides = [1, 1]} : vector<8x128xf32> to vector<8x32xf32>
    %c0_431 = arith.constant 0 : index
    %c32_432 = arith.constant 32 : index
    %873 = vector.load %arg16[%c0_431, %c32_432] : memref<8x64xf32, #tpu.memory_space<vmem>>, vector<8x32xf32>
    %874 = arith.mulf %872, %873 : vector<8x32xf32>
    %875 = vector.extract_strided_slice %863 {offsets = [0, 0], sizes = [8, 32], strides = [1, 1]} : vector<8x128xf32> to vector<8x32xf32>
    %876 = vector.extract_strided_slice %864 {offsets = [0, 64], sizes = [8, 32], strides = [1, 1]} : vector<8x128xf32> to vector<8x32xf32>
    %877 = arith.mulf %875, %876 : vector<8x32xf32>
    %878 = arith.addf %874, %877 : vector<8x32xf32>
    %879 = vector.extract_strided_slice %857 {offsets = [0, 96], sizes = [8, 32], strides = [1, 1]} : vector<8x128xf32> to vector<8x32xf32>
    %880 = math.tanh %871 : vector<8x32xf32>
    %881 = arith.mulf %879, %880 : vector<8x32xf32>
    %882 = vector.extract_strided_slice %863 {offsets = [0, 96], sizes = [8, 32], strides = [1, 1]} : vector<8x128xf32> to vector<8x32xf32>
    %883 = math.tanh %878 : vector<8x32xf32>
    %884 = arith.mulf %882, %883 : vector<8x32xf32>
    %c0_433 = arith.constant 0 : index
    %c0_434 = arith.constant 0 : index
    %885 = vector.load %arg16[%c0_433, %c0_434] : memref<8x64xf32, #tpu.memory_space<vmem>>, vector<8x32xf32>
    tpu.vector_store %arg16[%c0_433, %c0_434], %871 {strides = array<i32>} : memref<8x64xf32, #tpu.memory_space<vmem>>, vector<8x32xf32>,
    %c0_435 = arith.constant 0 : index
    %c32_436 = arith.constant 32 : index
    %886 = vector.load %arg16[%c0_435, %c32_436] : memref<8x64xf32, #tpu.memory_space<vmem>>, vector<8x32xf32>
    tpu.vector_store %arg16[%c0_435, %c32_436], %878 {strides = array<i32>} : memref<8x64xf32, #tpu.memory_space<vmem>>, vector<8x32xf32>,
    %c0_437 = arith.constant 0 : index
    %c0_438 = arith.constant 0 : index
    %887 = vector.load %arg15[%c0_437, %c0_438] : memref<8x64xf32, #tpu.memory_space<vmem>>, vector<8x32xf32>
    tpu.vector_store %arg15[%c0_437, %c0_438], %881 {strides = array<i32>} : memref<8x64xf32, #tpu.memory_space<vmem>>, vector<8x32xf32>,
    %c0_439 = arith.constant 0 : index
    %c32_440 = arith.constant 32 : index
    %888 = vector.load %arg15[%c0_439, %c32_440] : memref<8x64xf32, #tpu.memory_space<vmem>>, vector<8x32xf32>
    tpu.vector_store %arg15[%c0_439, %c32_440], %884 {strides = array<i32>} : memref<8x64xf32, #tpu.memory_space<vmem>>, vector<8x32xf32>,
    %889 = arith.index_cast %c6_i32_418 : i32 to index
    %c0_441 = arith.constant 0 : index
    %c0_442 = arith.constant 0 : index
    %890 = vector.load %arg14[%889, %c0_441, %c0_442] : memref<8x8x64xf32, #tpu.memory_space<vmem>>, vector<1x8x32xf32>
    %891 = vector.shape_cast %890 : vector<1x8x32xf32> to vector<8x32xf32>
    %892 = vector.shape_cast %881 : vector<8x32xf32> to vector<1x8x32xf32>
    tpu.vector_store %arg14[%889, %c0_441, %c0_442], %892 {strides = array<i32>} : memref<8x8x64xf32, #tpu.memory_space<vmem>>, vector<1x8x32xf32>,
    %c7_i32_443 = arith.constant 7 : i32
    %893 = arith.subi %c7_i32_443, %c6_i32_418 : i32
    %894 = arith.index_cast %893 : i32 to index
    %c0_444 = arith.constant 0 : index
    %c32_445 = arith.constant 32 : index
    %895 = vector.load %arg14[%894, %c0_444, %c32_445] : memref<8x8x64xf32, #tpu.memory_space<vmem>>, vector<1x8x32xf32>
    %896 = vector.shape_cast %895 : vector<1x8x32xf32> to vector<8x32xf32>
    %897 = vector.shape_cast %884 : vector<8x32xf32> to vector<1x8x32xf32>
    tpu.vector_store %arg14[%894, %c0_444, %c32_445], %897 {strides = array<i32>} : memref<8x8x64xf32, #tpu.memory_space<vmem>>, vector<1x8x32xf32>,
    %c7_i32_446 = arith.constant 7 : i32
    %c0_447 = arith.constant 0 : index
    %c0_448 = arith.constant 0 : index
    %898 = vector.load %arg15[%c0_447, %c0_448] : memref<8x64xf32, #tpu.memory_space<vmem>>, vector<8x64xf32>
    %cst_449 = arith.constant dense<0.000000e+00> : vector<8x256xf32>
    %899 = tpu.matmul %898, %481, %cst_449 {dimension_numbers = #tpu.dot_dimension_numbers<[1], [0], [0], [1], [0, 0, 1, 1], [], []>} : vector<8x64xf32>, vector<64x256xf32>, vector<8x256xf32> -> vector<8x256xf32>
    %900 = arith.index_cast %c7_i32_446 : i32 to index
    %c0_450 = arith.constant 0 : index
    %c0_451 = arith.constant 0 : index
    %901 = vector.load %arg13[%900, %c0_450, %c0_451] : memref<8x8x256xf32, #tpu.memory_space<vmem>>, vector<1x8x128xf32>
    %902 = vector.shape_cast %901 : vector<1x8x128xf32> to vector<8x128xf32>
    %903 = vector.extract_strided_slice %899 {offsets = [0, 0], sizes = [8, 128], strides = [1, 1]} : vector<8x256xf32> to vector<8x128xf32>
    %904 = arith.addf %902, %903 : vector<8x128xf32>
    %c7_i32_452 = arith.constant 7 : i32
    %905 = arith.subi %c7_i32_452, %c7_i32_446 : i32
    %906 = arith.index_cast %905 : i32 to index
    %c0_453 = arith.constant 0 : index
    %c128_454 = arith.constant 128 : index
    %907 = vector.load %arg13[%906, %c0_453, %c128_454] : memref<8x8x256xf32, #tpu.memory_space<vmem>>, vector<1x8x128xf32>
    %908 = vector.shape_cast %907 : vector<1x8x128xf32> to vector<8x128xf32>
    %909 = vector.extract_strided_slice %899 {offsets = [0, 128], sizes = [8, 128], strides = [1, 1]} : vector<8x256xf32> to vector<8x128xf32>
    %910 = arith.addf %908, %909 : vector<8x128xf32>
    %911 = arith.negf %904 : vector<8x128xf32>
    %912 = math.exp %911 : vector<8x128xf32>
    %cst_455 = arith.constant 1.000000e+00 : f32
    %913 = vector.broadcast %cst_455 : f32 to vector<8x128xf32>
    %914 = arith.addf %913, %912 : vector<8x128xf32>
    %915 = arith.divf %913, %914 : vector<8x128xf32>
    %916 = math.tanh %904 : vector<8x128xf32>
    %917 = arith.negf %910 : vector<8x128xf32>
    %918 = math.exp %917 : vector<8x128xf32>
    %cst_456 = arith.constant 1.000000e+00 : f32
    %919 = vector.broadcast %cst_456 : f32 to vector<8x128xf32>
    %920 = arith.addf %919, %918 : vector<8x128xf32>
    %921 = arith.divf %919, %920 : vector<8x128xf32>
    %922 = math.tanh %910 : vector<8x128xf32>
    %923 = vector.extract_strided_slice %915 {offsets = [0, 32], sizes = [8, 32], strides = [1, 1]} : vector<8x128xf32> to vector<8x32xf32>
    %c0_457 = arith.constant 0 : index
    %c0_458 = arith.constant 0 : index
    %924 = vector.load %arg16[%c0_457, %c0_458] : memref<8x64xf32, #tpu.memory_space<vmem>>, vector<8x32xf32>
    %925 = arith.mulf %923, %924 : vector<8x32xf32>
    %926 = vector.extract_strided_slice %915 {offsets = [0, 0], sizes = [8, 32], strides = [1, 1]} : vector<8x128xf32> to vector<8x32xf32>
    %927 = vector.extract_strided_slice %916 {offsets = [0, 64], sizes = [8, 32], strides = [1, 1]} : vector<8x128xf32> to vector<8x32xf32>
    %928 = arith.mulf %926, %927 : vector<8x32xf32>
    %929 = arith.addf %925, %928 : vector<8x32xf32>
    %930 = vector.extract_strided_slice %921 {offsets = [0, 32], sizes = [8, 32], strides = [1, 1]} : vector<8x128xf32> to vector<8x32xf32>
    %c0_459 = arith.constant 0 : index
    %c32_460 = arith.constant 32 : index
    %931 = vector.load %arg16[%c0_459, %c32_460] : memref<8x64xf32, #tpu.memory_space<vmem>>, vector<8x32xf32>
    %932 = arith.mulf %930, %931 : vector<8x32xf32>
    %933 = vector.extract_strided_slice %921 {offsets = [0, 0], sizes = [8, 32], strides = [1, 1]} : vector<8x128xf32> to vector<8x32xf32>
    %934 = vector.extract_strided_slice %922 {offsets = [0, 64], sizes = [8, 32], strides = [1, 1]} : vector<8x128xf32> to vector<8x32xf32>
    %935 = arith.mulf %933, %934 : vector<8x32xf32>
    %936 = arith.addf %932, %935 : vector<8x32xf32>
    %937 = vector.extract_strided_slice %915 {offsets = [0, 96], sizes = [8, 32], strides = [1, 1]} : vector<8x128xf32> to vector<8x32xf32>
    %938 = math.tanh %929 : vector<8x32xf32>
    %939 = arith.mulf %937, %938 : vector<8x32xf32>
    %940 = vector.extract_strided_slice %921 {offsets = [0, 96], sizes = [8, 32], strides = [1, 1]} : vector<8x128xf32> to vector<8x32xf32>
    %941 = math.tanh %936 : vector<8x32xf32>
    %942 = arith.mulf %940, %941 : vector<8x32xf32>
    %c0_461 = arith.constant 0 : index
    %c0_462 = arith.constant 0 : index
    %943 = vector.load %arg16[%c0_461, %c0_462] : memref<8x64xf32, #tpu.memory_space<vmem>>, vector<8x32xf32>
    tpu.vector_store %arg16[%c0_461, %c0_462], %929 {strides = array<i32>} : memref<8x64xf32, #tpu.memory_space<vmem>>, vector<8x32xf32>,
    %c0_463 = arith.constant 0 : index
    %c32_464 = arith.constant 32 : index
    %944 = vector.load %arg16[%c0_463, %c32_464] : memref<8x64xf32, #tpu.memory_space<vmem>>, vector<8x32xf32>
    tpu.vector_store %arg16[%c0_463, %c32_464], %936 {strides = array<i32>} : memref<8x64xf32, #tpu.memory_space<vmem>>, vector<8x32xf32>,
    %c0_465 = arith.constant 0 : index
    %c0_466 = arith.constant 0 : index
    %945 = vector.load %arg15[%c0_465, %c0_466] : memref<8x64xf32, #tpu.memory_space<vmem>>, vector<8x32xf32>
    tpu.vector_store %arg15[%c0_465, %c0_466], %939 {strides = array<i32>} : memref<8x64xf32, #tpu.memory_space<vmem>>, vector<8x32xf32>,
    %c0_467 = arith.constant 0 : index
    %c32_468 = arith.constant 32 : index
    %946 = vector.load %arg15[%c0_467, %c32_468] : memref<8x64xf32, #tpu.memory_space<vmem>>, vector<8x32xf32>
    tpu.vector_store %arg15[%c0_467, %c32_468], %942 {strides = array<i32>} : memref<8x64xf32, #tpu.memory_space<vmem>>, vector<8x32xf32>,
    %947 = arith.index_cast %c7_i32_446 : i32 to index
    %c0_469 = arith.constant 0 : index
    %c0_470 = arith.constant 0 : index
    %948 = vector.load %arg14[%947, %c0_469, %c0_470] : memref<8x8x64xf32, #tpu.memory_space<vmem>>, vector<1x8x32xf32>
    %949 = vector.shape_cast %948 : vector<1x8x32xf32> to vector<8x32xf32>
    %950 = vector.shape_cast %939 : vector<8x32xf32> to vector<1x8x32xf32>
    tpu.vector_store %arg14[%947, %c0_469, %c0_470], %950 {strides = array<i32>} : memref<8x8x64xf32, #tpu.memory_space<vmem>>, vector<1x8x32xf32>,
    %c7_i32_471 = arith.constant 7 : i32
    %951 = arith.subi %c7_i32_471, %c7_i32_446 : i32
    %952 = arith.index_cast %951 : i32 to index
    %c0_472 = arith.constant 0 : index
    %c32_473 = arith.constant 32 : index
    %953 = vector.load %arg14[%952, %c0_472, %c32_473] : memref<8x8x64xf32, #tpu.memory_space<vmem>>, vector<1x8x32xf32>
    %954 = vector.shape_cast %953 : vector<1x8x32xf32> to vector<8x32xf32>
    %955 = vector.shape_cast %942 : vector<8x32xf32> to vector<1x8x32xf32>
    tpu.vector_store %arg14[%952, %c0_472, %c32_473], %955 {strides = array<i32>} : memref<8x8x64xf32, #tpu.memory_space<vmem>>, vector<1x8x32xf32>,
    %c8_i32_474 = arith.constant 8 : i32
    %c0_475 = arith.constant 0 : index
    %c0_476 = arith.constant 0 : index
    %c0_477 = arith.constant 0 : index
    %956 = vector.load %arg14[%c0_475, %c0_476, %c0_477] : memref<8x8x64xf32, #tpu.memory_space<vmem>>, vector<8x8x64xf32>
    %957 = vector.shape_cast %956 : vector<8x8x64xf32> to vector<64x64xf32>
    %c0_478 = arith.constant 0 : index
    %c0_479 = arith.constant 0 : index
    %958 = vector.load %arg8[%c0_478, %c0_479] : memref<64x32xf32, #tpu.memory_space<vmem>>, vector<64x32xf32>
    %cst_480 = arith.constant dense<0.000000e+00> : vector<64x32xf32>
    %959 = tpu.matmul %957, %958, %cst_480 {dimension_numbers = #tpu.dot_dimension_numbers<[1], [0], [0], [1], [0, 0, 1, 1], [], []>} : vector<64x64xf32>, vector<64x32xf32>, vector<64x32xf32> -> vector<64x32xf32>
    %c0_481 = arith.constant 0 : index
    %c0_482 = arith.constant 0 : index
    %960 = vector.load %arg9[%c0_481, %c0_482] : memref<1x32xf32, #tpu.memory_space<vmem>>, vector<1x32xf32>
    %961 = vector.broadcast %960 : vector<1x32xf32> to vector<64x32xf32>
    %962 = arith.addf %959, %961 : vector<64x32xf32>
    %cst_483 = arith.constant 0.000000e+00 : f32
    %963 = vector.broadcast %cst_483 : f32 to vector<64x32xf32>
    %964 = arith.maximumf %962, %963 : vector<64x32xf32>
    %965 = vector.shape_cast %964 : vector<64x32xf32> to vector<8x8x32xf32>
    %c0_484 = arith.constant 0 : index
    %c0_485 = arith.constant 0 : index
    %966 = vector.load %arg10[%c0_484, %c0_485] : memref<1x32xf32, #tpu.memory_space<vmem>>, vector<1x32xf32>
    %967 = vector.shape_cast %966 : vector<1x32xf32> to vector<1x1x32xf32>
    %968 = vector.broadcast %967 : vector<1x1x32xf32> to vector<8x8x32xf32>
    %969 = arith.mulf %965, %968 : vector<8x8x32xf32>
    %cst_486 = arith.constant dense<0.000000e+00> : vector<8x8xf32>
    %970 = vector.multi_reduction <add>, %969, %cst_486 [2] : vector<8x8x32xf32> to vector<8x8xf32>
    %c0_487 = arith.constant 0 : index
    %c0_488 = arith.constant 0 : index
    %971 = vector.load %arg11[%c0_487, %c0_488] : memref<1x1xf32, #tpu.memory_space<vmem>>, vector<1x1xf32>
    %972 = vector.broadcast %971 : vector<1x1xf32> to vector<8x8xf32>
    %973 = arith.addf %970, %972 : vector<8x8xf32>
    %c0_489 = arith.constant 0 : index
    %c0_490 = arith.constant 0 : index
    %974 = vector.load %arg12[%c0_489, %c0_490] : memref<8x8xf32, #tpu.memory_space<vmem>>, vector<8x8xf32>
    tpu.vector_store %arg12[%c0_489, %c0_490], %973 {strides = array<i32>} : memref<8x8xf32, #tpu.memory_space<vmem>>, vector<8x8xf32>,
    return
  }
  func.func @transform_0(%arg0: i32) -> (i32, i32, i32) {
    %c0_i32 = arith.constant 0 : i32
    %c0_i32_0 = arith.constant 0 : i32
    %c0_i32_1 = arith.constant 0 : i32
    %c0_i32_2 = arith.constant 0 : i32
    return %c0_i32, %c0_i32_0, %c0_i32_1 : i32, i32, i32
  }
  func.func @transform_1(%arg0: i32) -> (i32, i32) {
    %c0_i32 = arith.constant 0 : i32
    %c0_i32_0 = arith.constant 0 : i32
    %c0_i32_1 = arith.constant 0 : i32
    return %c0_i32, %c0_i32_0 : i32, i32
  }
  func.func @transform_2(%arg0: i32) -> (i32, i32) {
    %c0_i32 = arith.constant 0 : i32
    %c0_i32_0 = arith.constant 0 : i32
    %c0_i32_1 = arith.constant 0 : i32
    return %c0_i32, %c0_i32_0 : i32, i32
  }
  func.func @transform_3(%arg0: i32) -> (i32, i32) {
    %c0_i32 = arith.constant 0 : i32
    %c0_i32_0 = arith.constant 0 : i32
    %c0_i32_1 = arith.constant 0 : i32
    return %c0_i32, %c0_i32_0 : i32, i32
  }
  func.func @transform_4(%arg0: i32) -> (i32, i32) {
    %c0_i32 = arith.constant 0 : i32
    %c0_i32_0 = arith.constant 0 : i32
    %c0_i32_1 = arith.constant 0 : i32
    return %c0_i32, %c0_i32_0 : i32, i32
  }
  func.func @transform_5(%arg0: i32) -> (i32, i32) {
    %c0_i32 = arith.constant 0 : i32
    %c0_i32_0 = arith.constant 0 : i32
    %c0_i32_1 = arith.constant 0 : i32
    return %c0_i32, %c0_i32_0 : i32, i32
  }
  func.func @transform_6(%arg0: i32) -> (i32, i32) {
    %c0_i32 = arith.constant 0 : i32
    %c0_i32_0 = arith.constant 0 : i32
    %c0_i32_1 = arith.constant 0 : i32
    return %c0_i32, %c0_i32_0 : i32, i32
  }
  func.func @transform_7(%arg0: i32) -> (i32, i32) {
    %c0_i32 = arith.constant 0 : i32
    %c0_i32_0 = arith.constant 0 : i32
    %c0_i32_1 = arith.constant 0 : i32
    return %c0_i32, %c0_i32_0 : i32, i32
  }
  func.func @transform_8(%arg0: i32) -> (i32, i32) {
    %c0_i32 = arith.constant 0 : i32
    %c0_i32_0 = arith.constant 0 : i32
    %c0_i32_1 = arith.constant 0 : i32
    return %c0_i32, %c0_i32_0 : i32, i32
  }
  func.func @transform_9(%arg0: i32) -> (i32, i32) {
    %c0_i32 = arith.constant 0 : i32
    %c0_i32_0 = arith.constant 0 : i32
    %c0_i32_1 = arith.constant 0 : i32
    return %c0_i32, %c0_i32_0 : i32, i32
  }
  func.func @transform_10(%arg0: i32) -> (i32, i32) {
    %c0_i32 = arith.constant 0 : i32
    %c0_i32_0 = arith.constant 0 : i32
    %c0_i32_1 = arith.constant 0 : i32
    return %c0_i32, %c0_i32_0 : i32, i32
  }
  func.func @transform_11(%arg0: i32) -> (i32, i32) {
    %c0_i32 = arith.constant 0 : i32
    %c0_i32_0 = arith.constant 0 : i32
    %c0_i32_1 = arith.constant 0 : i32
    return %c0_i32, %c0_i32_0 : i32, i32
  }
}

</mosaic_0001>

<bundles_post_ra>
// kernel: rl_summ_forward.1
= control target key start
LH: loop header
LB: loop body
LE: loop exit
PB: predicated region body
PF: predicated region fallthrough
CT: control target
= control target key end

     0   :  { %s4447_s0 = inlined_call_operand.vmem [shape: f32[8,8,64], index: 0, kind: input, shape index: {}]   ;;  %s4448_s1 = inlined_call_operand.vmem [shape: f32[64,256], index: 1, kind: input, shape index: {}]   ;;  %s4449_s2 = inlined_call_operand.vmem [shape: f32[1,256], index: 2, kind: input, shape index: {}]   ;;  %s4450_s3 = inlined_call_operand.hbm [shape: f32[64,256], index: 3, kind: input, shape index: {}]   ;;  %s4451_s4 = inlined_call_operand.hbm [shape: f32[64,256], index: 4, kind: input, shape index: {}]   ;;  %s4452_s5 = inlined_call_operand.vmem [shape: f32[1,256], index: 5, kind: input, shape index: {}]   ;;  %s4453_s6 = inlined_call_operand.hbm [shape: f32[64,256], index: 6, kind: input, shape index: {}]   ;;  %s4454_s7 = inlined_call_operand.vmem [shape: f32[64,32], index: 7, kind: input, shape index: {}]   ;;  %s4455_s8 = inlined_call_operand.vmem [shape: f32[1,32], index: 8, kind: input, shape index: {}]   ;;  %s4456_s9 = inlined_call_operand.vmem [shape: f32[1,32], index: 9, kind: input, shape index: {}]   ;;  %s4457_s10 = inlined_call_operand.<no memory space> [shape: f32[1,1], index: 10, kind: input, shape index: {}]   ;;  %s4458_s11 = inlined_call_operand.vmem [shape: f32[8,8], index: 11, kind: output, shape index: {}]  }
   0x1   :  { %v16_v0 = vstv %s4457_s10 }
   0x2   :  { %17 = vst [vmem:[#allocation6] sm:$0x1] %v16_v0 }
   0x3   :  { %18 = vsyncpa [#allocation8], 0 }
   0x4   :  { %19 = vsyncpa [#allocation10], 0  ;;  %s43_s21 = sshll.u32 %s4451_s4, 4  ;;  %s3416_s22 = smov [#allocation9]   ;;  %s44_s21 = int_to_ptr.hbm [resolvable:$true] %s43_s21 }
   0x5   :  { %s45_s23 = sshll.u32 %s3416_s22, 4  ;;  %s30_s26 = sshll.u32 %s4450_s3, 4  ;;  %s46_s23 = int_to_ptr.vmem [resolvable:$true] %s45_s23  ;;  %s31_s26 = int_to_ptr.hbm [resolvable:$true] %s30_s26 }
   0x6   :  { %s3417_s27 = smov 256   ;;  %s3418_s28 = smov 16  }
   0x7   :  { %51 = dma.hbm_to_vmem [thread:$0]  %s44_s21, 2048, %s46_s23, [#allocation10], %s3417_s27, %s3417_s27, %s3418_s28  }
   0x8   :  { %s3419_s10 = smov [#allocation7]   ;;  %s58_s13 = sshll.u32 %s4453_s6, 4  ;;  %s59_s13 = int_to_ptr.hbm [resolvable:$true] %s58_s13 }
   0x9   :  { %s32_s29 = sshll.u32 %s3419_s10, 4  ;;  %s3420_s4 = smov [#allocation11]   ;;  %s33_s29 = int_to_ptr.vmem [resolvable:$true] %s32_s29 }
   0xa   :  { %38 = dma.hbm_to_vmem [thread:$0]  %s31_s26, 2048, %s33_s29, [#allocation8], %s3417_s27, %s3417_s27, %s3418_s28  }
   0xb   :  { %s60_s14 = sshll.u32 %s3420_s4, 4  ;;  %s61_s14 = int_to_ptr.vmem [resolvable:$true] %s60_s14 }
   0xc   :  { %66 = dma.hbm_to_vmem [thread:$0]  %s59_s13, 2048, %s61_s14, [#allocation10], %s3417_s27, %s3417_s27, %s3418_s28  }
   0xd   :  { %3412 = dma.done.wait [#allocation8], 2048  }
   0xe   :  { %3413 = vsyncadd [#allocation8], 4294965248 }
   0xf   :  { %3414 = dma.done.wait [#allocation10], 4096  }
  0x10   :  { %3415 = vsyncadd [#allocation10], 4294963200  ;;  %vm133_vm0 = vcmask 523264   ;;  %v109_v1 = vld [vmem:[%s4448_s1 + $0x70] sm:$0xff]  ;;  %v107_v2 = vld [vmem:[%s4448_s1 + $0x60] sm:$0xff]  ;;  %v3421_v3 = vmov 0.0  }
  0x11   :  { %256 = vst.msk [vmem:[#allocation4] sm:$0xff] %vm133_vm0, %v3421_v3  ;;  %166 = vmatpush.msra.mxu1 %v109_v1  ;;  %3053 = vmatpush.msra.mxu2 %v109_v1  ;;  %v105_v4 = vld [vmem:[%s4448_s1 + $0x50] sm:$0xff]  ;;  %v103_v5 = vld [vmem:[%s4448_s1 + $0x40] sm:$0xff]  ;;  %v3544_v15 = vld [vmem:[%s4447_s0 + $0x18] sm:$0xff]  ;;  %s3422_s15 = smov 32   ;;  %s3424_s17 = smov 96  }
  0x12   :  { %257 = vst.msk [vmem:[#allocation5] sm:$0xff] %vm133_vm0, %v3421_v3  ;;  %3054 = vmatpush.msra.mxu3 %v109_v1  ;;  %v3514_v6 = vld [vmem:[#allocation7 + $0x70] sm:$0xff]  ;;  %v101_v7 = vld [vmem:[%s4448_s1 + $0x30] sm:$0xff]  ;;  %v110_v17 = vld [vmem:[%s4448_s1 + $0x78] sm:$0xff]  ;;  %vm390_vm9 = vcmask 261120   ;;  %vm392_vm10 = vcmask 523520  }
  0x13   :  { %167 = vmatpush.msra.mxu1 %v107_v2  ;;  %3055 = vmatpush.msra.mxu2 %v107_v2  ;;  %v3520_v8 = vld [vmem:[#allocation7 + $0x60] sm:$0xff]  ;;  %v99_v9 = vld [vmem:[%s4448_s1 + $0x20] sm:$0xff]  ;;  %v108_v18 = vld [vmem:[%s4448_s1 + $0x68] sm:$0xff] }
  0x14   :  { %3056 = vmatpush.msra.mxu3 %v107_v2  ;;  %866 = vmatpush.msra.mxu0 %v3514_v6  ;;  %v3526_v10 = vld [vmem:[#allocation7 + $0x50] sm:$0xff]  ;;  %v97_v11 = vld [vmem:[%s4448_s1 + $0x10] sm:$0xff]  ;;  %v106_v20 = vld [vmem:[%s4448_s1 + $0x58] sm:$0xff] }
  0x15   :  { %168 = vmatpush.msra.mxu1 %v105_v4  ;;  %3057 = vmatpush.msra.mxu2 %v105_v4  ;;  %v3532_v12 = vld [vmem:[#allocation7 + $0x40] sm:$0xff]  ;;  %v95_v13 = vld [vmem:[%s4448_s1] sm:$0xff]  ;;  %v104_v22 = vld [vmem:[%s4448_s1 + $0x48] sm:$0xff] }
  0x16   :  { %3058 = vmatpush.msra.mxu3 %v105_v4  ;;  %867 = vmatpush.msra.mxu0 %v3520_v8  ;;  %v87_v14 = vld [vmem:[%s4447_s0] sm:$0xff]  ;;  %v3559_v19 = vld [vmem:[#allocation7 + $0x20] sm:$0xff]  ;;  %v88_v23 = vld [vmem:[%s4447_s0 + $0x8] sm:$0xff] }
  0x17   :  { %169 = vmatpush.msra.mxu1 %v103_v5  ;;  %3059 = vmatpush.msra.mxu2 %v103_v5  ;;  %v3546_v16 = vld [vmem:[#allocation7 + $0x30] sm:$0xff]  ;;  %v3581_v25 = vld [vmem:[#allocation7] sm:$0xff]  ;;  %v3633_v34 = vld [vmem:[#allocation7 + $0x78] sm:$0xff] }
  0x18   :  { %3060 = vmatpush.msra.mxu3 %v103_v5  ;;  %868 = vmatpush.msra.mxu0 %v3526_v10  ;;  %v3566_v21 = vld [vmem:[#allocation7 + $0x10] sm:$0xff]  ;;  %v102_v26 = vld [vmem:[%s4448_s1 + $0x38] sm:$0xff]  ;;  %v89_v30 = vld [vmem:[%s4447_s0 + $0x10] sm:$0xff] }
  0x19   :  { %170 = vmatpush.msra.mxu1 %v101_v7  ;;  %3061 = vmatpush.msra.mxu2 %v101_v7  ;;  %v3578_v24 = vld [vmem:[%s4447_s0 + $0x20] sm:$0xff]  ;;  %v100_v27 = vld [vmem:[%s4448_s1 + $0x28] sm:$0xff]  ;;  %v98_v28 = vld [vmem:[%s4448_s1 + $0x18] sm:$0xff] }
  0x1a   :  { %3062 = vmatpush.msra.mxu3 %v101_v7  ;;  %869 = vmatpush.msra.mxu0 %v3532_v12  ;;  %v96_v29 = vld [vmem:[%s4448_s1 + $0x8] sm:$0xff]  ;;  %v258_v32 = vld [vmem:[#allocation4] sm:$0xff]  ;;  %v3631_v33 = vld [vmem:[%s4447_s0 + $0x30] sm:$0xff] }
  0x1b   :  { %171 = vmatpush.msra.mxu1 %v99_v9  ;;  %3063 = vmatpush.msra.mxu2 %v99_v9  ;;  %v3610_v31 = vld [vmem:[%s4447_s0 + $0x28] sm:$0xff]  ;;  %v3637_v35 = vld [vmem:[#allocation7 + $0x68] sm:$0xff] }
  0x1c   :  { %3064 = vmatpush.msra.mxu3 %v99_v9  ;;  %870 = vmatpush.msra.mxu0 %v3546_v16  ;;  %v3649_v36 = vld [vmem:[#allocation7 + $0x58] sm:$0xff]  ;;  %v3651_v37 = vld [vmem:[#allocation7 + $0x48] sm:$0xff] }
  0x1d   :  { %172 = vmatpush.msra.mxu1 %v97_v11  ;;  %3065 = vmatpush.msra.mxu2 %v97_v11  ;;  %v94_v38 = vld [vmem:[%s4447_s0 + $0x38] sm:$0xff]  ;;  %v3658_v39 = vld [vmem:[#allocation5] sm:$0xff]  ;;  %v111_v45 = vld [vmem:[%s4449_s2] sm:$0x3]  ;;  %s3423_s2 = smov 64  }
  0x1e   :  { %3066 = vmatpush.msra.mxu3 %v97_v11  ;;  %871 = vmatpush.msra.mxu0 %v3559_v19  ;;  %v3662_v40 = vld [vmem:[#allocation7 + $0x38] sm:$0xff]  ;;  %v3668_v41 = vld [vmem:[#allocation7 + $0x28] sm:$0xff]  ;;  %v129_v46 = vperm.slane %v111_v45, 0  ;;  %v130_v55 = vperm.slane %v111_v45, 1 }
  0x1f   :  { %173 = vmatpush.msra.mxu1 %v95_v13  ;;  %3067 = vmatpush.msra.mxu2 %v95_v13  ;;  %v3677_v42 = vld [vmem:[#allocation7 + $0x18] sm:$0xff]  ;;  %v3679_v43 = vld [vmem:[#allocation7 + $0x8] sm:$0xff] }
  0x20   :  { %2949 = vmatmul.msk.f32.vlgmr.msra.gmra.mxu1 %vm133_vm0, %v87_v14  ;;  %2952 = vmatmul.msk.f32.vlgmr.msra.gmra.mxu2 %vm133_vm0, %v3544_v15 }
  0x21   :  { %207 = vmatpush.msrb.mxu1 %v110_v17  ;;  %270 = vmatpush.msrb.mxu2 %v3514_v6 }
  0x22   :  { %3068 = vmatpush.msra.mxu3 %v95_v13  ;;  %872 = vmatpush.msra.mxu0 %v3566_v21 }
  0x23   :  { %208 = vmatpush.msrb.mxu1 %v108_v18  ;;  %271 = vmatpush.msrb.mxu2 %v3520_v8 }
  0x24   :  { %873 = vmatpush.msra.mxu0 %v3581_v25  ;;  %2955 = vmatmul.msk.f32.vlgmr.msra.gmra.mxu3 %vm133_vm0, %v3631_v33 }
  0x25   :  { %209 = vmatpush.msrb.mxu1 %v106_v20  ;;  %272 = vmatpush.msrb.mxu2 %v3526_v10 }
  0x26   :  { %1156 = vmatpush.msrb.mxu0 %v3514_v6  ;;  %290 = vmatpush.msrb.mxu3 %v3633_v34 }
  0x27   :  { %210 = vmatpush.msrb.mxu1 %v104_v22  ;;  %273 = vmatpush.msrb.mxu2 %v3532_v12 }
  0x28   :  { %2950 = vmatmul.msk.f32.gmra.mxu1 %vm133_vm0, %v88_v23  ;;  %2953 = vmatmul.msk.f32.gmra.mxu2 %vm133_vm0, %v3578_v24 }
  0x29   :  { %211 = vmatpush.msrb.mxu1 %v102_v26  ;;  %274 = vmatpush.msrb.mxu2 %v3546_v16 }
  0x2a   :  { %1157 = vmatpush.msrb.mxu0 %v3520_v8  ;;  %291 = vmatpush.msrb.mxu3 %v3637_v35 }
  0x2b   :  { %212 = vmatpush.msrb.mxu1 %v100_v27  ;;  %275 = vmatpush.msrb.mxu2 %v3559_v19 }
  0x2c   :  { %1158 = vmatpush.msrb.mxu0 %v3526_v10  ;;  %292 = vmatpush.msrb.mxu3 %v3649_v36 }
  0x2d   :  { %213 = vmatpush.msrb.mxu1 %v98_v28  ;;  %276 = vmatpush.msrb.mxu2 %v3566_v21 }
  0x2e   :  { %1159 = vmatpush.msrb.mxu0 %v3532_v12  ;;  %2956 = vmatmul.msk.f32.gmra.mxu3 %vm133_vm0, %v94_v38 }
  0x2f   :  { %214 = vmatpush.msrb.mxu1 %v96_v29  ;;  %277 = vmatpush.msrb.mxu2 %v3581_v25 }
  0x30   :  { %2951 = vmatmul.msk.f32.gmra.mxu1 %vm133_vm0, %v89_v30  ;;  %2954 = vmatmul.msk.f32.gmra.mxu2 %vm133_vm0, %v3610_v31 }
  0x31   :  { %419 = vmatpush.msra.mxu2 %v3514_v6  ;;  %1160 = vmatpush.msrb.mxu0 %v3546_v16 }
  0x32   :  { %886 = vmatpush.msra.mxu1 %v3633_v34  ;;  %349 = vrot.lane.b32.xlu1 %v3658_v39, %s3422_s15 }
  0x33   :  { %420 = vmatpush.msra.mxu2 %v3520_v8  ;;  %1161 = vmatpush.msrb.mxu0 %v3559_v19 }
  0x34   :  { %887 = vmatpush.msra.mxu1 %v3637_v35  ;;  %293 = vmatpush.msrb.mxu3 %v3651_v37 }
  0x35   :  { %421 = vmatpush.msra.mxu2 %v3526_v10  ;;  %1162 = vmatpush.msrb.mxu0 %v3566_v21 }
  0x36   :  { %888 = vmatpush.msra.mxu1 %v3649_v36  ;;  %294 = vmatpush.msrb.mxu3 %v3662_v40 }
  0x37   :  { %422 = vmatpush.msra.mxu2 %v3532_v12  ;;  %1163 = vmatpush.msrb.mxu0 %v3581_v25 }
  0x38   :  { %2957 = vmatmul.msk.f32.vlgmr.msrb.gmra.mxu1 %vm133_vm0, %v87_v14  ;;  %2965 = vmatmul.msk.f32.vlgmr.msrb.gmra.mxu2 %vm133_vm0, %v258_v32 }
  0x39   :  { %423 = vmatpush.msra.mxu2 %v3546_v16  ;;  %889 = vmatpush.msra.mxu1 %v3651_v37 }
  0x3a   :  { %295 = vmatpush.msrb.mxu3 %v3668_v41 }
  0x3b   :  { %424 = vmatpush.msra.mxu2 %v3559_v19  ;;  %890 = vmatpush.msra.mxu1 %v3662_v40 }
  0x3c   :  { %296 = vmatpush.msrb.mxu3 %v3677_v42 }
  0x3d   :  { %425 = vmatpush.msra.mxu2 %v3566_v21  ;;  %891 = vmatpush.msra.mxu1 %v3668_v41 }
  0x3e   :  { %297 = vmatpush.msrb.mxu3 %v3679_v43 }
  0x3f   :  { %426 = vmatpush.msra.mxu2 %v3581_v25  ;;  %2966 = vmatmul.msk.f32.vlgmr.msrb.gmra.mxu3 %vm133_vm0, %v258_v32 }
  0x40   :  { %2958 = vmatmul.msk.f32.gmra.mxu1 %vm133_vm0, %v88_v23  ;;  %439 = vmatpush.msra.mxu3 %v3633_v34 }
  0x41   :  { %568 = vmatpush.msrb.mxu2 %v3514_v6  ;;  %892 = vmatpush.msra.mxu1 %v3677_v42 }
  0x42   :  { %440 = vmatpush.msra.mxu3 %v3637_v35 }
  0x43   :  { %569 = vmatpush.msrb.mxu2 %v3520_v8  ;;  %893 = vmatpush.msra.mxu1 %v3679_v43 }
  0x44   :  { %441 = vmatpush.msra.mxu3 %v3649_v36 }
  0x45   :  { %570 = vmatpush.msrb.mxu2 %v3526_v10  ;;  %1176 = vmatpush.msrb.mxu1 %v3633_v34 }
  0x46   :  { %442 = vmatpush.msra.mxu3 %v3651_v37 }
  0x47   :  { %571 = vmatpush.msrb.mxu2 %v3532_v12  ;;  %1177 = vmatpush.msrb.mxu1 %v3637_v35 }
  0x48   :  { %2959 = vmatmul.msk.f32.gmra.mxu1 %vm133_vm0, %v89_v30  ;;  %443 = vmatpush.msra.mxu3 %v3662_v40 }
  0x49   :  { %572 = vmatpush.msrb.mxu2 %v3546_v16  ;;  %1178 = vmatpush.msrb.mxu1 %v3649_v36 }
  0x4a   :  { %444 = vmatpush.msra.mxu3 %v3668_v41 }
  0x4b   :  { %573 = vmatpush.msrb.mxu2 %v3559_v19  ;;  %1179 = vmatpush.msrb.mxu1 %v3651_v37 }
  0x4c   :  { %445 = vmatpush.msra.mxu3 %v3677_v42 }
  0x4d   :  { %574 = vmatpush.msrb.mxu2 %v3566_v21  ;;  %1180 = vmatpush.msrb.mxu1 %v3662_v40 }
  0x4e   :  { %446 = vmatpush.msra.mxu3 %v3679_v43 }
  0x4f   :  { %575 = vmatpush.msrb.mxu2 %v3581_v25  ;;  %1181 = vmatpush.msrb.mxu1 %v3668_v41 }
  0x50   :  { %2960 = vmatmul.msk.f32.gmra.mxu1 %vm133_vm0, %v3544_v15  ;;  %588 = vmatpush.msrb.mxu3 %v3633_v34 }
  0x51   :  { %1182 = vmatpush.msrb.mxu1 %v3677_v42 }
  0x52   :  { %589 = vmatpush.msrb.mxu3 %v3637_v35 }
  0x53   :  { %1183 = vmatpush.msrb.mxu1 %v3679_v43 }
  0x54   :  { %590 = vmatpush.msrb.mxu3 %v3649_v36 }
  0x56   :  { %591 = vmatpush.msrb.mxu3 %v3651_v37 }
  0x58   :  { %2961 = vmatmul.msk.f32.gmra.mxu1 %vm133_vm0, %v3578_v24  ;;  %592 = vmatpush.msrb.mxu3 %v3662_v40 }
  0x5a   :  { %593 = vmatpush.msrb.mxu3 %v3668_v41 }
  0x5c   :  { %594 = vmatpush.msrb.mxu3 %v3677_v42 }
  0x5e   :  { %595 = vmatpush.msrb.mxu3 %v3679_v43 }
  0x60   :  { %2962 = vmatmul.msk.f32.gmra.mxu1 %vm133_vm0, %v3610_v31 }
  0x68   :  { %2963 = vmatmul.msk.f32.gmra.mxu1 %vm133_vm0, %v3631_v33 }
  0x70   :  { %2964 = vmatmul.msk.f32.gmra.mxu1 %vm133_vm0, %v94_v38 }
  0x9d   :  { %v175_v44 = vpop.f32.mrf.mxu1 }
  0x9e   :  { %v176_v60 = vadd.f32 %v175_v44, %v129_v46 }
  0xa3   :  { %v184_v47 = vpop.f32.mrf.mxu2 }
  0xa4   :  { %v3727_v48 = vadd.f32 %v184_v47, %v129_v46 }
  0xa5   :  { %v178_v49 = vpop.f32.mrf.mxu1 }
  0xa6   :  { %v3729_v50 = vadd.f32 %v178_v49, %v129_v46 }
  0xa7   :  { %v193_v1 = vpop.f32.mrf.mxu3 }
  0xa8   :  { %v3741_v2 = vadd.f32 %v193_v1, %v129_v46 }
  0xab   :  { %v187_v51 = vpop.f32.mrf.mxu2 }
  0xac   :  { %v3731_v52 = vadd.f32 %v187_v51, %v129_v46 }
  0xad   :  { %v181_v53 = vpop.f32.mrf.mxu1 }
  0xae   :  { %v3733_v54 = vadd.f32 %v181_v53, %v129_v46 }
  0xb1   :  { %v196_v9 = vpop.f32.mrf.mxu3 }
  0xb2   :  { %v3746_v11 = vadd.f32 %v196_v9, %v129_v46 }
  0xb3   :  { %v190_v56 = vpop.f32.mrf.mxu2 }
  0xb4   :  { %v3735_v57 = vadd.f32 %v190_v56, %v129_v46 }
  0xb5   :  { %v216_v58 = vpop.f32.mrf.mxu1 }
  0xb6   :  { %v3737_v59 = vadd.f32 %v216_v58, %v130_v55 }
  0xbb   :  { %v279_v61 = vpop.f32.mrf.mxu2 }
  0xbc   :  { %v303_v62 = vadd.f32 %v279_v61, %v176_v60 }
  0xbd   :  { %v219_v63 = vpop.f32.mrf.mxu1 }
  0xbe   :  { %3084 = vtanh.f32 %v303_v62  ;;  %v3739_v0 = vadd.f32 %v219_v63, %v130_v55  ;;  %v2967_v30 = vmul.f32 -1.442695, %v303_v62 }
  0xc2   :  { %v299_v26 = vpop.f32.mrf.mxu3 }
  0xc4   :  { %v3085_v4 = vpop.eup %3084 }
  0xc5   :  { %v222_v5 = vpop.f32.mrf.mxu1  ;;  %354 = vrot.lane.b32.xlu0 %v3085_v4, %s3423_s2 }
  0xc6   :  { %v3744_v7 = vadd.f32 %v222_v5, %v130_v55 }
  0xcd   :  { %v225_v13 = vpop.f32.mrf.mxu1 }
  0xce   :  { %v3748_v14 = vadd.f32 %v225_v13, %v130_v55 }
  0xd5   :  { %v228_v15 = vpop.f32.mrf.mxu1 }
  0xd6   :  { %v3750_v17 = vadd.f32 %v228_v15, %v130_v55 }
  0xdd   :  { %v231_v18 = vpop.f32.mrf.mxu1 }
  0xde   :  { %v3752_v20 = vadd.f32 %v231_v18, %v130_v55 }
  0xe5   :  { %v234_v22 = vpop.f32.mrf.mxu1 }
  0xe6   :  { %v3754_v23 = vadd.f32 %v234_v22, %v130_v55 }
  0xed   :  { %v237_v24 = vpop.f32.mrf.mxu1 }
  0xee   :  { %v238_v27 = vadd.f32 %v237_v24, %v130_v55 }
  0xf0   :  { %v306_v28 = vadd.f32 %v299_v26, %v238_v27 }
  0xf2   :  { %3086 = vtanh.f32 %v306_v28  ;;  %v2968_v60 = vmul.f32 -1.442695, %v306_v28  ;;  %v350_v28 = vpop.permute.xlu1 %349 }
  0xf3   :  { %3088 = vpow2.f32 %v2967_v30 }
  0xf8   :  { %v3087_v29 = vpop.eup %3086 }
  0xf9   :  { %365 = vrot.lane.b32.xlu0 %v3087_v29, %s3423_s2  ;;  %v3089_v31 = vpop.eup %3088 }
  0xfa   :  { %v310_v32 = vadd.f32 1.0, %v3089_v31 }
  0xfc   :  { %3090 = vrcp.f32 %v310_v32  ;;  %v322_v47 = vand.u32 2147483648, %v310_v32  ;;  %vm316_vm2 = vweird.f32 %v310_v32  ;;  %v320_v49 = vand.u32 2147483647, %v310_v32 }
  0xfd   :  { %3092 = vpow2.f32 %v2968_v60 }
  0xfe   :  { %v323_v53 = vor.u32 1.1754944e-38, %v322_v47  ;;  %vm321_vm4 = vcmp.eq.f32.partialorder %v320_v49, 8.507059e+37 }
 0x102   :  { %v3091_v33 = vpop.eup %3090 }
 0x103   :  { %v312_v38 = vmul.f32 %v3091_v33, %v310_v32  ;;  %vm317_vm1 = vweird.f32 %v3091_v33  ;;  %v3093_v61 = vpop.eup %3092 }
 0x104   :  { %vm318_vm3 = vmor %vm316_vm2, %vm317_vm1  ;;  %v330_v62 = vadd.f32 1.0, %v3093_v61 }
 0x105   :  { %v313_v44 = vsub.f32 1.0, %v312_v38 }
 0x106   :  { %3094 = vrcp.f32 %v330_v62  ;;  %v342_v13 = vand.u32 2147483648, %v330_v62  ;;  %vm336_vm6 = vweird.f32 %v330_v62  ;;  %v340_v15 = vand.u32 2147483647, %v330_v62 }
 0x107   :  { %v314_v45 = vmul.f32 %v3091_v33, %v313_v44 }
 0x108   :  { %v343_v22 = vor.u32 1.1754944e-38, %v342_v13  ;;  %vm341_vm8 = vcmp.eq.f32.partialorder %v340_v15, 8.507059e+37 }
 0x109   :  { %v315_v46 = vadd.f32 %v3091_v33, %v314_v45 }
 0x10b   :  { %v319_v51 = vsel %vm318_vm3, %v3091_v33, %v315_v46 }
 0x10c   :  { %v324_v55 = vsel %vm321_vm4, %v323_v53, %v319_v51  ;;  %v3095_v63 = vpop.eup %3094 }
 0x10d   :  { %v332_v1 = vmul.f32 %v3095_v63, %v330_v62  ;;  %vm337_vm5 = vweird.f32 %v3095_v63  ;;  %v352_v29 = vmul.f32 %v350_v28, %v324_v55 }
 0x10e   :  { %vm338_vm7 = vmor %vm336_vm6, %vm337_vm5 }
 0x10f   :  { %v333_v4 = vsub.f32 1.0, %v332_v1 }
 0x111   :  { %v334_v5 = vmul.f32 %v3095_v63, %v333_v4 }
 0x113   :  { %v335_v9 = vadd.f32 %v3095_v63, %v334_v5 }
 0x115   :  { %v339_v18 = vsel %vm338_vm7, %v3095_v63, %v335_v9 }
 0x116   :  { %v344_v26 = vsel %vm341_vm8, %v343_v22, %v339_v18 }
 0x117   :  { %v363_v33 = vmul.f32 %v3658_v39, %v344_v26 }
 0x137   :  { %v355_v56 = vpop.permute.xlu0 %354 }
 0x138   :  { %v357_v58 = vmul.f32 %v355_v56, %v324_v55 }
 0x13a   :  { %359 = vrot.lane.b32.xlu1 %v357_v58, %s3422_s15 }
 0x16b   :  { %v366_v24 = vpop.permute.xlu0 %365 }
 0x16c   :  { %v368_v27 = vmul.f32 %v366_v24, %v344_v26 }
 0x16e   :  { %370 = vrot.lane.b32.xlu2 %v368_v27, %s3422_s15 }
 0x1ac   :  { %v360_v30 = vpop.permute.xlu1 %359 }
 0x1ad   :  { %v362_v31 = vadd.f32 %v360_v30, %v352_v29 }
 0x1af   :  { %3096 = vtanh.f32 %v362_v31 }
 0x1b5   :  { %v3097_v32 = vpop.eup %3096 }
 0x1b6   :  { %376 = vrot.lane.b32.xlu2 %v3097_v32, %s3423_s2 }
 0x1c8   :  { %v371_v38 = vpop.permute.xlu2 %370 }
 0x1c9   :  { %v373_v44 = vadd.f32 %v371_v38, %v363_v33 }
 0x1cb   :  { %3098 = vtanh.f32 %v373_v44 }
 0x1d1   :  { %v3099_v45 = vpop.eup %3098 }
 0x1d2   :  { %382 = vrot.lane.b32.xlu0 %v3099_v45, %s3423_s2 }
 0x1da   :  { %387 = vrot.lane.b32.xlu0 %v362_v31, %s3424_s17 }
 0x210   :  { %v377_v46 = vpop.permute.xlu2 %376 }
 0x211   :  { %v379_v47 = vmul.f32 %v377_v46, %v324_v55 }
 0x213   :  { %395 = vrot.lane.b32.xlu1 %v379_v47, %s3422_s15 }
 0x244   :  { %v383_v49 = vpop.permute.xlu0 %382 }
 0x245   :  { %v385_v51 = vmul.f32 %v383_v49, %v344_v26 }
 0x247   :  { %400 = vrot.lane.b32.xlu2 %v385_v51, %s3423_s2 }
 0x24c   :  { %v388_v39 = vpop.permute.xlu0 %387 }
 0x24d   :  { %391 = vst.msk [vmem:[#allocation5] sm:$0xff] %vm390_vm9, %v388_v39 }
 0x24e   :  { %393 = vst.msk [vmem:[#allocation5] sm:$0xff] %vm392_vm10, %v373_v44 }
 0x255   :  { %v3767_v53 = vld [vmem:[#allocation5] sm:$0xff] }
 0x256   :  { %499 = vrot.lane.b32.xlu0 %v3767_v53, %s3422_s15 }
 0x285   :  { %v396_v56 = vpop.permute.xlu1 %395 }
 0x286   :  { %398 = vst.msk [vmem:[#allocation4] sm:$0xff] %vm390_vm9, %v396_v56 }
 0x287   :  { %404 = vst.msk [vmem:[#allocation3] sm:$0xff] %vm390_vm9, %v396_v56 }
 0x2a1   :  { %v401_v55 = vpop.permute.xlu2 %400 }
 0x2a2   :  { %403 = vst.msk [vmem:[#allocation4] sm:$0xff] %vm392_vm10, %v401_v55 }
 0x2a3   :  { %406 = vst.msk [vmem:[#allocation3 + $0x38] sm:$0xff] %vm392_vm10, %v401_v55 }
 0x2a9   :  { %v407_v58 = vld [vmem:[#allocation4] sm:$0xff] }
 0x2aa   :  { %2969 = vmatmul.msk.f32.vlgmr.msra.gmra.mxu2 %vm133_vm0, %v407_v58  ;;  %2970 = vmatmul.msk.f32.vlgmr.msra.gmra.mxu3 %vm133_vm0, %v407_v58 }
 0x2ab   :  { %717 = vmatpush.msra.mxu2 %v3514_v6  ;;  %737 = vmatpush.msra.mxu3 %v3633_v34 }
 0x2ad   :  { %718 = vmatpush.msra.mxu2 %v3520_v8  ;;  %738 = vmatpush.msra.mxu3 %v3637_v35 }
 0x2af   :  { %719 = vmatpush.msra.mxu2 %v3526_v10  ;;  %739 = vmatpush.msra.mxu3 %v3649_v36 }
 0x2b1   :  { %720 = vmatpush.msra.mxu2 %v3532_v12  ;;  %740 = vmatpush.msra.mxu3 %v3651_v37 }
 0x2b3   :  { %721 = vmatpush.msra.mxu2 %v3546_v16  ;;  %741 = vmatpush.msra.mxu3 %v3662_v40 }
 0x2b5   :  { %722 = vmatpush.msra.mxu2 %v3559_v19  ;;  %742 = vmatpush.msra.mxu3 %v3668_v41 }
 0x2b7   :  { %723 = vmatpush.msra.mxu2 %v3566_v21  ;;  %743 = vmatpush.msra.mxu3 %v3677_v42 }
 0x2b9   :  { %724 = vmatpush.msra.mxu2 %v3581_v25  ;;  %744 = vmatpush.msra.mxu3 %v3679_v43 }
 0x32d   :  { %v428_v60 = vpop.f32.mrf.mxu2  ;;  %v448_v61 = vpop.f32.mrf.mxu3 }
 0x32e   :  { %v453_v62 = vadd.f32 %v428_v60, %v3729_v50  ;;  %v456_v63 = vadd.f32 %v448_v61, %v3754_v23 }
 0x330   :  { %3100 = vtanh.f32 %v453_v62  ;;  %v2972_v5 = vmul.f32 -1.442695, %v456_v63  ;;  %v2971_v18 = vmul.f32 -1.442695, %v453_v62 }
 0x331   :  { %3102 = vtanh.f32 %v456_v63 }
 0x332   :  { %3104 = vpow2.f32 %v2972_v5  ;;  %v500_v5 = vpop.permute.xlu0 %499 }
 0x336   :  { %v3101_v1 = vpop.eup %3100 }
 0x337   :  { %v3103_v4 = vpop.eup %3102  ;;  %504 = vrot.lane.b32.xlu1 %v3101_v1, %s3423_s2 }
 0x338   :  { %515 = vrot.lane.b32.xlu2 %v3103_v4, %s3423_s2  ;;  %v3105_v9 = vpop.eup %3104 }
 0x339   :  { %v480_v13 = vadd.f32 1.0, %v3105_v9 }
 0x33b   :  { %3106 = vrcp.f32 %v480_v13  ;;  %v492_v28 = vand.u32 2147483648, %v480_v13  ;;  %vm486_vm12 = vweird.f32 %v480_v13  ;;  %v490_v29 = vand.u32 2147483647, %v480_v13 }
 0x33c   :  { %3108 = vpow2.f32 %v2971_v18 }
 0x33d   :  { %v493_v31 = vor.u32 1.1754944e-38, %v492_v28  ;;  %vm491_vm14 = vcmp.eq.f32.partialorder %v490_v29, 8.507059e+37 }
 0x341   :  { %v3107_v15 = vpop.eup %3106 }
 0x342   :  { %v482_v22 = vmul.f32 %v3107_v15, %v480_v13  ;;  %v3109_v24 = vpop.eup %3108  ;;  %vm487_vm11 = vweird.f32 %v3107_v15 }
 0x343   :  { %v460_v26 = vadd.f32 1.0, %v3109_v24  ;;  %vm488_vm13 = vmor %vm486_vm12, %vm487_vm11 }
 0x344   :  { %v483_v50 = vsub.f32 1.0, %v482_v22 }
 0x345   :  { %3110 = vrcp.f32 %v460_v26  ;;  %v472_v51 = vand.u32 2147483648, %v460_v26  ;;  %vm466_vm1 = vweird.f32 %v460_v26  ;;  %v470_v39 = vand.u32 2147483647, %v460_v26 }
 0x346   :  { %v484_v23 = vmul.f32 %v3107_v15, %v483_v50 }
 0x347   :  { %v473_v55 = vor.u32 1.1754944e-38, %v472_v51  ;;  %vm471_vm3 = vcmp.eq.f32.partialorder %v470_v39, 8.507059e+37 }
 0x348   :  { %v485_v27 = vadd.f32 %v3107_v15, %v484_v23 }
 0x34a   :  { %v489_v30 = vsel %vm488_vm13, %v3107_v15, %v485_v27 }
 0x34b   :  { %v494_v33 = vsel %vm491_vm14, %v493_v31, %v489_v30  ;;  %v3111_v38 = vpop.eup %3110 }
 0x34c   :  { %v462_v45 = vmul.f32 %v3111_v38, %v460_v26  ;;  %vm467_vm15 = vweird.f32 %v3111_v38  ;;  %v513_v62 = vmul.f32 %v3767_v53, %v494_v33 }
 0x34d   :  { %vm468_vm2 = vmor %vm466_vm1, %vm467_vm15 }
 0x34e   :  { %v463_v46 = vsub.f32 1.0, %v462_v45 }
 0x350   :  { %v464_v47 = vmul.f32 %v3111_v38, %v463_v46 }
 0x352   :  { %v465_v49 = vadd.f32 %v3111_v38, %v464_v47 }
 0x354   :  { %v469_v56 = vsel %vm468_vm2, %v3111_v38, %v465_v49 }
 0x355   :  { %v474_v60 = vsel %vm471_vm3, %v473_v55, %v469_v56 }
 0x356   :  { %v502_v9 = vmul.f32 %v500_v5, %v474_v60 }
 0x392   :  { %v516_v32 = vpop.permute.xlu2 %515 }
 0x393   :  { %v518_v44 = vmul.f32 %v516_v32, %v494_v33 }
 0x395   :  { %520 = vrot.lane.b32.xlu2 %v518_v44, %s3422_s15 }
 0x3a9   :  { %v505_v58 = vpop.permute.xlu1 %504 }
 0x3aa   :  { %v507_v61 = vmul.f32 %v505_v58, %v474_v60 }
 0x3ac   :  { %509 = vrot.lane.b32.xlu1 %v507_v61, %s3422_s15 }
 0x3ef   :  { %v521_v63 = vpop.permute.xlu2 %520 }
 0x3f0   :  { %v523_v1 = vadd.f32 %v521_v63, %v513_v62 }
 0x3f2   :  { %3112 = vtanh.f32 %v523_v1 }
 0x3f8   :  { %v3113_v4 = vpop.eup %3112 }
 0x3f9   :  { %532 = vrot.lane.b32.xlu1 %v3113_v4, %s3423_s2 }
 0x41e   :  { %v510_v13 = vpop.permute.xlu1 %509 }
 0x41f   :  { %v512_v15 = vadd.f32 %v510_v13, %v502_v9 }
 0x421   :  { %3114 = vtanh.f32 %v512_v15  ;;  %537 = vrot.lane.b32.xlu1 %v512_v15, %s3424_s17 }
 0x427   :  { %v3115_v18 = vpop.eup %3114 }
 0x428   :  { %526 = vrot.lane.b32.xlu0 %v3115_v18, %s3423_s2 }
 0x46b   :  { %v533_v22 = vpop.permute.xlu1 %532 }
 0x46c   :  { %v535_v50 = vmul.f32 %v533_v22, %v494_v33 }
 0x46e   :  { %548 = vrot.lane.b32.xlu0 %v535_v50, %s3423_s2 }
 0x493   :  { %v538_v53 = vpop.permute.xlu1 %537 }
 0x494   :  { %540 = vst.msk [vmem:[#allocation5] sm:$0xff] %vm390_vm9, %v538_v53 }
 0x495   :  { %541 = vst.msk [vmem:[#allocation5] sm:$0xff] %vm392_vm10, %v523_v1 }
 0x49a   :  { %v527_v24 = vpop.permute.xlu0 %526 }
 0x49b   :  { %v529_v23 = vmul.f32 %v527_v24, %v474_v60 }
 0x49c   :  { %v3806_v26 = vld [vmem:[#allocation5] sm:$0xff] }
 0x49d   :  { %648 = vrot.lane.b32.xlu1 %v3806_v26, %s3422_s15  ;;  %543 = vrot.lane.b32.xlu2 %v529_v23, %s3422_s15 }
 0x4e0   :  { %v549_v27 = vpop.permute.xlu0 %548 }
 0x4e1   :  { %555 = vst.msk [vmem:[#allocation3 + $0x30] sm:$0xff] %vm392_vm10, %v549_v27 }
 0x4f7   :  { %v544_v28 = vpop.permute.xlu2 %543 }
 0x4f8   :  { %546 = vst.msk [vmem:[#allocation4] sm:$0xff] %vm390_vm9, %v544_v28 }
 0x4f9   :  { %551 = vst.msk [vmem:[#allocation4] sm:$0xff] %vm392_vm10, %v549_v27 }
 0x4fa   :  { %553 = vst.msk [vmem:[#allocation3 + $0x8] sm:$0xff] %vm390_vm9, %v544_v28 }
 0x500   :  { %v556_v29 = vld [vmem:[#allocation4] sm:$0xff] }
 0x501   :  { %2973 = vmatmul.msk.f32.vlgmr.msrb.gmra.mxu2 %vm133_vm0, %v556_v29  ;;  %2974 = vmatmul.msk.f32.vlgmr.msrb.gmra.mxu3 %vm133_vm0, %v556_v29 }
 0x502   :  { %1011 = vmatpush.msrb.mxu2 %v3514_v6  ;;  %1031 = vmatpush.msrb.mxu3 %v3633_v34 }
 0x504   :  { %1012 = vmatpush.msrb.mxu2 %v3520_v8  ;;  %1032 = vmatpush.msrb.mxu3 %v3637_v35 }
 0x506   :  { %1013 = vmatpush.msrb.mxu2 %v3526_v10  ;;  %1033 = vmatpush.msrb.mxu3 %v3649_v36 }
 0x508   :  { %1014 = vmatpush.msrb.mxu2 %v3532_v12  ;;  %1034 = vmatpush.msrb.mxu3 %v3651_v37 }
 0x50a   :  { %1015 = vmatpush.msrb.mxu2 %v3546_v16  ;;  %1035 = vmatpush.msrb.mxu3 %v3662_v40 }
 0x50c   :  { %1016 = vmatpush.msrb.mxu2 %v3559_v19  ;;  %1036 = vmatpush.msrb.mxu3 %v3668_v41 }
 0x50e   :  { %1017 = vmatpush.msrb.mxu2 %v3566_v21  ;;  %1037 = vmatpush.msrb.mxu3 %v3677_v42 }
 0x510   :  { %1018 = vmatpush.msrb.mxu2 %v3581_v25  ;;  %1038 = vmatpush.msrb.mxu3 %v3679_v43 }
 0x584   :  { %v577_v30 = vpop.f32.mrf.mxu2  ;;  %v597_v31 = vpop.f32.mrf.mxu3 }
 0x585   :  { %v602_v32 = vadd.f32 %v577_v30, %v3733_v54  ;;  %v605_v33 = vadd.f32 %v597_v31, %v3752_v20  ;;  %v649_v30 = vpop.permute.xlu1 %648 }
 0x587   :  { %3116 = vtanh.f32 %v602_v32  ;;  %v2975_v45 = vmul.f32 -1.442695, %v602_v32  ;;  %v2976_v51 = vmul.f32 -1.442695, %v605_v33 }
 0x588   :  { %3118 = vtanh.f32 %v605_v33 }
 0x589   :  { %3120 = vpow2.f32 %v2975_v45 }
 0x58d   :  { %v3117_v38 = vpop.eup %3116 }
 0x58e   :  { %v3119_v44 = vpop.eup %3118  ;;  %653 = vrot.lane.b32.xlu2 %v3117_v38, %s3423_s2 }
 0x58f   :  { %664 = vrot.lane.b32.xlu0 %v3119_v44, %s3423_s2  ;;  %v3121_v46 = vpop.eup %3120 }
 0x590   :  { %v609_v47 = vadd.f32 1.0, %v3121_v46 }
 0x592   :  { %3122 = vrcp.f32 %v609_v47  ;;  %v621_v60 = vand.u32 2147483648, %v609_v47  ;;  %vm615_vm5 = vweird.f32 %v609_v47  ;;  %v619_v61 = vand.u32 2147483647, %v609_v47 }
 0x593   :  { %3124 = vpow2.f32 %v2976_v51 }
 0x594   :  { %v622_v63 = vor.u32 1.1754944e-38, %v621_v60  ;;  %vm620_vm7 = vcmp.eq.f32.partialorder %v619_v61, 8.507059e+37 }
 0x598   :  { %v3123_v49 = vpop.eup %3122 }
 0x599   :  { %v611_v39 = vmul.f32 %v3123_v49, %v609_v47  ;;  %v3125_v20 = vpop.eup %3124  ;;  %vm616_vm4 = vweird.f32 %v3123_v49 }
 0x59a   :  { %v629_v55 = vadd.f32 1.0, %v3125_v20  ;;  %vm617_vm6 = vmor %vm615_vm5, %vm616_vm4 }
 0x59b   :  { %v612_v54 = vsub.f32 1.0, %v611_v39 }
 0x59c   :  { %3126 = vrcp.f32 %v629_v55  ;;  %v641_v50 = vand.u32 2147483648, %v629_v55  ;;  %vm635_vm11 = vweird.f32 %v629_v55  ;;  %v639_v53 = vand.u32 2147483647, %v629_v55 }
 0x59d   :  { %v613_v56 = vmul.f32 %v3123_v49, %v612_v54 }
 0x59e   :  { %v642_v23 = vor.u32 1.1754944e-38, %v641_v50  ;;  %vm640_vm13 = vcmp.eq.f32.partialorder %v639_v53, 8.507059e+37 }
 0x59f   :  { %v614_v58 = vadd.f32 %v3123_v49, %v613_v56 }
 0x5a1   :  { %v618_v62 = vsel %vm617_vm6, %v3123_v49, %v614_v58 }
 0x5a2   :  { %v623_v4 = vsel %vm620_vm7, %v622_v63, %v618_v62  ;;  %v3127_v9 = vpop.eup %3126 }
 0x5a3   :  { %v631_v13 = vmul.f32 %v3127_v9, %v629_v55  ;;  %vm636_vm8 = vweird.f32 %v3127_v9  ;;  %v651_v31 = vmul.f32 %v649_v30, %v623_v4 }
 0x5a4   :  { %vm637_vm12 = vmor %vm635_vm11, %vm636_vm8 }
 0x5a5   :  { %v632_v15 = vsub.f32 1.0, %v631_v13 }
 0x5a7   :  { %v633_v18 = vmul.f32 %v3127_v9, %v632_v15 }
 0x5a9   :  { %v634_v22 = vadd.f32 %v3127_v9, %v633_v18 }
 0x5ab   :  { %v638_v24 = vsel %vm637_vm12, %v3127_v9, %v634_v22 }
 0x5ac   :  { %v643_v28 = vsel %vm640_vm13, %v642_v23, %v638_v24 }
 0x5ad   :  { %v662_v44 = vmul.f32 %v3806_v26, %v643_v28 }
 0x5e8   :  { %v654_v1 = vpop.permute.xlu2 %653 }
 0x5e9   :  { %v656_v5 = vmul.f32 %v654_v1, %v623_v4 }
 0x5eb   :  { %658 = vrot.lane.b32.xlu2 %v656_v5, %s3422_s15 }
 0x601   :  { %v665_v27 = vpop.permute.xlu0 %664 }
 0x602   :  { %v667_v29 = vmul.f32 %v665_v27, %v643_v28 }
 0x604   :  { %669 = vrot.lane.b32.xlu0 %v667_v29, %s3422_s15 }
 0x645   :  { %v659_v32 = vpop.permute.xlu2 %658 }
 0x646   :  { %v661_v33 = vadd.f32 %v659_v32, %v651_v31 }
 0x648   :  { %3128 = vtanh.f32 %v661_v33 }
 0x64e   :  { %v3129_v38 = vpop.eup %3128 }
 0x64f   :  { %675 = vrot.lane.b32.xlu1 %v3129_v38, %s3423_s2 }
 0x676   :  { %v670_v45 = vpop.permute.xlu0 %669 }
 0x677   :  { %v672_v46 = vadd.f32 %v670_v45, %v662_v44 }
 0x679   :  { %3130 = vtanh.f32 %v672_v46 }
 0x67f   :  { %v3131_v47 = vpop.eup %3130 }
 0x680   :  { %681 = vrot.lane.b32.xlu2 %v3131_v47, %s3423_s2 }
 0x688   :  { %686 = vrot.lane.b32.xlu2 %v661_v33, %s3424_s17 }
 0x6c1   :  { %v676_v49 = vpop.permute.xlu1 %675 }
 0x6c2   :  { %v678_v51 = vmul.f32 %v676_v49, %v623_v4 }
 0x6c4   :  { %692 = vrot.lane.b32.xlu0 %v678_v51, %s3422_s15 }
 0x6da   :  { %v682_v39 = vpop.permute.xlu2 %681 }
 0x6db   :  { %v684_v54 = vmul.f32 %v682_v39, %v643_v28 }
 0x6dd   :  { %697 = vrot.lane.b32.xlu1 %v684_v54, %s3423_s2 }
 0x6e2   :  { %v687_v56 = vpop.permute.xlu2 %686 }
 0x6e3   :  { %689 = vst.msk [vmem:[#allocation5] sm:$0xff] %vm390_vm9, %v687_v56 }
 0x6e4   :  { %690 = vst.msk [vmem:[#allocation5] sm:$0xff] %vm392_vm10, %v672_v46 }
 0x6eb   :  { %v3847_v26 = vld [vmem:[#allocation5] sm:$0xff] }
 0x6ec   :  { %797 = vrot.lane.b32.xlu2 %v3847_v26, %s3422_s15 }
 0x736   :  { %v693_v20 = vpop.permute.xlu0 %692 }
 0x737   :  { %695 = vst.msk [vmem:[#allocation4] sm:$0xff] %vm390_vm9, %v693_v20 }
 0x738   :  { %702 = vst.msk [vmem:[#allocation3 + $0x10] sm:$0xff] %vm390_vm9, %v693_v20 }
 0x746   :  { %v798_v29 = vpop.permute.xlu2 %797 }
 0x74f   :  { %v698_v55 = vpop.permute.xlu1 %697 }
 0x750   :  { %700 = vst.msk [vmem:[#allocation4] sm:$0xff] %vm392_vm10, %v698_v55 }
 0x751   :  { %704 = vst.msk [vmem:[#allocation3 + $0x28] sm:$0xff] %vm392_vm10, %v698_v55 }
 0x757   :  { %v705_v58 = vld [vmem:[#allocation4] sm:$0xff] }
 0x758   :  { %2977 = vmatmul.msk.f32.vlgmr.msra.gmra.mxu2 %vm133_vm0, %v705_v58  ;;  %2978 = vmatmul.msk.f32.vlgmr.msra.gmra.mxu3 %vm133_vm0, %v705_v58 }
 0x759   :  { %1301 = vmatpush.msra.mxu2 %v3514_v6  ;;  %1321 = vmatpush.msra.mxu3 %v3633_v34 }
 0x75b   :  { %1302 = vmatpush.msra.mxu2 %v3520_v8  ;;  %1322 = vmatpush.msra.mxu3 %v3637_v35 }
 0x75d   :  { %1303 = vmatpush.msra.mxu2 %v3526_v10  ;;  %1323 = vmatpush.msra.mxu3 %v3649_v36 }
 0x75f   :  { %1304 = vmatpush.msra.mxu2 %v3532_v12  ;;  %1324 = vmatpush.msra.mxu3 %v3651_v37 }
 0x761   :  { %1305 = vmatpush.msra.mxu2 %v3546_v16  ;;  %1325 = vmatpush.msra.mxu3 %v3662_v40 }
 0x763   :  { %1306 = vmatpush.msra.mxu2 %v3559_v19  ;;  %1326 = vmatpush.msra.mxu3 %v3668_v41 }
 0x765   :  { %1307 = vmatpush.msra.mxu2 %v3566_v21  ;;  %1327 = vmatpush.msra.mxu3 %v3677_v42 }
 0x767   :  { %1308 = vmatpush.msra.mxu2 %v3581_v25  ;;  %1328 = vmatpush.msra.mxu3 %v3679_v43 }
 0x7db   :  { %v726_v6 = vpop.f32.mrf.mxu2  ;;  %v746_v8 = vpop.f32.mrf.mxu3 }
 0x7dc   :  { %v751_v10 = vadd.f32 %v726_v6, %v3727_v48  ;;  %v754_v12 = vadd.f32 %v746_v8, %v3750_v17 }
 0x7de   :  { %3132 = vtanh.f32 %v751_v10  ;;  %v2979_v21 = vmul.f32 -1.442695, %v751_v10  ;;  %v2980_v34 = vmul.f32 -1.442695, %v754_v12 }
 0x7df   :  { %3134 = vtanh.f32 %v754_v12 }
 0x7e0   :  { %3136 = vpow2.f32 %v2979_v21 }
 0x7e1   :  { %3138 = vpow2.f32 %v2980_v34 }
 0x7e4   :  { %v3133_v16 = vpop.eup %3132 }
 0x7e5   :  { %v3135_v19 = vpop.eup %3134  ;;  %802 = vrot.lane.b32.xlu0 %v3133_v16, %s3423_s2 }
 0x7e6   :  { %813 = vrot.lane.b32.xlu1 %v3135_v19, %s3423_s2  ;;  %v3137_v25 = vpop.eup %3136 }
 0x7e7   :  { %v3139_v35 = vpop.eup %3138  ;;  %v758_v36 = vadd.f32 1.0, %v3137_v25 }
 0x7e8   :  { %v778_v37 = vadd.f32 1.0, %v3139_v35 }
 0x7e9   :  { %3140 = vrcp.f32 %v758_v36  ;;  %v770_v1 = vand.u32 2147483648, %v758_v36  ;;  %vm764_vm1 = vweird.f32 %v758_v36  ;;  %v768_v5 = vand.u32 2147483647, %v758_v36 }
 0x7ea   :  { %3142 = vrcp.f32 %v778_v37  ;;  %v790_v4 = vand.u32 2147483648, %v778_v37  ;;  %vm784_vm2 = vweird.f32 %v778_v37  ;;  %v788_v9 = vand.u32 2147483647, %v778_v37 }
 0x7eb   :  { %v771_v18 = vor.u32 1.1754944e-38, %v770_v1  ;;  %vm769_vm5 = vcmp.eq.f32.partialorder %v768_v5, 8.507059e+37 }
 0x7ec   :  { %v791_v22 = vor.u32 1.1754944e-38, %v790_v4  ;;  %vm789_vm6 = vcmp.eq.f32.partialorder %v788_v9, 8.507059e+37 }
 0x7ef   :  { %v3141_v40 = vpop.eup %3140 }
 0x7f0   :  { %v3143_v41 = vpop.eup %3142  ;;  %v760_v42 = vmul.f32 %v3141_v40, %v758_v36  ;;  %vm765_vm14 = vweird.f32 %v3141_v40 }
 0x7f1   :  { %v780_v43 = vmul.f32 %v3143_v41, %v778_v37  ;;  %vm785_vm15 = vweird.f32 %v3143_v41  ;;  %vm766_vm3 = vmor %vm764_vm1, %vm765_vm14 }
 0x7f2   :  { %v761_v48 = vsub.f32 1.0, %v760_v42  ;;  %vm786_vm4 = vmor %vm784_vm2, %vm785_vm15 }
 0x7f3   :  { %v781_v17 = vsub.f32 1.0, %v780_v43 }
 0x7f4   :  { %v762_v60 = vmul.f32 %v3141_v40, %v761_v48 }
 0x7f5   :  { %v782_v61 = vmul.f32 %v3143_v41, %v781_v17 }
 0x7f6   :  { %v763_v62 = vadd.f32 %v3141_v40, %v762_v60 }
 0x7f7   :  { %v783_v63 = vadd.f32 %v3143_v41, %v782_v61 }
 0x7f8   :  { %v767_v13 = vsel %vm766_vm3, %v3141_v40, %v763_v62 }
 0x7f9   :  { %v787_v15 = vsel %vm786_vm4, %v3143_v41, %v783_v63  ;;  %v772_v53 = vsel %vm769_vm5, %v771_v18, %v767_v13 }
 0x7fa   :  { %v792_v23 = vsel %vm789_vm6, %v791_v22, %v787_v15  ;;  %v800_v30 = vmul.f32 %v798_v29, %v772_v53 }
 0x7fb   :  { %v811_v31 = vmul.f32 %v3847_v26, %v792_v23 }
 0x857   :  { %v803_v50 = vpop.permute.xlu0 %802 }
 0x858   :  { %v814_v24 = vpop.permute.xlu1 %813  ;;  %v805_v27 = vmul.f32 %v803_v50, %v772_v53 }
 0x859   :  { %v816_v28 = vmul.f32 %v814_v24, %v792_v23 }
 0x85a   :  { %807 = vrot.lane.b32.xlu0 %v805_v27, %s3422_s15 }
 0x85b   :  { %818 = vrot.lane.b32.xlu1 %v816_v28, %s3422_s15 }
 0x8cc   :  { %v808_v32 = vpop.permute.xlu0 %807 }
 0x8cd   :  { %v819_v33 = vpop.permute.xlu1 %818  ;;  %v810_v38 = vadd.f32 %v808_v32, %v800_v30 }
 0x8ce   :  { %v821_v44 = vadd.f32 %v819_v33, %v811_v31 }
 0x8cf   :  { %3144 = vtanh.f32 %v810_v38 }
 0x8d0   :  { %3146 = vtanh.f32 %v821_v44 }
 0x8d5   :  { %v3145_v45 = vpop.eup %3144 }
 0x8d6   :  { %v3147_v46 = vpop.eup %3146  ;;  %824 = vrot.lane.b32.xlu2 %v3145_v45, %s3423_s2 }
 0x8d7   :  { %830 = vrot.lane.b32.xlu0 %v3147_v46, %s3423_s2 }
 0x8df   :  { %835 = vrot.lane.b32.xlu0 %v810_v38, %s3424_s17 }
 0x930   :  { %v825_v47 = vpop.permute.xlu2 %824 }
 0x931   :  { %v827_v49 = vmul.f32 %v825_v47, %v772_v53 }
 0x933   :  { %841 = vrot.lane.b32.xlu1 %v827_v49, %s3422_s15 }
 0x949   :  { %v831_v51 = vpop.permute.xlu0 %830 }
 0x94a   :  { %v833_v39 = vmul.f32 %v831_v51, %v792_v23 }
 0x94c   :  { %846 = vrot.lane.b32.xlu2 %v833_v39, %s3423_s2 }
 0x951   :  { %v836_v54 = vpop.permute.xlu0 %835 }
 0x952   :  { %838 = vst.msk [vmem:[#allocation5] sm:$0xff] %vm390_vm9, %v836_v54 }
 0x953   :  { %839 = vst.msk [vmem:[#allocation5] sm:$0xff] %vm392_vm10, %v821_v44 }
 0x95a   :  { %v3887_v56 = vld [vmem:[#allocation5] sm:$0xff] }
 0x95b   :  { %944 = vrot.lane.b32.xlu0 %v3887_v56, %s3422_s15 }
 0x9a5   :  { %v842_v26 = vpop.permute.xlu1 %841 }
 0x9a6   :  { %844 = vst.msk [vmem:[#allocation4] sm:$0xff] %vm390_vm9, %v842_v26  ;;  %v847_v20 = vpop.permute.xlu2 %846 }
 0x9a7   :  { %851 = vst.msk [vmem:[#allocation3 + $0x18] sm:$0xff] %vm390_vm9, %v842_v26 }
 0x9a8   :  { %849 = vst.msk [vmem:[#allocation4] sm:$0xff] %vm392_vm10, %v847_v20 }
 0x9a9   :  { %853 = vst.msk [vmem:[#allocation3 + $0x20] sm:$0xff] %vm392_vm10, %v847_v20 }
 0x9af   :  { %v854_v55 = vld [vmem:[#allocation4] sm:$0xff] }
 0x9b0   :  { %2981 = vmatmul.msk.f32.vlgmr.msra.gmra.mxu0 %vm133_vm0, %v854_v55  ;;  %2982 = vmatmul.msk.f32.vlgmr.msra.gmra.mxu1 %vm133_vm0, %v854_v55 }
 0x9cd   :  { %v945_v30 = vpop.permute.xlu0 %944 }
 0xa2d   :  { %v875_v58 = vpop.f32.mrf.mxu0  ;;  %v895_v6 = vpop.f32.mrf.mxu1 }
 0xa2e   :  { %v899_v8 = vadd.f32 %v875_v58, %v3731_v52  ;;  %v901_v10 = vadd.f32 %v895_v6, %v3748_v14 }
 0xa30   :  { %3148 = vtanh.f32 %v899_v8  ;;  %v2984_v19 = vmul.f32 -1.442695, %v901_v10  ;;  %v2983_v35 = vmul.f32 -1.442695, %v899_v8 }
 0xa31   :  { %3150 = vtanh.f32 %v901_v10 }
 0xa32   :  { %3152 = vpow2.f32 %v2984_v19 }
 0xa36   :  { %v3149_v12 = vpop.eup %3148 }
 0xa37   :  { %v3151_v16 = vpop.eup %3150  ;;  %949 = vrot.lane.b32.xlu1 %v3149_v12, %s3423_s2 }
 0xa38   :  { %960 = vrot.lane.b32.xlu2 %v3151_v16, %s3423_s2  ;;  %v3153_v21 = vpop.eup %3152 }
 0xa39   :  { %v925_v34 = vadd.f32 1.0, %v3153_v21 }
 0xa3b   :  { %3154 = vrcp.f32 %v925_v34  ;;  %v937_v42 = vand.u32 2147483648, %v925_v34  ;;  %vm931_vm8 = vweird.f32 %v925_v34  ;;  %v935_v43 = vand.u32 2147483647, %v925_v34 }
 0xa3c   :  { %3156 = vpow2.f32 %v2983_v35 }
 0xa3d   :  { %v938_v17 = vor.u32 1.1754944e-38, %v937_v42  ;;  %vm936_vm12 = vcmp.eq.f32.partialorder %v935_v43, 8.507059e+37 }
 0xa41   :  { %v3155_v25 = vpop.eup %3154 }
 0xa42   :  { %v927_v36 = vmul.f32 %v3155_v25, %v925_v34  ;;  %v3157_v37 = vpop.eup %3156  ;;  %vm932_vm7 = vweird.f32 %v3155_v25 }
 0xa43   :  { %v905_v40 = vadd.f32 1.0, %v3157_v37  ;;  %vm933_vm11 = vmor %vm931_vm8, %vm932_vm7 }
 0xa44   :  { %v928_v52 = vsub.f32 1.0, %v927_v36 }
 0xa45   :  { %3158 = vrcp.f32 %v905_v40  ;;  %v917_v13 = vand.u32 2147483648, %v905_v40  ;;  %vm911_vm14 = vweird.f32 %v905_v40  ;;  %v915_v15 = vand.u32 2147483647, %v905_v40 }
 0xa46   :  { %v929_v14 = vmul.f32 %v3155_v25, %v928_v52 }
 0xa47   :  { %v918_v22 = vor.u32 1.1754944e-38, %v917_v13  ;;  %vm916_vm1 = vcmp.eq.f32.partialorder %v915_v15, 8.507059e+37 }
 0xa48   :  { %v930_v41 = vadd.f32 %v3155_v25, %v929_v14 }
 0xa4a   :  { %v934_v48 = vsel %vm933_vm11, %v3155_v25, %v930_v41 }
 0xa4b   :  { %v939_v61 = vsel %vm936_vm12, %v938_v17, %v934_v48  ;;  %v3159_v62 = vpop.eup %3158 }
 0xa4c   :  { %v907_v1 = vmul.f32 %v3159_v62, %v905_v40  ;;  %vm912_vm13 = vweird.f32 %v3159_v62  ;;  %v958_v23 = vmul.f32 %v3887_v56, %v939_v61 }
 0xa4d   :  { %vm913_vm15 = vmor %vm911_vm14, %vm912_vm13 }
 0xa4e   :  { %v908_v4 = vsub.f32 1.0, %v907_v1 }
 0xa50   :  { %v909_v5 = vmul.f32 %v3159_v62, %v908_v4 }
 0xa52   :  { %v910_v9 = vadd.f32 %v3159_v62, %v909_v5 }
 0xa54   :  { %v914_v18 = vsel %vm913_vm15, %v3159_v62, %v910_v9 }
 0xa55   :  { %v919_v53 = vsel %vm916_vm1, %v918_v22, %v914_v18 }
 0xa56   :  { %v947_v31 = vmul.f32 %v945_v30, %v919_v53 }
 0xa92   :  { %v961_v60 = vpop.permute.xlu2 %960 }
 0xa93   :  { %v963_v63 = vmul.f32 %v961_v60, %v939_v61 }
 0xa95   :  { %965 = vrot.lane.b32.xlu2 %v963_v63, %s3422_s15 }
 0xaa9   :  { %v950_v50 = vpop.permute.xlu1 %949 }
 0xaaa   :  { %v952_v24 = vmul.f32 %v950_v50, %v919_v53 }
 0xaac   :  { %954 = vrot.lane.b32.xlu1 %v952_v24, %s3422_s15 }
 0xaef   :  { %v966_v27 = vpop.permute.xlu2 %965 }
 0xaf0   :  { %v968_v28 = vadd.f32 %v966_v27, %v958_v23 }
 0xaf2   :  { %3160 = vtanh.f32 %v968_v28 }
 0xaf8   :  { %v3161_v29 = vpop.eup %3160 }
 0xaf9   :  { %977 = vrot.lane.b32.xlu1 %v3161_v29, %s3423_s2 }
 0xb1e   :  { %v955_v32 = vpop.permute.xlu1 %954 }
 0xb1f   :  { %v957_v33 = vadd.f32 %v955_v32, %v947_v31 }
 0xb21   :  { %3162 = vtanh.f32 %v957_v33  ;;  %982 = vrot.lane.b32.xlu1 %v957_v33, %s3424_s17 }
 0xb27   :  { %v3163_v38 = vpop.eup %3162 }
 0xb28   :  { %971 = vrot.lane.b32.xlu0 %v3163_v38, %s3423_s2 }
 0xb6b   :  { %v978_v44 = vpop.permute.xlu1 %977 }
 0xb6c   :  { %v980_v45 = vmul.f32 %v978_v44, %v939_v61 }
 0xb6e   :  { %993 = vrot.lane.b32.xlu0 %v980_v45, %s3423_s2 }
 0xb93   :  { %v983_v46 = vpop.permute.xlu1 %982 }
 0xb94   :  { %985 = vst.msk [vmem:[#allocation5] sm:$0xff] %vm390_vm9, %v983_v46 }
 0xb95   :  { %986 = vst.msk [vmem:[#allocation5] sm:$0xff] %vm392_vm10, %v968_v28 }
 0xb9a   :  { %v972_v47 = vpop.permute.xlu0 %971 }
 0xb9b   :  { %v974_v49 = vmul.f32 %v972_v47, %v919_v53 }
 0xb9c   :  { %v3910_v51 = vld [vmem:[#allocation5] sm:$0xff] }
 0xb9d   :  { %1089 = vrot.lane.b32.xlu1 %v3910_v51, %s3422_s15  ;;  %988 = vrot.lane.b32.xlu2 %v974_v49, %s3422_s15 }
 0xbe0   :  { %v994_v39 = vpop.permute.xlu0 %993 }
 0xbe1   :  { %998 = vst.msk [vmem:[#allocation3 + $0x18] sm:$0xff] %vm392_vm10, %v994_v39 }
 0xbf7   :  { %v989_v54 = vpop.permute.xlu2 %988 }
 0xbf8   :  { %991 = vst.msk [vmem:[#allocation4] sm:$0xff] %vm390_vm9, %v989_v54 }
 0xbf9   :  { %996 = vst.msk [vmem:[#allocation4] sm:$0xff] %vm392_vm10, %v994_v39 }
 0xbfa   :  { %997 = vst.msk [vmem:[#allocation3 + $0x20] sm:$0xff] %vm390_vm9, %v989_v54 }
 0xc00   :  { %v999_v56 = vld [vmem:[#allocation4] sm:$0xff] }
 0xc01   :  { %2985 = vmatmul.msk.f32.vlgmr.msrb.gmra.mxu2 %vm133_vm0, %v999_v56  ;;  %2986 = vmatmul.msk.f32.vlgmr.msrb.gmra.mxu3 %vm133_vm0, %v999_v56 }
 0xc0f   :  { %v1090_v18 = vpop.permute.xlu1 %1089 }
 0xc84   :  { %v1020_v26 = vpop.f32.mrf.mxu2  ;;  %v1040_v20 = vpop.f32.mrf.mxu3 }
 0xc85   :  { %v1044_v55 = vadd.f32 %v1020_v26, %v3735_v57  ;;  %v1046_v58 = vadd.f32 %v1040_v20, %v3744_v7 }
 0xc87   :  { %3164 = vtanh.f32 %v1044_v55  ;;  %v2987_v10 = vmul.f32 -1.442695, %v1044_v55  ;;  %v2988_v21 = vmul.f32 -1.442695, %v1046_v58 }
 0xc88   :  { %3166 = vtanh.f32 %v1046_v58 }
 0xc89   :  { %3168 = vpow2.f32 %v2987_v10 }
 0xc8d   :  { %v3165_v6 = vpop.eup %3164 }
 0xc8e   :  { %v3167_v8 = vpop.eup %3166  ;;  %1094 = vrot.lane.b32.xlu2 %v3165_v6, %s3423_s2 }
 0xc8f   :  { %1105 = vrot.lane.b32.xlu0 %v3167_v8, %s3423_s2  ;;  %v3169_v12 = vpop.eup %3168 }
 0xc90   :  { %v1050_v16 = vadd.f32 1.0, %v3169_v12 }
 0xc92   :  { %3170 = vrcp.f32 %v1050_v16  ;;  %v1062_v52 = vand.u32 2147483648, %v1050_v16  ;;  %vm1056_vm3 = vweird.f32 %v1050_v16  ;;  %v1060_v37 = vand.u32 2147483647, %v1050_v16 }
 0xc93   :  { %3172 = vpow2.f32 %v2988_v21 }
 0xc94   :  { %v1063_v40 = vor.u32 1.1754944e-38, %v1062_v52  ;;  %vm1061_vm5 = vcmp.eq.f32.partialorder %v1060_v37, 8.507059e+37 }
 0xc98   :  { %v3171_v19 = vpop.eup %3170 }
 0xc99   :  { %v1052_v34 = vmul.f32 %v3171_v19, %v1050_v16  ;;  %v3173_v7 = vpop.eup %3172  ;;  %vm1057_vm2 = vweird.f32 %v3171_v19 }
 0xc9a   :  { %v1070_v35 = vadd.f32 1.0, %v3173_v7  ;;  %vm1058_vm4 = vmor %vm1056_vm3, %vm1057_vm2 }
 0xc9b   :  { %v1053_v57 = vsub.f32 1.0, %v1052_v34 }
 0xc9c   :  { %3174 = vrcp.f32 %v1070_v35  ;;  %v1082_v63 = vand.u32 2147483648, %v1070_v35  ;;  %vm1076_vm7 = vweird.f32 %v1070_v35  ;;  %v1080_v1 = vand.u32 2147483647, %v1070_v35 }
 0xc9d   :  { %v1054_v25 = vmul.f32 %v3171_v19, %v1053_v57 }
 0xc9e   :  { %v1083_v5 = vor.u32 1.1754944e-38, %v1082_v63  ;;  %vm1081_vm11 = vcmp.eq.f32.partialorder %v1080_v1, 8.507059e+37 }
 0xc9f   :  { %v1055_v36 = vadd.f32 %v3171_v19, %v1054_v25 }
 0xca1   :  { %v1059_v14 = vsel %vm1058_vm4, %v3171_v19, %v1055_v36 }
 0xca2   :  { %v1064_v42 = vsel %vm1061_vm5, %v1063_v40, %v1059_v14  ;;  %v3175_v48 = vpop.eup %3174 }
 0xca3   :  { %v1072_v17 = vmul.f32 %v3175_v48, %v1070_v35  ;;  %vm1077_vm6 = vweird.f32 %v3175_v48  ;;  %v1092_v22 = vmul.f32 %v1090_v18, %v1064_v42 }
 0xca4   :  { %vm1078_vm8 = vmor %vm1076_vm7, %vm1077_vm6 }
 0xca5   :  { %v1073_v60 = vsub.f32 1.0, %v1072_v17 }
 0xca7   :  { %v1074_v61 = vmul.f32 %v3175_v48, %v1073_v60 }
 0xca9   :  { %v1075_v62 = vadd.f32 %v3175_v48, %v1074_v61 }
 0xcab   :  { %v1079_v4 = vsel %vm1078_vm8, %v3175_v48, %v1075_v62 }
 0xcac   :  { %v1084_v13 = vsel %vm1081_vm11, %v1083_v5, %v1079_v4 }
 0xcad   :  { %v1103_v23 = vmul.f32 %v3910_v51, %v1084_v13 }
 0xce8   :  { %v1095_v41 = vpop.permute.xlu2 %1094 }
 0xce9   :  { %v1097_v43 = vmul.f32 %v1095_v41, %v1064_v42 }
 0xceb   :  { %1099 = vrot.lane.b32.xlu2 %v1097_v43, %s3422_s15 }
 0xd01   :  { %v1106_v9 = vpop.permute.xlu0 %1105 }
 0xd02   :  { %v1108_v15 = vmul.f32 %v1106_v9, %v1084_v13 }
 0xd04   :  { %1110 = vrot.lane.b32.xlu0 %v1108_v15, %s3422_s15 }
 0xd45   :  { %v1100_v50 = vpop.permute.xlu2 %1099 }
 0xd46   :  { %v1102_v53 = vadd.f32 %v1100_v50, %v1092_v22 }
 0xd48   :  { %3176 = vtanh.f32 %v1102_v53 }
 0xd4e   :  { %v3177_v24 = vpop.eup %3176 }
 0xd4f   :  { %1116 = vrot.lane.b32.xlu1 %v3177_v24, %s3423_s2 }
 0xd76   :  { %v1111_v27 = vpop.permute.xlu0 %1110 }
 0xd77   :  { %v1113_v28 = vadd.f32 %v1111_v27, %v1103_v23 }
 0xd79   :  { %3178 = vtanh.f32 %v1113_v28 }
 0xd7f   :  { %v3179_v29 = vpop.eup %3178 }
 0xd80   :  { %1122 = vrot.lane.b32.xlu2 %v3179_v29, %s3423_s2 }
 0xd88   :  { %1127 = vrot.lane.b32.xlu2 %v1102_v53, %s3424_s17 }
 0xdc1   :  { %v1117_v30 = vpop.permute.xlu1 %1116 }
 0xdc2   :  { %v1119_v31 = vmul.f32 %v1117_v30, %v1064_v42 }
 0xdc4   :  { %1133 = vrot.lane.b32.xlu0 %v1119_v31, %s3422_s15 }
 0xdda   :  { %v1123_v32 = vpop.permute.xlu2 %1122 }
 0xddb   :  { %v1125_v33 = vmul.f32 %v1123_v32, %v1084_v13 }
 0xddd   :  { %1138 = vrot.lane.b32.xlu1 %v1125_v33, %s3423_s2 }
 0xde2   :  { %v1128_v38 = vpop.permute.xlu2 %1127 }
 0xde3   :  { %1130 = vst.msk [vmem:[#allocation5] sm:$0xff] %vm390_vm9, %v1128_v38 }
 0xde4   :  { %1131 = vst.msk [vmem:[#allocation5] sm:$0xff] %vm392_vm10, %v1113_v28 }
 0xdeb   :  { %v3935_v44 = vld [vmem:[#allocation5] sm:$0xff] }
 0xdec   :  { %1234 = vrot.lane.b32.xlu2 %v3935_v44, %s3422_s15 }
 0xe36   :  { %v1134_v45 = vpop.permute.xlu0 %1133 }
 0xe37   :  { %1136 = vst.msk [vmem:[#allocation4] sm:$0xff] %vm390_vm9, %v1134_v45 }
 0xe38   :  { %1142 = vst.msk [vmem:[#allocation3 + $0x28] sm:$0xff] %vm390_vm9, %v1134_v45 }
 0xe46   :  { %v1235_v63 = vpop.permute.xlu2 %1234 }
 0xe4f   :  { %v1139_v46 = vpop.permute.xlu1 %1138 }
 0xe50   :  { %1141 = vst.msk [vmem:[#allocation4] sm:$0xff] %vm392_vm10, %v1139_v46 }
 0xe51   :  { %1143 = vst.msk [vmem:[#allocation3 + $0x10] sm:$0xff] %vm392_vm10, %v1139_v46 }
 0xe57   :  { %v1144_v47 = vld [vmem:[#allocation4] sm:$0xff] }
 0xe58   :  { %2989 = vmatmul.msk.f32.vlgmr.msrb.gmra.mxu0 %vm133_vm0, %v1144_v47  ;;  %2990 = vmatmul.msk.f32.vlgmr.msrb.gmra.mxu1 %vm133_vm0, %v1144_v47 }
 0xed5   :  { %v1165_v49 = vpop.f32.mrf.mxu0  ;;  %v1185_v51 = vpop.f32.mrf.mxu1 }
 0xed6   :  { %v1189_v39 = vadd.f32 %v1165_v49, %v3741_v2  ;;  %v1191_v54 = vadd.f32 %v1185_v51, %v3739_v0 }
 0xed8   :  { %3180 = vtanh.f32 %v1189_v39  ;;  %v2991_v20 = vmul.f32 -1.442695, %v1189_v39  ;;  %v2992_v55 = vmul.f32 -1.442695, %v1191_v54 }
 0xed9   :  { %3182 = vtanh.f32 %v1191_v54 }
 0xeda   :  { %3184 = vpow2.f32 %v2991_v20 }
 0xedb   :  { %3186 = vpow2.f32 %v2992_v55 }
 0xede   :  { %v3181_v56 = vpop.eup %3180 }
 0xedf   :  { %v3183_v26 = vpop.eup %3182  ;;  %1239 = vrot.lane.b32.xlu0 %v3181_v56, %s3423_s2 }
 0xee0   :  { %1250 = vrot.lane.b32.xlu1 %v3183_v26, %s3423_s2  ;;  %v3185_v58 = vpop.eup %3184 }
 0xee1   :  { %v3187_v6 = vpop.eup %3186  ;;  %v1195_v8 = vadd.f32 1.0, %v3185_v58 }
 0xee2   :  { %v1215_v10 = vadd.f32 1.0, %v3187_v6 }
 0xee3   :  { %3188 = vrcp.f32 %v1195_v8  ;;  %v1207_v35 = vand.u32 2147483648, %v1195_v8  ;;  %vm1201_vm14 = vweird.f32 %v1195_v8  ;;  %v1205_v52 = vand.u32 2147483647, %v1195_v8 }
 0xee4   :  { %3190 = vrcp.f32 %v1215_v10  ;;  %v1227_v36 = vand.u32 2147483648, %v1215_v10  ;;  %vm1221_vm15 = vweird.f32 %v1215_v10  ;;  %v1225_v37 = vand.u32 2147483647, %v1215_v10 }
 0xee5   :  { %v1208_v41 = vor.u32 1.1754944e-38, %v1207_v35  ;;  %vm1206_vm3 = vcmp.eq.f32.partialorder %v1205_v52, 8.507059e+37 }
 0xee6   :  { %v1228_v42 = vor.u32 1.1754944e-38, %v1227_v36  ;;  %vm1226_vm4 = vcmp.eq.f32.partialorder %v1225_v37, 8.507059e+37 }
 0xee9   :  { %v3189_v2 = vpop.eup %3188 }
 0xeea   :  { %v3191_v0 = vpop.eup %3190  ;;  %v1197_v12 = vmul.f32 %v3189_v2, %v1195_v8  ;;  %vm1202_vm12 = vweird.f32 %v3189_v2 }
 0xeeb   :  { %v1217_v16 = vmul.f32 %v3191_v0, %v1215_v10  ;;  %vm1222_vm13 = vweird.f32 %v3191_v0  ;;  %vm1203_vm1 = vmor %vm1201_vm14, %vm1202_vm12 }
 0xeec   :  { %v1198_v19 = vsub.f32 1.0, %v1197_v12  ;;  %vm1223_vm2 = vmor %vm1221_vm15, %vm1222_vm13 }
 0xeed   :  { %v1218_v21 = vsub.f32 1.0, %v1217_v16 }
 0xeee   :  { %v1199_v34 = vmul.f32 %v3189_v2, %v1198_v19 }
 0xeef   :  { %v1219_v57 = vmul.f32 %v3191_v0, %v1218_v21 }
 0xef0   :  { %v1200_v25 = vadd.f32 %v3189_v2, %v1199_v34 }
 0xef1   :  { %v1220_v7 = vadd.f32 %v3191_v0, %v1219_v57 }
 0xef2   :  { %v1204_v14 = vsel %vm1203_vm1, %v3189_v2, %v1200_v25 }
 0xef3   :  { %v1224_v40 = vsel %vm1223_vm2, %v3191_v0, %v1220_v7  ;;  %v1209_v48 = vsel %vm1206_vm3, %v1208_v41, %v1204_v14 }
 0xef4   :  { %v1229_v60 = vsel %vm1226_vm4, %v1228_v42, %v1224_v40  ;;  %v1237_v1 = vmul.f32 %v1235_v63, %v1209_v48 }
 0xef5   :  { %v1248_v4 = vmul.f32 %v3935_v44, %v1229_v60 }
 0xf51   :  { %v1240_v43 = vpop.permute.xlu0 %1239 }
 0xf52   :  { %v1251_v17 = vpop.permute.xlu1 %1250  ;;  %v1242_v61 = vmul.f32 %v1240_v43, %v1209_v48 }
 0xf53   :  { %v1253_v62 = vmul.f32 %v1251_v17, %v1229_v60 }
 0xf54   :  { %1244 = vrot.lane.b32.xlu0 %v1242_v61, %s3422_s15 }
 0xf55   :  { %1255 = vrot.lane.b32.xlu1 %v1253_v62, %s3422_s15 }
 0xfc6   :  { %v1245_v5 = vpop.permute.xlu0 %1244 }
 0xfc7   :  { %v1256_v9 = vpop.permute.xlu1 %1255  ;;  %v1247_v13 = vadd.f32 %v1245_v5, %v1237_v1  ;;  %v1457_v5 = vld [vmem:[#allocation9 + $0x78] sm:$0xff] }
 0xfc8   :  { %v1258_v15 = vadd.f32 %v1256_v9, %v1248_v4  ;;  %v1456_v4 = vld [vmem:[#allocation9 + $0x70] sm:$0xff]  ;;  %v1454_v9 = vld [vmem:[#allocation9 + $0x60] sm:$0xff]  ;;  %1553 = vmatpush.msra.mxu1 %v1457_v5 }
 0xfc9   :  { %3192 = vtanh.f32 %v1247_v13  ;;  %1512 = vmatpush.msra.mxu0 %v1456_v4 }
 0xfca   :  { %3194 = vtanh.f32 %v1258_v15 }
 0xfcb   :  { %1513 = vmatpush.msra.mxu0 %v1454_v9 }
 0xfcf   :  { %v3193_v18 = vpop.eup %3192 }
 0xfd0   :  { %v3195_v22 = vpop.eup %3194  ;;  %1261 = vrot.lane.b32.xlu2 %v3193_v18, %s3423_s2  ;;  %v1453_v18 = vld [vmem:[#allocation9 + $0x58] sm:$0xff] }
 0xfd1   :  { %1267 = vrot.lane.b32.xlu0 %v3195_v22, %s3423_s2  ;;  %v1450_v22 = vld [vmem:[#allocation9 + $0x40] sm:$0xff] }
0x102a   :  { %v1262_v50 = vpop.permute.xlu2 %1261 }
0x102b   :  { %v1264_v53 = vmul.f32 %v1262_v50, %v1209_v48  ;;  %v1451_v50 = vld [vmem:[#allocation9 + $0x48] sm:$0xff] }
0x102d   :  { %1278 = vrot.lane.b32.xlu1 %v1264_v53, %s3422_s15 }
0x1035   :  { %1272 = vrot.lane.b32.xlu1 %v1247_v13, %s3424_s17  ;;  %v1455_v13 = vld [vmem:[#allocation9 + $0x68] sm:$0xff] }
0x1036   :  { %1554 = vmatpush.msra.mxu1 %v1455_v13 }
0x1038   :  { %1555 = vmatpush.msra.mxu1 %v1453_v18 }
0x103a   :  { %1556 = vmatpush.msra.mxu1 %v1451_v50 }
0x1043   :  { %v1268_v24 = vpop.permute.xlu0 %1267 }
0x1044   :  { %v1270_v23 = vmul.f32 %v1268_v24, %v1229_v60 }
0x1046   :  { %1283 = vrot.lane.b32.xlu2 %v1270_v23, %s3423_s2  ;;  %v1448_v23 = vld [vmem:[#allocation9 + $0x30] sm:$0xff] }
0x109f   :  { %v1279_v27 = vpop.permute.xlu1 %1278 }
0x10a0   :  { %1281 = vst.msk [vmem:[#allocation4] sm:$0xff] %vm390_vm9, %v1279_v27  ;;  %v1284_v28 = vpop.permute.xlu2 %1283 }
0x10a1   :  { %1287 = vst.msk [vmem:[#allocation3 + $0x30] sm:$0xff] %vm390_vm9, %v1279_v27  ;;  %v1449_v27 = vld [vmem:[#allocation9 + $0x38] sm:$0xff] }
0x10a2   :  { %1286 = vst.msk [vmem:[#allocation4] sm:$0xff] %vm392_vm10, %v1284_v28  ;;  %1557 = vmatpush.msra.mxu1 %v1449_v27 }
0x10a3   :  { %1288 = vst.msk [vmem:[#allocation3 + $0x8] sm:$0xff] %vm392_vm10, %v1284_v28  ;;  %v1446_v28 = vld [vmem:[#allocation9 + $0x20] sm:$0xff] }
0x10a7   :  { %v1273_v29 = vpop.permute.xlu1 %1272 }
0x10a8   :  { %1275 = vst.msk [vmem:[#allocation5] sm:$0xff] %vm390_vm9, %v1273_v29  ;;  %v1447_v29 = vld [vmem:[#allocation9 + $0x28] sm:$0xff] }
0x10a9   :  { %1276 = vst.msk [vmem:[#allocation5] sm:$0xff] %vm392_vm10, %v1258_v15  ;;  %v1289_v30 = vld [vmem:[#allocation4] sm:$0xff]  ;;  %1558 = vmatpush.msra.mxu1 %v1447_v29 }
0x10aa   :  { %2993 = vmatmul.msk.f32.vlgmr.msra.gmra.mxu2 %vm133_vm0, %v1289_v30  ;;  %2994 = vmatmul.msk.f32.vlgmr.msra.gmra.mxu3 %vm133_vm0, %v1289_v30  ;;  %v1452_v15 = vld [vmem:[#allocation9 + $0x50] sm:$0xff] }
0x10ab   :  { %1514 = vmatpush.msra.mxu0 %v1452_v15  ;;  %v1444_v30 = vld [vmem:[#allocation9 + $0x10] sm:$0xff] }
0x10ad   :  { %1515 = vmatpush.msra.mxu0 %v1450_v22 }
0x10af   :  { %1516 = vmatpush.msra.mxu0 %v1448_v23 }
0x10b0   :  { %v1377_v31 = vld [vmem:[#allocation5] sm:$0xff] }
0x10b1   :  { %1379 = vrot.lane.b32.xlu1 %v1377_v31, %s3422_s15  ;;  %1517 = vmatpush.msra.mxu0 %v1446_v28 }
0x10b3   :  { %1518 = vmatpush.msra.mxu0 %v1444_v30 }
0x1123   :  { %v1380_v48 = vpop.permute.xlu1 %1379 }
0x112d   :  { %v1330_v32 = vpop.f32.mrf.mxu3  ;;  %v1310_v38 = vpop.f32.mrf.mxu2 }
0x112e   :  { %v1336_v33 = vadd.f32 %v1330_v32, %v3737_v59  ;;  %v1334_v44 = vadd.f32 %v1310_v38, %v3746_v11  ;;  %v1442_v32 = vld [vmem:[#allocation9] sm:$0xff]  ;;  %v3980_v38 = vld [vmem:[#allocation11 + $0x70] sm:$0xff] }
0x112f   :  { %1519 = vmatpush.msra.mxu0 %v1442_v32  ;;  %1616 = vmatpush.msrb.mxu2 %v3980_v38 }
0x1130   :  { %3196 = vtanh.f32 %v1336_v33  ;;  %v2996_v47 = vmul.f32 -1.442695, %v1336_v33  ;;  %v2995_v49 = vmul.f32 -1.442695, %v1334_v44  ;;  %v1443_v33 = vld [vmem:[#allocation9 + $0x8] sm:$0xff] }
0x1131   :  { %3198 = vtanh.f32 %v1334_v44  ;;  %v3982_v44 = vld [vmem:[#allocation11 + $0x60] sm:$0xff]  ;;  %2196 = vmatpush.msrb.mxu0 %v3980_v38 }
0x1132   :  { %3200 = vpow2.f32 %v2996_v47  ;;  %1617 = vmatpush.msrb.mxu2 %v3982_v44  ;;  %v3996_v47 = vld [vmem:[#allocation11 + $0x40] sm:$0xff] }
0x1133   :  { %3202 = vpow2.f32 %v2995_v49  ;;  %2197 = vmatpush.msrb.mxu0 %v3982_v44  ;;  %v3999_v49 = vld [vmem:[#allocation11 + $0x30] sm:$0xff] }
0x1136   :  { %v3197_v45 = vpop.eup %3196 }
0x1137   :  { %1395 = vrot.lane.b32.xlu0 %v3197_v45, %s3423_s2  ;;  %v3199_v46 = vpop.eup %3198  ;;  %v3986_v45 = vld [vmem:[#allocation11 + $0x50] sm:$0xff] }
0x1138   :  { %v3201_v51 = vpop.eup %3200  ;;  %1618 = vmatpush.msrb.mxu2 %v3986_v45  ;;  %2198 = vmatpush.msrb.mxu0 %v3986_v45 }
0x1139   :  { %v1360_v39 = vadd.f32 1.0, %v3201_v51  ;;  %v3203_v54 = vpop.eup %3202  ;;  %v4002_v51 = vld [vmem:[#allocation11 + $0x20] sm:$0xff] }
0x113a   :  { %v1340_v59 = vadd.f32 1.0, %v3203_v54  ;;  %1619 = vmatpush.msrb.mxu2 %v3996_v47  ;;  %2199 = vmatpush.msrb.mxu0 %v3996_v47 }
0x113b   :  { %3204 = vrcp.f32 %v1360_v39  ;;  %v1372_v10 = vand.u32 2147483648, %v1360_v39  ;;  %vm1366_vm6 = vweird.f32 %v1360_v39  ;;  %v1370_v2 = vand.u32 2147483647, %v1360_v39 }
0x113c   :  { %3206 = vrcp.f32 %v1340_v59  ;;  %v1352_v25 = vand.u32 2147483648, %v1340_v59  ;;  %vm1346_vm12 = vweird.f32 %v1340_v59  ;;  %v1350_v7 = vand.u32 2147483647, %v1340_v59  ;;  %1620 = vmatpush.msrb.mxu2 %v3999_v49  ;;  %2200 = vmatpush.msrb.mxu0 %v3999_v49 }
0x113d   :  { %v1373_v16 = vor.u32 1.1754944e-38, %v1372_v10  ;;  %vm1371_vm8 = vcmp.eq.f32.partialorder %v1370_v2, 8.507059e+37  ;;  %v1436_v10 = vld [vmem:[#allocation3 + $0x10] sm:$0xff] }
0x113e   :  { %v1353_v36 = vor.u32 1.1754944e-38, %v1352_v25  ;;  %vm1351_vm14 = vcmp.eq.f32.partialorder %v1350_v7, 8.507059e+37  ;;  %1621 = vmatpush.msrb.mxu2 %v4002_v51  ;;  %2201 = vmatpush.msrb.mxu0 %v4002_v51  ;;  %v4061_v2 = vld [vmem:[#allocation11 + $0x18] sm:$0xff]  ;;  %v1458_v7 = vld [vmem:[%s4452_s5] sm:$0x3] }
0x113f   :  { %1384 = vrot.lane.b32.xlu0 %v3199_v46, %s3423_s2  ;;  %v4150_v4 = vperm.slane %v1458_v7, 0 }
0x1141   :  { %v3205_v56 = vpop.eup %3204 }
0x1142   :  { %v1362_v26 = vmul.f32 %v3205_v56, %v1360_v39  ;;  %v3207_v20 = vpop.eup %3206  ;;  %vm1367_vm5 = vweird.f32 %v3205_v56  ;;  %v4006_v39 = vld [vmem:[#allocation11 + $0x10] sm:$0xff] }
0x1143   :  { %v1342_v58 = vmul.f32 %v3207_v20, %v1340_v59  ;;  %vm1368_vm7 = vmor %vm1366_vm6, %vm1367_vm5  ;;  %vm1347_vm11 = vweird.f32 %v3207_v20  ;;  %1622 = vmatpush.msrb.mxu2 %v4006_v39  ;;  %2202 = vmatpush.msrb.mxu0 %v4006_v39 }
0x1144   :  { %v1363_v11 = vsub.f32 1.0, %v1362_v26  ;;  %vm1348_vm13 = vmor %vm1346_vm12, %vm1347_vm11  ;;  %v4022_v26 = vld [vmem:[#allocation11 + $0x78] sm:$0xff] }
0x1145   :  { %v1343_v8 = vsub.f32 1.0, %v1342_v58  ;;  %1636 = vmatpush.msrb.mxu3 %v4022_v26  ;;  %v4039_v58 = vld [vmem:[#allocation11 + $0x48] sm:$0xff] }
0x1146   :  { %v1364_v55 = vmul.f32 %v3205_v56, %v1363_v11  ;;  %v4024_v11 = vld [vmem:[#allocation11 + $0x68] sm:$0xff] }
0x1147   :  { %v1344_v12 = vmul.f32 %v3207_v20, %v1343_v8  ;;  %1637 = vmatpush.msrb.mxu3 %v4024_v11  ;;  %v4049_v8 = vld [vmem:[#allocation11 + $0x28] sm:$0xff] }
0x1148   :  { %v1365_v6 = vadd.f32 %v3205_v56, %v1364_v55  ;;  %v4037_v55 = vld [vmem:[#allocation11 + $0x58] sm:$0xff] }
0x1149   :  { %v1345_v57 = vadd.f32 %v3207_v20, %v1344_v12  ;;  %1638 = vmatpush.msrb.mxu3 %v4037_v55 }
0x114a   :  { %v1369_v0 = vsel %vm1368_vm7, %v3205_v56, %v1365_v6  ;;  %v4013_v56 = vld [vmem:[#allocation11] sm:$0xff]  ;;  %v4043_v6 = vld [vmem:[#allocation11 + $0x38] sm:$0xff] }
0x114b   :  { %v1374_v21 = vsel %vm1371_vm8, %v1373_v16, %v1369_v0  ;;  %v1349_v35 = vsel %vm1348_vm13, %v3207_v20, %v1345_v57  ;;  %1623 = vmatpush.msrb.mxu2 %v4013_v56  ;;  %2203 = vmatpush.msrb.mxu0 %v4013_v56  ;;  %v1435_v20 = vld [vmem:[#allocation3 + $0x8] sm:$0xff]  ;;  %v4063_v0 = vld [vmem:[#allocation11 + $0x8] sm:$0xff]  ;;  %v1440_v57 = vld [vmem:[#allocation3 + $0x30] sm:$0xff] }
0x114c   :  { %v1354_v37 = vsel %vm1351_vm14, %v1353_v36, %v1349_v35  ;;  %v1393_v40 = vmul.f32 %v1377_v31, %v1374_v21  ;;  %v1445_v31 = vld [vmem:[#allocation9 + $0x18] sm:$0xff]  ;;  %1639 = vmatpush.msrb.mxu3 %v4039_v58  ;;  %v1437_v16 = vld [vmem:[#allocation3 + $0x18] sm:$0xff]  ;;  %v1477_v35 = vperm.slane %v1458_v7, 1 }
0x114d   :  { %v1382_v17 = vmul.f32 %v1380_v48, %v1354_v37  ;;  %1559 = vmatpush.msra.mxu1 %v1445_v31  ;;  %1761 = vmatpush.msra.mxu2 %v3980_v38 }
0x114e   :  { %1640 = vmatpush.msrb.mxu3 %v4043_v6 }
0x114f   :  { %1560 = vmatpush.msra.mxu1 %v1443_v33  ;;  %1762 = vmatpush.msra.mxu2 %v3982_v44 }
0x1150   :  { %1641 = vmatpush.msrb.mxu3 %v4049_v8 }
0x1151   :  { %2216 = vmatpush.msrb.mxu1 %v4022_v26  ;;  %1763 = vmatpush.msra.mxu2 %v3986_v45 }
0x1152   :  { %1642 = vmatpush.msrb.mxu3 %v4061_v2 }
0x1153   :  { %2217 = vmatpush.msrb.mxu1 %v4024_v11  ;;  %1764 = vmatpush.msra.mxu2 %v3996_v47 }
0x1154   :  { %1643 = vmatpush.msrb.mxu3 %v4063_v0 }
0x1155   :  { %2218 = vmatpush.msrb.mxu1 %v4037_v55  ;;  %1765 = vmatpush.msra.mxu2 %v3999_v49 }
0x1156   :  { %1781 = vmatpush.msra.mxu3 %v4022_v26 }
0x1157   :  { %2219 = vmatpush.msrb.mxu1 %v4039_v58  ;;  %1766 = vmatpush.msra.mxu2 %v4002_v51 }
0x1158   :  { %1782 = vmatpush.msra.mxu3 %v4024_v11 }
0x1159   :  { %2220 = vmatpush.msrb.mxu1 %v4043_v6  ;;  %1767 = vmatpush.msra.mxu2 %v4006_v39 }
0x115a   :  { %1783 = vmatpush.msra.mxu3 %v4037_v55 }
0x115b   :  { %2221 = vmatpush.msrb.mxu1 %v4049_v8  ;;  %1768 = vmatpush.msra.mxu2 %v4013_v56 }
0x115c   :  { %1784 = vmatpush.msra.mxu3 %v4039_v58 }
0x115d   :  { %2222 = vmatpush.msrb.mxu1 %v4061_v2 }
0x115e   :  { %1785 = vmatpush.msra.mxu3 %v4043_v6 }
0x115f   :  { %2223 = vmatpush.msrb.mxu1 %v4063_v0 }
0x1160   :  { %1786 = vmatpush.msra.mxu3 %v4049_v8 }
0x1162   :  { %1787 = vmatpush.msra.mxu3 %v4061_v2 }
0x1164   :  { %1788 = vmatpush.msra.mxu3 %v4063_v0 }
0x11a9   :  { %v1396_v19 = vpop.permute.xlu0 %1395 }
0x11aa   :  { %v1398_v34 = vmul.f32 %v1396_v19, %v1374_v21 }
0x11ac   :  { %1400 = vrot.lane.b32.xlu2 %v1398_v34, %s3422_s15  ;;  %v1439_v34 = vld [vmem:[#allocation3 + $0x28] sm:$0xff] }
0x11b1   :  { %v1385_v52 = vpop.permute.xlu0 %1384 }
0x11b2   :  { %v1387_v14 = vmul.f32 %v1385_v52, %v1354_v37 }
0x11b4   :  { %1389 = vrot.lane.b32.xlu0 %v1387_v14, %s3422_s15 }
0x1206   :  { %v1401_v41 = vpop.permute.xlu2 %1400 }
0x1207   :  { %v3972_v42 = vadd.f32 %v1401_v41, %v1393_v40 }
0x1209   :  { %3208 = vtanh.f32 %v3972_v42 }
0x120f   :  { %v3209_v43 = vpop.eup %3208 }
0x1210   :  { %1412 = vrot.lane.b32.xlu2 %v3209_v43, %s3423_s2 }
0x1226   :  { %v1390_v60 = vpop.permute.xlu0 %1389 }
0x1227   :  { %v1392_v61 = vadd.f32 %v1390_v60, %v1382_v17 }
0x1229   :  { %3210 = vtanh.f32 %v1392_v61 }
0x122f   :  { %v3211_v62 = vpop.eup %3210 }
0x1230   :  { %1406 = vrot.lane.b32.xlu2 %v3211_v62, %s3423_s2 }
0x126a   :  { %v1413_v63 = vpop.permute.xlu2 %1412 }
0x126b   :  { %v1415_v1 = vmul.f32 %v1413_v63, %v1374_v21  ;;  %v1438_v21 = vld [vmem:[#allocation3 + $0x20] sm:$0xff] }
0x126d   :  { %1428 = vrot.lane.b32.xlu1 %v1415_v1, %s3423_s2 }
0x1275   :  { %1417 = vrot.lane.b32.xlu1 %v1392_v61, %s3424_s17 }
0x128a   :  { %v1407_v53 = vpop.permute.xlu2 %1406 }
0x128b   :  { %v1409_v24 = vmul.f32 %v1407_v53, %v1354_v37 }
0x128d   :  { %1423 = vrot.lane.b32.xlu0 %v1409_v24, %s3422_s15 }
0x12df   :  { %v3992_v46 = vpop.permute.xlu1 %1428 }
0x12e0   :  { %1433 = vst.msk [vmem:[#allocation3] sm:$0xff] %vm392_vm10, %v3992_v46 }
0x12e7   :  { %v1418_v54 = vpop.permute.xlu1 %1417  ;;  %v1434_v59 = vld [vmem:[#allocation3] sm:$0xff] }
0x12e8   :  { %1420 = vst.msk [vmem:[#allocation5] sm:$0xff] %vm390_vm9, %v1418_v54  ;;  %2997 = vmatmul.msk.f32.vlgmr.msra.gmra.mxu0 %vm133_vm0, %v1434_v59  ;;  %3005 = vmatmul.msk.f32.vlgmr.msra.gmra.mxu1 %vm133_vm0, %v1434_v59 }
0x12e9   :  { %1421 = vst.msk [vmem:[#allocation5] sm:$0xff] %vm392_vm10, %v3972_v42  ;;  %2486 = vmatpush.msra.mxu0 %v3980_v38  ;;  %2506 = vmatpush.msra.mxu1 %v4022_v26 }
0x12ea   :  { %1603 = vst.msk [vmem:[#allocation5] sm:$0xff] %vm133_vm0, %v3421_v3 }
0x12eb   :  { %2487 = vmatpush.msra.mxu0 %v3982_v44  ;;  %2507 = vmatpush.msra.mxu1 %v4024_v11 }
0x12ed   :  { %2488 = vmatpush.msra.mxu0 %v3986_v45  ;;  %2508 = vmatpush.msra.mxu1 %v4037_v55 }
0x12ef   :  { %2489 = vmatpush.msra.mxu0 %v3996_v47  ;;  %2509 = vmatpush.msra.mxu1 %v4039_v58 }
0x12f0   :  { %2998 = vmatmul.msk.f32.gmra.mxu0 %vm133_vm0, %v1435_v20  ;;  %3006 = vmatmul.msk.f32.gmra.mxu1 %vm133_vm0, %v1435_v20 }
0x12f1   :  { %2490 = vmatpush.msra.mxu0 %v3999_v49  ;;  %v4081_v19 = vld [vmem:[#allocation5] sm:$0xff]  ;;  %2510 = vmatpush.msra.mxu1 %v4043_v6 }
0x12f2   :  { %1694 = vrot.lane.b32.xlu1 %v4081_v19, %s3422_s15 }
0x12f3   :  { %2491 = vmatpush.msra.mxu0 %v4002_v51  ;;  %2511 = vmatpush.msra.mxu1 %v4049_v8 }
0x12f5   :  { %2492 = vmatpush.msra.mxu0 %v4006_v39  ;;  %2512 = vmatpush.msra.mxu1 %v4061_v2 }
0x12f7   :  { %2493 = vmatpush.msra.mxu0 %v4013_v56  ;;  %2513 = vmatpush.msra.mxu1 %v4063_v0 }
0x12f8   :  { %2999 = vmatmul.msk.f32.gmra.mxu0 %vm133_vm0, %v1436_v10  ;;  %3007 = vmatmul.msk.f32.gmra.mxu1 %vm133_vm0, %v1436_v10 }
0x12ff   :  { %v1424_v12 = vpop.permute.xlu0 %1423 }
0x1300   :  { %1426 = vst.msk [vmem:[#allocation4] sm:$0xff] %vm390_vm9, %v1424_v12  ;;  %3000 = vmatmul.msk.f32.gmra.mxu0 %vm133_vm0, %v1437_v16  ;;  %3008 = vmatmul.msk.f32.gmra.mxu1 %vm133_vm0, %v1437_v16 }
0x1301   :  { %1431 = vst.msk [vmem:[#allocation4] sm:$0xff] %vm392_vm10, %v3992_v46 }
0x1302   :  { %1432 = vst.msk [vmem:[#allocation3 + $0x38] sm:$0xff] %vm390_vm9, %v1424_v12 }
0x1303   :  { %1602 = vst.msk [vmem:[#allocation4] sm:$0xff] %vm133_vm0, %v3421_v3 }
0x1308   :  { %3001 = vmatmul.msk.f32.gmra.mxu0 %vm133_vm0, %v1438_v21  ;;  %3009 = vmatmul.msk.f32.gmra.mxu1 %vm133_vm0, %v1438_v21 }
0x1309   :  { %v1441_v25 = vld [vmem:[#allocation3 + $0x38] sm:$0xff] }
0x130a   :  { %v1604_v3 = vld [vmem:[#allocation4] sm:$0xff] }
0x130b   :  { %3013 = vmatmul.msk.f32.vlgmr.msrb.gmra.mxu2 %vm133_vm0, %v1604_v3  ;;  %3014 = vmatmul.msk.f32.vlgmr.msrb.gmra.mxu3 %vm133_vm0, %v1604_v3 }
0x130c   :  { %1906 = vmatpush.msrb.mxu2 %v3980_v38  ;;  %1926 = vmatpush.msrb.mxu3 %v4022_v26 }
0x130e   :  { %1907 = vmatpush.msrb.mxu2 %v3982_v44  ;;  %1927 = vmatpush.msrb.mxu3 %v4024_v11 }
0x1310   :  { %3002 = vmatmul.msk.f32.gmra.mxu0 %vm133_vm0, %v1439_v34  ;;  %3010 = vmatmul.msk.f32.gmra.mxu1 %vm133_vm0, %v1439_v34 }
0x1311   :  { %1908 = vmatpush.msrb.mxu2 %v3986_v45  ;;  %1928 = vmatpush.msrb.mxu3 %v4037_v55 }
0x1313   :  { %1909 = vmatpush.msrb.mxu2 %v3996_v47  ;;  %1929 = vmatpush.msrb.mxu3 %v4039_v58 }
0x1315   :  { %1910 = vmatpush.msrb.mxu2 %v3999_v49  ;;  %1930 = vmatpush.msrb.mxu3 %v4043_v6 }
0x1317   :  { %1911 = vmatpush.msrb.mxu2 %v4002_v51  ;;  %1931 = vmatpush.msrb.mxu3 %v4049_v8 }
0x1318   :  { %3003 = vmatmul.msk.f32.gmra.mxu0 %vm133_vm0, %v1440_v57  ;;  %3011 = vmatmul.msk.f32.gmra.mxu1 %vm133_vm0, %v1440_v57 }
0x1319   :  { %1912 = vmatpush.msrb.mxu2 %v4006_v39  ;;  %1932 = vmatpush.msrb.mxu3 %v4061_v2 }
0x131b   :  { %1913 = vmatpush.msrb.mxu2 %v4013_v56  ;;  %1933 = vmatpush.msrb.mxu3 %v4063_v0 }
0x1320   :  { %3004 = vmatmul.msk.f32.gmra.mxu0 %vm133_vm0, %v1441_v25  ;;  %3012 = vmatmul.msk.f32.gmra.mxu1 %vm133_vm0, %v1441_v25 }
0x1365   :  { %v1521_v36 = vpop.f32.mrf.mxu0  ;;  %v1562_v52 = vpop.f32.mrf.mxu1 }
0x1366   :  { %v4132_v37 = vadd.f32 %v1562_v52, %v1477_v35  ;;  %v1522_v5 = vadd.f32 %v1521_v36, %v4150_v4 }
0x136d   :  { %v4134_v14 = vpop.f32.mrf.mxu0  ;;  %v1565_v40 = vpop.f32.mrf.mxu1 }
0x136e   :  { %v4136_v41 = vadd.f32 %v1565_v40, %v1477_v35 }
0x1375   :  { %v4138_v42 = vpop.f32.mrf.mxu0  ;;  %v1568_v43 = vpop.f32.mrf.mxu1 }
0x1376   :  { %v4140_v48 = vadd.f32 %v1568_v43, %v1477_v35 }
0x137d   :  { %v4142_v17 = vpop.f32.mrf.mxu0  ;;  %v1571_v60 = vpop.f32.mrf.mxu1 }
0x137e   :  { %v4144_v61 = vadd.f32 %v1571_v60, %v1477_v35 }
0x1385   :  { %v4146_v62 = vpop.f32.mrf.mxu0  ;;  %v1574_v63 = vpop.f32.mrf.mxu1 }
0x1386   :  { %v4148_v1 = vadd.f32 %v1574_v63, %v1477_v35 }
0x138d   :  { %v1536_v9 = vpop.f32.mrf.mxu0  ;;  %v1577_v13 = vpop.f32.mrf.mxu1 }
0x138e   :  { %v4154_v15 = vadd.f32 %v1536_v9, %v4150_v4  ;;  %v4156_v18 = vadd.f32 %v1577_v13, %v1477_v35  ;;  %v1625_v22 = vpop.f32.mrf.mxu2  ;;  %v1645_v30 = vpop.f32.mrf.mxu3 }
0x138f   :  { %v1649_v50 = vadd.f32 %v1625_v22, %v1522_v5 }
0x1391   :  { %3212 = vtanh.f32 %v1649_v50  ;;  %v3015_v46 = vmul.f32 -1.442695, %v1649_v50 }
0x1395   :  { %v1539_v53 = vpop.f32.mrf.mxu0  ;;  %v1580_v24 = vpop.f32.mrf.mxu1 }
0x1396   :  { %v4159_v23 = vadd.f32 %v1539_v53, %v4150_v4  ;;  %v4161_v27 = vadd.f32 %v1580_v24, %v1477_v35 }
0x1397   :  { %v3213_v28 = vpop.eup %3212 }
0x1398   :  { %1699 = vrot.lane.b32.xlu2 %v3213_v28, %s3423_s2 }
0x139d   :  { %v1583_v29 = vpop.f32.mrf.mxu1 }
0x139e   :  { %v1584_v31 = vadd.f32 %v1583_v29, %v1477_v35 }
0x13a0   :  { %v1651_v32 = vadd.f32 %v1645_v30, %v1584_v31  ;;  %v1695_v31 = vpop.permute.xlu1 %1694 }
0x13a2   :  { %3214 = vtanh.f32 %v1651_v32  ;;  %v3016_v57 = vmul.f32 -1.442695, %v1651_v32 }
0x13a3   :  { %3216 = vpow2.f32 %v3015_v46 }
0x13a8   :  { %v3215_v33 = vpop.eup %3214 }
0x13a9   :  { %1710 = vrot.lane.b32.xlu0 %v3215_v33, %s3423_s2  ;;  %v3217_v54 = vpop.eup %3216 }
0x13aa   :  { %v1655_v59 = vadd.f32 1.0, %v3217_v54 }
0x13ac   :  { %3218 = vrcp.f32 %v1655_v59  ;;  %v1667_v3 = vand.u32 2147483648, %v1655_v59  ;;  %vm1661_vm1 = vweird.f32 %v1655_v59  ;;  %v1665_v34 = vand.u32 2147483647, %v1655_v59 }
0x13ad   :  { %3220 = vpow2.f32 %v3016_v57 }
0x13ae   :  { %v1668_v7 = vor.u32 1.1754944e-38, %v1667_v3  ;;  %vm1666_vm3 = vcmp.eq.f32.partialorder %v1665_v34, 8.507059e+37 }
0x13b2   :  { %v3219_v20 = vpop.eup %3218 }
0x13b3   :  { %v1657_v10 = vmul.f32 %v3219_v20, %v1655_v59  ;;  %vm1662_vm15 = vweird.f32 %v3219_v20  ;;  %v3221_v40 = vpop.eup %3220 }
0x13b4   :  { %vm1663_vm2 = vmor %vm1661_vm1, %vm1662_vm15  ;;  %v1675_v43 = vadd.f32 1.0, %v3221_v40 }
0x13b5   :  { %v1658_v12 = vsub.f32 1.0, %v1657_v10 }
0x13b6   :  { %3222 = vrcp.f32 %v1675_v43  ;;  %v1687_v22 = vand.u32 2147483648, %v1675_v43  ;;  %vm1681_vm5 = vweird.f32 %v1675_v43  ;;  %v1685_v50 = vand.u32 2147483647, %v1675_v43 }
0x13b7   :  { %v1659_v16 = vmul.f32 %v3219_v20, %v1658_v12 }
0x13b8   :  { %v1688_v24 = vor.u32 1.1754944e-38, %v1687_v22  ;;  %vm1686_vm7 = vcmp.eq.f32.partialorder %v1685_v50, 8.507059e+37 }
0x13b9   :  { %v1660_v21 = vadd.f32 %v3219_v20, %v1659_v16 }
0x13bb   :  { %v1664_v25 = vsel %vm1663_vm2, %v3219_v20, %v1660_v21 }
0x13bc   :  { %v1669_v35 = vsel %vm1666_vm3, %v1668_v7, %v1664_v25  ;;  %v3223_v60 = vpop.eup %3222 }
0x13bd   :  { %v1677_v63 = vmul.f32 %v3223_v60, %v1675_v43  ;;  %vm1682_vm4 = vweird.f32 %v3223_v60  ;;  %v1697_v32 = vmul.f32 %v1695_v31, %v1669_v35 }
0x13be   :  { %vm1683_vm6 = vmor %vm1681_vm5, %vm1682_vm4 }
0x13bf   :  { %v1678_v5 = vsub.f32 1.0, %v1677_v63 }
0x13c1   :  { %v1679_v9 = vmul.f32 %v3223_v60, %v1678_v5 }
0x13c3   :  { %v1680_v13 = vadd.f32 %v3223_v60, %v1679_v9 }
0x13c5   :  { %v1684_v53 = vsel %vm1683_vm6, %v3223_v60, %v1680_v13 }
0x13c6   :  { %v1689_v29 = vsel %vm1686_vm7, %v1688_v24, %v1684_v53 }
0x13c7   :  { %v1708_v59 = vmul.f32 %v4081_v19, %v1689_v29 }
0x13f2   :  { %v1700_v36 = vpop.permute.xlu2 %1699 }
0x13f3   :  { %v1702_v52 = vmul.f32 %v1700_v36, %v1669_v35  ;;  %v1525_v36 = vadd.f32 %v4134_v14, %v4150_v4 }
0x13f5   :  { %1704 = vrot.lane.b32.xlu2 %v1702_v52, %s3422_s15 }
0x141b   :  { %v1711_v28 = vpop.permute.xlu0 %1710 }
0x141c   :  { %v1713_v30 = vmul.f32 %v1711_v28, %v1689_v29 }
0x141e   :  { %1715 = vrot.lane.b32.xlu0 %v1713_v30, %s3422_s15 }
0x144f   :  { %v1705_v33 = vpop.permute.xlu2 %1704 }
0x1450   :  { %v1707_v46 = vadd.f32 %v1705_v33, %v1697_v32 }
0x1452   :  { %3224 = vtanh.f32 %v1707_v46 }
0x1458   :  { %v3225_v54 = vpop.eup %3224 }
0x1459   :  { %1721 = vrot.lane.b32.xlu1 %v3225_v54, %s3423_s2 }
0x1490   :  { %v1716_v20 = vpop.permute.xlu0 %1715 }
0x1491   :  { %v1718_v10 = vadd.f32 %v1716_v20, %v1708_v59 }
0x1493   :  { %3226 = vtanh.f32 %v1718_v10 }
0x1499   :  { %v3227_v12 = vpop.eup %3226 }
0x149a   :  { %1727 = vrot.lane.b32.xlu2 %v3227_v12, %s3423_s2 }
0x14a2   :  { %1732 = vrot.lane.b32.xlu2 %v1707_v46, %s3424_s17 }
0x14cb   :  { %v1722_v16 = vpop.permute.xlu1 %1721 }
0x14cc   :  { %v1724_v21 = vmul.f32 %v1722_v16, %v1669_v35 }
0x14ce   :  { %1738 = vrot.lane.b32.xlu0 %v1724_v21, %s3422_s15 }
0x14f4   :  { %v1728_v3 = vpop.permute.xlu2 %1727 }
0x14f5   :  { %v1730_v34 = vmul.f32 %v1728_v3, %v1689_v29 }
0x14f7   :  { %1743 = vrot.lane.b32.xlu1 %v1730_v34, %s3423_s2 }
0x14fc   :  { %v1733_v57 = vpop.permute.xlu2 %1732 }
0x14fd   :  { %1735 = vst.msk [vmem:[#allocation5] sm:$0xff] %vm390_vm9, %v1733_v57 }
0x14fe   :  { %1736 = vst.msk [vmem:[#allocation5] sm:$0xff] %vm392_vm10, %v1718_v10 }
0x1505   :  { %v4175_v19 = vld [vmem:[#allocation5] sm:$0xff] }
0x1506   :  { %1839 = vrot.lane.b32.xlu2 %v4175_v19, %s3422_s15 }
0x1540   :  { %v1739_v25 = vpop.permute.xlu0 %1738 }
0x1541   :  { %1741 = vst.msk [vmem:[#allocation4] sm:$0xff] %vm390_vm9, %v1739_v25 }
0x1542   :  { %1747 = vst.msk [vmem:[#allocation3] sm:$0xff] %vm390_vm9, %v1739_v25 }
0x1569   :  { %v1744_v7 = vpop.permute.xlu1 %1743 }
0x156a   :  { %1746 = vst.msk [vmem:[#allocation4] sm:$0xff] %vm392_vm10, %v1744_v7 }
0x156b   :  { %1748 = vst.msk [vmem:[#allocation3 + $0x38] sm:$0xff] %vm392_vm10, %v1744_v7 }
0x1571   :  { %v1749_v35 = vld [vmem:[#allocation4] sm:$0xff] }
0x1572   :  { %3017 = vmatmul.msk.f32.vlgmr.msra.gmra.mxu2 %vm133_vm0, %v1749_v35  ;;  %3018 = vmatmul.msk.f32.vlgmr.msra.gmra.mxu3 %vm133_vm0, %v1749_v35 }
0x1573   :  { %2051 = vmatpush.msra.mxu2 %v3980_v38  ;;  %2071 = vmatpush.msra.mxu3 %v4022_v26 }
0x1575   :  { %2052 = vmatpush.msra.mxu2 %v3982_v44  ;;  %2072 = vmatpush.msra.mxu3 %v4024_v11 }
0x1577   :  { %2053 = vmatpush.msra.mxu2 %v3986_v45  ;;  %2073 = vmatpush.msra.mxu3 %v4037_v55 }
0x1579   :  { %2054 = vmatpush.msra.mxu2 %v3996_v47  ;;  %2074 = vmatpush.msra.mxu3 %v4039_v58 }
0x157b   :  { %2055 = vmatpush.msra.mxu2 %v3999_v49  ;;  %2075 = vmatpush.msra.mxu3 %v4043_v6 }
0x157d   :  { %2056 = vmatpush.msra.mxu2 %v4002_v51  ;;  %2076 = vmatpush.msra.mxu3 %v4049_v8 }
0x157f   :  { %2057 = vmatpush.msra.mxu2 %v4006_v39  ;;  %2077 = vmatpush.msra.mxu3 %v4061_v2 }
0x1581   :  { %2058 = vmatpush.msra.mxu2 %v4013_v56  ;;  %2078 = vmatpush.msra.mxu3 %v4063_v0 }
0x15f5   :  { %v1770_v52 = vpop.f32.mrf.mxu2  ;;  %v1790_v40 = vpop.f32.mrf.mxu3 }
0x15f6   :  { %v1794_v43 = vadd.f32 %v1770_v52, %v1525_v36  ;;  %v1796_v60 = vadd.f32 %v1790_v40, %v4161_v27  ;;  %v1840_v40 = vpop.permute.xlu2 %1839 }
0x15f8   :  { %3228 = vtanh.f32 %v1794_v43  ;;  %v3019_v9 = vmul.f32 -1.442695, %v1794_v43  ;;  %v3020_v13 = vmul.f32 -1.442695, %v1796_v60 }
0x15f9   :  { %3230 = vtanh.f32 %v1796_v60 }
0x15fa   :  { %3232 = vpow2.f32 %v3019_v9 }
0x15fb   :  { %3234 = vpow2.f32 %v3020_v13 }
0x15fe   :  { %v3229_v63 = vpop.eup %3228 }
0x15ff   :  { %v3231_v5 = vpop.eup %3230  ;;  %1844 = vrot.lane.b32.xlu0 %v3229_v63, %s3423_s2 }
0x1600   :  { %1855 = vrot.lane.b32.xlu1 %v3231_v5, %s3423_s2  ;;  %v3233_v22 = vpop.eup %3232 }
0x1601   :  { %v3235_v50 = vpop.eup %3234  ;;  %v1800_v14 = vadd.f32 1.0, %v3233_v22 }
0x1602   :  { %v1820_v53 = vadd.f32 1.0, %v3235_v50 }
0x1603   :  { %3236 = vrcp.f32 %v1800_v14  ;;  %v1812_v59 = vand.u32 2147483648, %v1800_v14  ;;  %vm1806_vm12 = vweird.f32 %v1800_v14  ;;  %v1810_v10 = vand.u32 2147483647, %v1800_v14 }
0x1604   :  { %3238 = vrcp.f32 %v1820_v53  ;;  %v1832_v20 = vand.u32 2147483648, %v1820_v53  ;;  %vm1826_vm13 = vweird.f32 %v1820_v53  ;;  %v1830_v12 = vand.u32 2147483647, %v1820_v53 }
0x1605   :  { %v1813_v3 = vor.u32 1.1754944e-38, %v1812_v59  ;;  %vm1811_vm1 = vcmp.eq.f32.partialorder %v1810_v10, 8.507059e+37 }
0x1606   :  { %v1833_v34 = vor.u32 1.1754944e-38, %v1832_v20  ;;  %vm1831_vm2 = vcmp.eq.f32.partialorder %v1830_v12, 8.507059e+37 }
0x1609   :  { %v3237_v24 = vpop.eup %3236 }
0x160a   :  { %v3239_v27 = vpop.eup %3238  ;;  %v1802_v28 = vmul.f32 %v3237_v24, %v1800_v14  ;;  %vm1807_vm8 = vweird.f32 %v3237_v24 }
0x160b   :  { %v1822_v29 = vmul.f32 %v3239_v27, %v1820_v53  ;;  %vm1827_vm11 = vweird.f32 %v3239_v27  ;;  %vm1808_vm14 = vmor %vm1806_vm12, %vm1807_vm8 }
0x160c   :  { %v1803_v30 = vsub.f32 1.0, %v1802_v28  ;;  %vm1828_vm15 = vmor %vm1826_vm13, %vm1827_vm11 }
0x160d   :  { %v1823_v31 = vsub.f32 1.0, %v1822_v29 }
0x160e   :  { %v1804_v32 = vmul.f32 %v3237_v24, %v1803_v30 }
0x160f   :  { %v1824_v33 = vmul.f32 %v3239_v27, %v1823_v31 }
0x1610   :  { %v1805_v46 = vadd.f32 %v3237_v24, %v1804_v32  ;;  %v1528_v32 = vadd.f32 %v4138_v42, %v4150_v4 }
0x1611   :  { %v1825_v54 = vadd.f32 %v3239_v27, %v1824_v33 }
0x1612   :  { %v1809_v16 = vsel %vm1808_vm14, %v3237_v24, %v1805_v46 }
0x1613   :  { %v1829_v21 = vsel %vm1828_vm15, %v3239_v27, %v1825_v54  ;;  %v1814_v25 = vsel %vm1811_vm1, %v1813_v3, %v1809_v16 }
0x1614   :  { %v1834_v35 = vsel %vm1831_vm2, %v1833_v34, %v1829_v21  ;;  %v1842_v43 = vmul.f32 %v1840_v40, %v1814_v25 }
0x1615   :  { %v1853_v60 = vmul.f32 %v4175_v19, %v1834_v35 }
0x1671   :  { %v1845_v57 = vpop.permute.xlu0 %1844 }
0x1672   :  { %v1856_v7 = vpop.permute.xlu1 %1855  ;;  %v1847_v36 = vmul.f32 %v1845_v57, %v1814_v25 }
0x1673   :  { %v1858_v52 = vmul.f32 %v1856_v7, %v1834_v35 }
0x1674   :  { %1849 = vrot.lane.b32.xlu0 %v1847_v36, %s3422_s15 }
0x1675   :  { %1860 = vrot.lane.b32.xlu1 %v1858_v52, %s3422_s15 }
0x16e6   :  { %v1850_v63 = vpop.permute.xlu0 %1849 }
0x16e7   :  { %v1861_v5 = vpop.permute.xlu1 %1860  ;;  %v1852_v9 = vadd.f32 %v1850_v63, %v1842_v43 }
0x16e8   :  { %v1863_v13 = vadd.f32 %v1861_v5, %v1853_v60 }
0x16e9   :  { %3240 = vtanh.f32 %v1852_v9 }
0x16ea   :  { %3242 = vtanh.f32 %v1863_v13 }
0x16ef   :  { %v3241_v22 = vpop.eup %3240 }
0x16f0   :  { %v3243_v50 = vpop.eup %3242  ;;  %1866 = vrot.lane.b32.xlu2 %v3241_v22, %s3423_s2 }
0x16f1   :  { %1872 = vrot.lane.b32.xlu0 %v3243_v50, %s3423_s2 }
0x16f9   :  { %1877 = vrot.lane.b32.xlu0 %v1852_v9, %s3424_s17 }
0x174a   :  { %v1867_v14 = vpop.permute.xlu2 %1866 }
0x174b   :  { %v1869_v53 = vmul.f32 %v1867_v14, %v1814_v25 }
0x174d   :  { %1883 = vrot.lane.b32.xlu1 %v1869_v53, %s3422_s15 }
0x1763   :  { %v1873_v24 = vpop.permute.xlu0 %1872 }
0x1764   :  { %v1875_v19 = vmul.f32 %v1873_v24, %v1834_v35 }
0x1766   :  { %1888 = vrot.lane.b32.xlu2 %v1875_v19, %s3423_s2 }
0x176b   :  { %v1878_v27 = vpop.permute.xlu0 %1877 }
0x176c   :  { %1880 = vst.msk [vmem:[#allocation5] sm:$0xff] %vm390_vm9, %v1878_v27 }
0x176d   :  { %1881 = vst.msk [vmem:[#allocation5] sm:$0xff] %vm392_vm10, %v1863_v13 }
0x1774   :  { %v4216_v28 = vld [vmem:[#allocation5] sm:$0xff] }
0x1775   :  { %1984 = vrot.lane.b32.xlu0 %v4216_v28, %s3422_s15 }
0x17bf   :  { %v1884_v29 = vpop.permute.xlu1 %1883 }
0x17c0   :  { %1886 = vst.msk [vmem:[#allocation4] sm:$0xff] %vm390_vm9, %v1884_v29  ;;  %v1889_v30 = vpop.permute.xlu2 %1888 }
0x17c1   :  { %1892 = vst.msk [vmem:[#allocation3 + $0x8] sm:$0xff] %vm390_vm9, %v1884_v29 }
0x17c2   :  { %1891 = vst.msk [vmem:[#allocation4] sm:$0xff] %vm392_vm10, %v1889_v30 }
0x17c3   :  { %1893 = vst.msk [vmem:[#allocation3 + $0x30] sm:$0xff] %vm392_vm10, %v1889_v30 }
0x17c9   :  { %v1894_v31 = vld [vmem:[#allocation4] sm:$0xff] }
0x17ca   :  { %3021 = vmatmul.msk.f32.vlgmr.msrb.gmra.mxu2 %vm133_vm0, %v1894_v31  ;;  %3022 = vmatmul.msk.f32.vlgmr.msrb.gmra.mxu3 %vm133_vm0, %v1894_v31 }
0x17cb   :  { %2341 = vmatpush.msrb.mxu2 %v3980_v38  ;;  %2361 = vmatpush.msrb.mxu3 %v4022_v26 }
0x17cd   :  { %2342 = vmatpush.msrb.mxu2 %v3982_v44  ;;  %2362 = vmatpush.msrb.mxu3 %v4024_v11 }
0x17cf   :  { %2343 = vmatpush.msrb.mxu2 %v3986_v45  ;;  %2363 = vmatpush.msrb.mxu3 %v4037_v55 }
0x17d1   :  { %2344 = vmatpush.msrb.mxu2 %v3996_v47  ;;  %2364 = vmatpush.msrb.mxu3 %v4039_v58 }
0x17d3   :  { %2345 = vmatpush.msrb.mxu2 %v3999_v49  ;;  %2365 = vmatpush.msrb.mxu3 %v4043_v6 }
0x17d5   :  { %2346 = vmatpush.msrb.mxu2 %v4002_v51  ;;  %2366 = vmatpush.msrb.mxu3 %v4049_v8 }
0x17d7   :  { %2347 = vmatpush.msrb.mxu2 %v4006_v39  ;;  %2367 = vmatpush.msrb.mxu3 %v4061_v2 }
0x17d9   :  { %2348 = vmatpush.msrb.mxu2 %v4013_v56  ;;  %2368 = vmatpush.msrb.mxu3 %v4063_v0 }
0x184d   :  { %v1915_v33 = vpop.f32.mrf.mxu2  ;;  %v1935_v46 = vpop.f32.mrf.mxu3 }
0x184e   :  { %v1939_v54 = vadd.f32 %v1915_v33, %v1528_v32  ;;  %v1941_v59 = vadd.f32 %v1935_v46, %v4156_v18 }
0x1850   :  { %3244 = vtanh.f32 %v1939_v54  ;;  %v3024_v12 = vmul.f32 -1.442695, %v1941_v59  ;;  %v3023_v42 = vmul.f32 -1.442695, %v1939_v54 }
0x1851   :  { %3246 = vtanh.f32 %v1941_v59  ;;  %v1985_v59 = vpop.permute.xlu0 %1984 }
0x1852   :  { %3248 = vpow2.f32 %v3024_v12 }
0x1856   :  { %v3245_v20 = vpop.eup %3244 }
0x1857   :  { %v3247_v10 = vpop.eup %3246  ;;  %1989 = vrot.lane.b32.xlu1 %v3245_v20, %s3423_s2 }
0x1858   :  { %2000 = vrot.lane.b32.xlu2 %v3247_v10, %s3423_s2  ;;  %v3249_v16 = vpop.eup %3248 }
0x1859   :  { %v1965_v21 = vadd.f32 1.0, %v3249_v16 }
0x185b   :  { %3250 = vrcp.f32 %v1965_v21  ;;  %v1977_v36 = vand.u32 2147483648, %v1965_v21  ;;  %vm1971_vm4 = vweird.f32 %v1965_v21  ;;  %v1975_v52 = vand.u32 2147483647, %v1965_v21 }
0x185c   :  { %3252 = vpow2.f32 %v3023_v42 }
0x185d   :  { %v1978_v43 = vor.u32 1.1754944e-38, %v1977_v36  ;;  %vm1976_vm6 = vcmp.eq.f32.partialorder %v1975_v52, 8.507059e+37 }
0x1861   :  { %v3251_v3 = vpop.eup %3250 }
0x1862   :  { %v1967_v34 = vmul.f32 %v3251_v3, %v1965_v21  ;;  %v3253_v25 = vpop.eup %3252  ;;  %vm1972_vm3 = vweird.f32 %v3251_v3 }
0x1863   :  { %v1945_v7 = vadd.f32 1.0, %v3253_v25  ;;  %vm1973_vm5 = vmor %vm1971_vm4, %vm1972_vm3 }
0x1864   :  { %v1968_v57 = vsub.f32 1.0, %v1967_v34 }
0x1865   :  { %3254 = vrcp.f32 %v1945_v7  ;;  %v1957_v53 = vand.u32 2147483648, %v1945_v7  ;;  %vm1951_vm8 = vweird.f32 %v1945_v7  ;;  %v1955_v24 = vand.u32 2147483647, %v1945_v7 }
0x1866   :  { %v1969_v18 = vmul.f32 %v3251_v3, %v1968_v57 }
0x1867   :  { %v1958_v27 = vor.u32 1.1754944e-38, %v1957_v53  ;;  %vm1956_vm12 = vcmp.eq.f32.partialorder %v1955_v24, 8.507059e+37 }
0x1868   :  { %v1970_v35 = vadd.f32 %v3251_v3, %v1969_v18 }
0x186a   :  { %v1974_v40 = vsel %vm1973_vm5, %v3251_v3, %v1970_v35 }
0x186b   :  { %v1979_v63 = vsel %vm1976_vm6, %v1978_v43, %v1974_v40  ;;  %v3255_v5 = vpop.eup %3254 }
0x186c   :  { %v1947_v13 = vmul.f32 %v3255_v5, %v1945_v7  ;;  %vm1952_vm7 = vweird.f32 %v3255_v5  ;;  %v1998_v32 = vmul.f32 %v4216_v28, %v1979_v63 }
0x186d   :  { %vm1953_vm11 = vmor %vm1951_vm8, %vm1952_vm7 }
0x186e   :  { %v1948_v22 = vsub.f32 1.0, %v1947_v13 }
0x1870   :  { %v1949_v50 = vmul.f32 %v3255_v5, %v1948_v22 }
0x1872   :  { %v1950_v14 = vadd.f32 %v3255_v5, %v1949_v50 }
0x1874   :  { %v1954_v19 = vsel %vm1953_vm11, %v3255_v5, %v1950_v14 }
0x1875   :  { %v1959_v30 = vsel %vm1956_vm12, %v1958_v27, %v1954_v19 }
0x1876   :  { %v1987_v20 = vmul.f32 %v1985_v59, %v1959_v30 }
0x18b2   :  { %v2001_v60 = vpop.permute.xlu2 %2000 }
0x18b3   :  { %v2003_v9 = vmul.f32 %v2001_v60, %v1979_v63 }
0x18b5   :  { %2005 = vrot.lane.b32.xlu2 %v2003_v9, %s3422_s15 }
0x18c9   :  { %v1990_v29 = vpop.permute.xlu1 %1989 }
0x18ca   :  { %v1992_v31 = vmul.f32 %v1990_v29, %v1959_v30 }
0x18cc   :  { %1994 = vrot.lane.b32.xlu1 %v1992_v31, %s3422_s15 }
0x190f   :  { %v2006_v33 = vpop.permute.xlu2 %2005 }
0x1910   :  { %v2008_v46 = vadd.f32 %v2006_v33, %v1998_v32 }
0x1912   :  { %3256 = vtanh.f32 %v2008_v46 }
0x1918   :  { %v3257_v54 = vpop.eup %3256 }
0x1919   :  { %2017 = vrot.lane.b32.xlu1 %v3257_v54, %s3423_s2 }
0x193e   :  { %v1995_v10 = vpop.permute.xlu1 %1994 }
0x193f   :  { %v1997_v12 = vadd.f32 %v1995_v10, %v1987_v20 }
0x1941   :  { %3258 = vtanh.f32 %v1997_v12  ;;  %2022 = vrot.lane.b32.xlu1 %v1997_v12, %s3424_s17 }
0x1947   :  { %v3259_v16 = vpop.eup %3258 }
0x1948   :  { %2011 = vrot.lane.b32.xlu0 %v3259_v16, %s3423_s2 }
0x198b   :  { %v2018_v21 = vpop.permute.xlu1 %2017 }
0x198c   :  { %v2020_v3 = vmul.f32 %v2018_v21, %v1979_v63 }
0x198e   :  { %2033 = vrot.lane.b32.xlu0 %v2020_v3, %s3423_s2 }
0x19b3   :  { %v2023_v28 = vpop.permute.xlu1 %2022 }
0x19b4   :  { %2025 = vst.msk [vmem:[#allocation5] sm:$0xff] %vm390_vm9, %v2023_v28 }
0x19b5   :  { %2026 = vst.msk [vmem:[#allocation5] sm:$0xff] %vm392_vm10, %v2008_v46 }
0x19ba   :  { %v2012_v42 = vpop.permute.xlu0 %2011 }
0x19bb   :  { %v2014_v34 = vmul.f32 %v2012_v42, %v1959_v30 }
0x19bc   :  { %v4256_v57 = vld [vmem:[#allocation5] sm:$0xff] }
0x19bd   :  { %2129 = vrot.lane.b32.xlu1 %v4256_v57, %s3422_s15  ;;  %2028 = vrot.lane.b32.xlu2 %v2014_v34, %s3422_s15 }
0x1a00   :  { %v2034_v25 = vpop.permute.xlu0 %2033 }
0x1a01   :  { %2038 = vst.msk [vmem:[#allocation3 + $0x28] sm:$0xff] %vm392_vm10, %v2034_v25 }
0x1a17   :  { %v2029_v18 = vpop.permute.xlu2 %2028 }
0x1a18   :  { %2031 = vst.msk [vmem:[#allocation4] sm:$0xff] %vm390_vm9, %v2029_v18 }
0x1a19   :  { %2036 = vst.msk [vmem:[#allocation4] sm:$0xff] %vm392_vm10, %v2034_v25 }
0x1a1a   :  { %2037 = vst.msk [vmem:[#allocation3 + $0x10] sm:$0xff] %vm390_vm9, %v2029_v18 }
0x1a20   :  { %v2039_v7 = vld [vmem:[#allocation4] sm:$0xff] }
0x1a21   :  { %3025 = vmatmul.msk.f32.vlgmr.msra.gmra.mxu2 %vm133_vm0, %v2039_v7  ;;  %3026 = vmatmul.msk.f32.vlgmr.msra.gmra.mxu3 %vm133_vm0, %v2039_v7  ;;  %v4308_v7 = vpop.f32.mrf.mxu0 }
0x1a22   :  { %2631 = vmatpush.msra.mxu2 %v3980_v38  ;;  %2651 = vmatpush.msra.mxu3 %v4022_v26  ;;  %v1531_v38 = vadd.f32 %v4142_v17, %v4150_v4 }
0x1a24   :  { %2632 = vmatpush.msra.mxu2 %v3982_v44  ;;  %2652 = vmatpush.msra.mxu3 %v4024_v11 }
0x1a26   :  { %2633 = vmatpush.msra.mxu2 %v3986_v45  ;;  %2653 = vmatpush.msra.mxu3 %v4037_v55 }
0x1a28   :  { %2634 = vmatpush.msra.mxu2 %v3996_v47  ;;  %2654 = vmatpush.msra.mxu3 %v4039_v58 }
0x1a2a   :  { %2635 = vmatpush.msra.mxu2 %v3999_v49  ;;  %2655 = vmatpush.msra.mxu3 %v4043_v6 }
0x1a2c   :  { %2636 = vmatpush.msra.mxu2 %v4002_v51  ;;  %2656 = vmatpush.msra.mxu3 %v4049_v8 }
0x1a2e   :  { %2637 = vmatpush.msra.mxu2 %v4006_v39  ;;  %2657 = vmatpush.msra.mxu3 %v4061_v2 }
0x1a2f   :  { %v2130_v31 = vpop.permute.xlu1 %2129 }
0x1a30   :  { %2638 = vmatpush.msra.mxu2 %v4013_v56  ;;  %2658 = vmatpush.msra.mxu3 %v4063_v0 }
0x1aa4   :  { %v2060_v44 = vpop.f32.mrf.mxu2  ;;  %v2080_v45 = vpop.f32.mrf.mxu3 }
0x1aa5   :  { %v2084_v47 = vadd.f32 %v2060_v44, %v1531_v38  ;;  %v2086_v49 = vadd.f32 %v2080_v45, %v4148_v1  ;;  %v1534_v38 = vadd.f32 %v4146_v62, %v4150_v4 }
0x1aa7   :  { %3260 = vtanh.f32 %v2084_v47  ;;  %v3027_v39 = vmul.f32 -1.442695, %v2084_v47  ;;  %v3028_v58 = vmul.f32 -1.442695, %v2086_v49 }
0x1aa8   :  { %3262 = vtanh.f32 %v2086_v49 }
0x1aa9   :  { %3264 = vpow2.f32 %v3027_v39 }
0x1aad   :  { %v3261_v51 = vpop.eup %3260 }
0x1aae   :  { %v3263_v26 = vpop.eup %3262  ;;  %2134 = vrot.lane.b32.xlu2 %v3261_v51, %s3423_s2 }
0x1aaf   :  { %2145 = vrot.lane.b32.xlu0 %v3263_v26, %s3423_s2  ;;  %v3265_v56 = vpop.eup %3264 }
0x1ab0   :  { %v2090_v11 = vadd.f32 1.0, %v3265_v56 }
0x1ab2   :  { %3266 = vrcp.f32 %v2090_v11  ;;  %v2102_v35 = vand.u32 2147483648, %v2090_v11  ;;  %vm2096_vm14 = vweird.f32 %v2090_v11  ;;  %v2100_v36 = vand.u32 2147483647, %v2090_v11 }
0x1ab3   :  { %3268 = vpow2.f32 %v3028_v58 }
0x1ab4   :  { %v2103_v40 = vor.u32 1.1754944e-38, %v2102_v35  ;;  %vm2101_vm1 = vcmp.eq.f32.partialorder %v2100_v36, 8.507059e+37 }
0x1ab8   :  { %v3267_v55 = vpop.eup %3266 }
0x1ab9   :  { %v2092_v6 = vmul.f32 %v3267_v55, %v2090_v11  ;;  %v3269_v0 = vpop.eup %3268  ;;  %vm2097_vm13 = vweird.f32 %v3267_v55 }
0x1aba   :  { %v2110_v17 = vadd.f32 1.0, %v3269_v0  ;;  %vm2098_vm15 = vmor %vm2096_vm14, %vm2097_vm13 }
0x1abb   :  { %v2093_v8 = vsub.f32 1.0, %v2092_v6 }
0x1abc   :  { %3270 = vrcp.f32 %v2110_v17  ;;  %v2122_v14 = vand.u32 2147483648, %v2110_v17  ;;  %vm2116_vm3 = vweird.f32 %v2110_v17  ;;  %v2120_v53 = vand.u32 2147483647, %v2110_v17 }
0x1abd   :  { %v2094_v2 = vmul.f32 %v3267_v55, %v2093_v8 }
0x1abe   :  { %v2123_v19 = vor.u32 1.1754944e-38, %v2122_v14  ;;  %vm2121_vm5 = vcmp.eq.f32.partialorder %v2120_v53, 8.507059e+37 }
0x1abf   :  { %v2095_v1 = vadd.f32 %v3267_v55, %v2094_v2 }
0x1ac1   :  { %v2099_v52 = vsel %vm2098_vm15, %v3267_v55, %v2095_v1 }
0x1ac2   :  { %v2104_v60 = vsel %vm2101_vm1, %v2103_v40, %v2099_v52  ;;  %v3271_v5 = vpop.eup %3270 }
0x1ac3   :  { %v2112_v9 = vmul.f32 %v3271_v5, %v2110_v17  ;;  %vm2117_vm2 = vweird.f32 %v3271_v5  ;;  %v2132_v32 = vmul.f32 %v2130_v31, %v2104_v60 }
0x1ac4   :  { %vm2118_vm4 = vmor %vm2116_vm3, %vm2117_vm2 }
0x1ac5   :  { %v2113_v13 = vsub.f32 1.0, %v2112_v9 }
0x1ac7   :  { %v2114_v22 = vmul.f32 %v3271_v5, %v2113_v13 }
0x1ac9   :  { %v2115_v50 = vadd.f32 %v3271_v5, %v2114_v22 }
0x1acb   :  { %v2119_v24 = vsel %vm2118_vm4, %v3271_v5, %v2115_v50 }
0x1acc   :  { %v2124_v29 = vsel %vm2121_vm5, %v2123_v19, %v2119_v24 }
0x1acd   :  { %v2143_v59 = vmul.f32 %v4256_v57, %v2124_v29 }
0x1b08   :  { %v2135_v43 = vpop.permute.xlu2 %2134 }
0x1b09   :  { %v2137_v63 = vmul.f32 %v2135_v43, %v2104_v60 }
0x1b0b   :  { %2139 = vrot.lane.b32.xlu2 %v2137_v63, %s3422_s15 }
0x1b21   :  { %v2146_v27 = vpop.permute.xlu0 %2145 }
0x1b22   :  { %v2148_v30 = vmul.f32 %v2146_v27, %v2124_v29 }
0x1b24   :  { %2150 = vrot.lane.b32.xlu0 %v2148_v30, %s3422_s15 }
0x1b65   :  { %v2140_v33 = vpop.permute.xlu2 %2139 }
0x1b66   :  { %v2142_v46 = vadd.f32 %v2140_v33, %v2132_v32 }
0x1b68   :  { %3272 = vtanh.f32 %v2142_v46 }
0x1b6e   :  { %v3273_v54 = vpop.eup %3272 }
0x1b6f   :  { %2156 = vrot.lane.b32.xlu1 %v3273_v54, %s3423_s2 }
0x1b96   :  { %v2151_v20 = vpop.permute.xlu0 %2150 }
0x1b97   :  { %v2153_v10 = vadd.f32 %v2151_v20, %v2143_v59 }
0x1b99   :  { %3274 = vtanh.f32 %v2153_v10 }
0x1b9f   :  { %v3275_v12 = vpop.eup %3274 }
0x1ba0   :  { %2162 = vrot.lane.b32.xlu2 %v3275_v12, %s3423_s2 }
0x1ba8   :  { %2167 = vrot.lane.b32.xlu2 %v2142_v46, %s3424_s17 }
0x1be1   :  { %v2157_v16 = vpop.permute.xlu1 %2156 }
0x1be2   :  { %v2159_v21 = vmul.f32 %v2157_v16, %v2104_v60 }
0x1be4   :  { %2173 = vrot.lane.b32.xlu0 %v2159_v21, %s3422_s15 }
0x1bfa   :  { %v2163_v3 = vpop.permute.xlu2 %2162 }
0x1bfb   :  { %v2165_v28 = vmul.f32 %v2163_v3, %v2124_v29 }
0x1bfd   :  { %2178 = vrot.lane.b32.xlu1 %v2165_v28, %s3423_s2 }
0x1c02   :  { %v2168_v42 = vpop.permute.xlu2 %2167 }
0x1c03   :  { %2170 = vst.msk [vmem:[#allocation5] sm:$0xff] %vm390_vm9, %v2168_v42 }
0x1c04   :  { %2171 = vst.msk [vmem:[#allocation5] sm:$0xff] %vm392_vm10, %v2153_v10 }
0x1c0b   :  { %v4298_v34 = vld [vmem:[#allocation5] sm:$0xff] }
0x1c0c   :  { %2274 = vrot.lane.b32.xlu2 %v4298_v34, %s3422_s15 }
0x1c56   :  { %v2174_v57 = vpop.permute.xlu0 %2173 }
0x1c57   :  { %2176 = vst.msk [vmem:[#allocation4] sm:$0xff] %vm390_vm9, %v2174_v57 }
0x1c58   :  { %2182 = vst.msk [vmem:[#allocation3 + $0x18] sm:$0xff] %vm390_vm9, %v2174_v57 }
0x1c66   :  { %v2275_v29 = vpop.permute.xlu2 %2274 }
0x1c6f   :  { %v2179_v25 = vpop.permute.xlu1 %2178 }
0x1c70   :  { %2181 = vst.msk [vmem:[#allocation4] sm:$0xff] %vm392_vm10, %v2179_v25 }
0x1c71   :  { %2183 = vst.msk [vmem:[#allocation3 + $0x20] sm:$0xff] %vm392_vm10, %v2179_v25 }
0x1c77   :  { %v2184_v18 = vld [vmem:[#allocation4] sm:$0xff] }
0x1c78   :  { %3029 = vmatmul.msk.f32.vlgmr.msrb.gmra.mxu0 %vm133_vm0, %v2184_v18  ;;  %3030 = vmatmul.msk.f32.vlgmr.msrb.gmra.mxu1 %vm133_vm0, %v2184_v18 }
0x1cf5   :  { %v2205_v44 = vpop.f32.mrf.mxu0  ;;  %v2225_v45 = vpop.f32.mrf.mxu1 }
0x1cf6   :  { %v2229_v47 = vadd.f32 %v2205_v44, %v1534_v38  ;;  %v2231_v49 = vadd.f32 %v2225_v45, %v4144_v61 }
0x1cf8   :  { %3276 = vtanh.f32 %v2229_v47  ;;  %v3031_v39 = vmul.f32 -1.442695, %v2229_v47  ;;  %v3032_v56 = vmul.f32 -1.442695, %v2231_v49 }
0x1cf9   :  { %3278 = vtanh.f32 %v2231_v49 }
0x1cfa   :  { %3280 = vpow2.f32 %v3031_v39 }
0x1cfb   :  { %3282 = vpow2.f32 %v3032_v56 }
0x1cfe   :  { %v3277_v51 = vpop.eup %3276 }
0x1cff   :  { %v3279_v26 = vpop.eup %3278  ;;  %2279 = vrot.lane.b32.xlu0 %v3277_v51, %s3423_s2 }
0x1d00   :  { %2290 = vrot.lane.b32.xlu1 %v3279_v26, %s3423_s2  ;;  %v3281_v11 = vpop.eup %3280 }
0x1d01   :  { %v3283_v55 = vpop.eup %3282  ;;  %v2235_v62 = vadd.f32 1.0, %v3281_v11 }
0x1d02   :  { %v2255_v58 = vadd.f32 1.0, %v3283_v55 }
0x1d03   :  { %3284 = vrcp.f32 %v2235_v62  ;;  %v2247_v40 = vand.u32 2147483648, %v2235_v62  ;;  %vm2241_vm8 = vweird.f32 %v2235_v62  ;;  %v2245_v60 = vand.u32 2147483647, %v2235_v62 }
0x1d04   :  { %3286 = vrcp.f32 %v2255_v58  ;;  %v2267_v43 = vand.u32 2147483648, %v2255_v58  ;;  %vm2261_vm11 = vweird.f32 %v2255_v58  ;;  %v2265_v63 = vand.u32 2147483647, %v2255_v58 }
0x1d05   :  { %v2248_v13 = vor.u32 1.1754944e-38, %v2247_v40  ;;  %vm2246_vm14 = vcmp.eq.f32.partialorder %v2245_v60, 8.507059e+37 }
0x1d06   :  { %v2268_v22 = vor.u32 1.1754944e-38, %v2267_v43  ;;  %vm2266_vm15 = vcmp.eq.f32.partialorder %v2265_v63, 8.507059e+37 }
0x1d09   :  { %v3285_v6 = vpop.eup %3284 }
0x1d0a   :  { %v3287_v61 = vpop.eup %3286  ;;  %v2237_v8 = vmul.f32 %v3285_v6, %v2235_v62  ;;  %vm2242_vm6 = vweird.f32 %v3285_v6 }
0x1d0b   :  { %v2257_v2 = vmul.f32 %v3287_v61, %v2255_v58  ;;  %vm2262_vm7 = vweird.f32 %v3287_v61  ;;  %vm2243_vm12 = vmor %vm2241_vm8, %vm2242_vm6 }
0x1d0c   :  { %v2238_v0 = vsub.f32 1.0, %v2237_v8  ;;  %vm2263_vm13 = vmor %vm2261_vm11, %vm2262_vm7 }
0x1d0d   :  { %v2258_v17 = vsub.f32 1.0, %v2257_v2 }
0x1d0e   :  { %v2239_v1 = vmul.f32 %v3285_v6, %v2238_v0 }
0x1d0f   :  { %v2259_v35 = vmul.f32 %v3287_v61, %v2258_v17 }
0x1d10   :  { %v2240_v36 = vadd.f32 %v3285_v6, %v2239_v1 }
0x1d11   :  { %v2260_v52 = vadd.f32 %v3287_v61, %v2259_v35 }
0x1d12   :  { %v2244_v5 = vsel %vm2243_vm12, %v3285_v6, %v2240_v36 }
0x1d13   :  { %v2264_v9 = vsel %vm2263_vm13, %v3287_v61, %v2260_v52  ;;  %v2249_v14 = vsel %vm2246_vm14, %v2248_v13, %v2244_v5 }
0x1d14   :  { %v2269_v24 = vsel %vm2266_vm15, %v2268_v22, %v2264_v9  ;;  %v2277_v30 = vmul.f32 %v2275_v29, %v2249_v14 }
0x1d15   :  { %v2288_v31 = vmul.f32 %v4298_v34, %v2269_v24 }
0x1d71   :  { %v2280_v50 = vpop.permute.xlu0 %2279 }
0x1d72   :  { %v2291_v53 = vpop.permute.xlu1 %2290  ;;  %v2282_v19 = vmul.f32 %v2280_v50, %v2249_v14 }
0x1d73   :  { %v2293_v27 = vmul.f32 %v2291_v53, %v2269_v24 }
0x1d74   :  { %2284 = vrot.lane.b32.xlu0 %v2282_v19, %s3422_s15 }
0x1d75   :  { %2295 = vrot.lane.b32.xlu1 %v2293_v27, %s3422_s15 }
0x1de6   :  { %v2285_v32 = vpop.permute.xlu0 %2284 }
0x1de7   :  { %v2296_v33 = vpop.permute.xlu1 %2295  ;;  %v2287_v46 = vadd.f32 %v2285_v32, %v2277_v30 }
0x1de8   :  { %v2298_v54 = vadd.f32 %v2296_v33, %v2288_v31 }
0x1de9   :  { %3288 = vtanh.f32 %v2287_v46 }
0x1dea   :  { %3290 = vtanh.f32 %v2298_v54 }
0x1def   :  { %v3289_v59 = vpop.eup %3288 }
0x1df0   :  { %v3291_v20 = vpop.eup %3290  ;;  %2301 = vrot.lane.b32.xlu2 %v3289_v59, %s3423_s2 }
0x1df1   :  { %2307 = vrot.lane.b32.xlu0 %v3291_v20, %s3423_s2 }
0x1df9   :  { %2312 = vrot.lane.b32.xlu0 %v2287_v46, %s3424_s17 }
0x1e4a   :  { %v2302_v10 = vpop.permute.xlu2 %2301 }
0x1e4b   :  { %v2304_v12 = vmul.f32 %v2302_v10, %v2249_v14 }
0x1e4d   :  { %2318 = vrot.lane.b32.xlu1 %v2304_v12, %s3422_s15 }
0x1e63   :  { %v2308_v16 = vpop.permute.xlu0 %2307 }
0x1e64   :  { %v2310_v21 = vmul.f32 %v2308_v16, %v2269_v24 }
0x1e66   :  { %2323 = vrot.lane.b32.xlu2 %v2310_v21, %s3423_s2 }
0x1e6b   :  { %v2313_v3 = vpop.permute.xlu0 %2312 }
0x1e6c   :  { %2315 = vst.msk [vmem:[#allocation5] sm:$0xff] %vm390_vm9, %v2313_v3 }
0x1e6d   :  { %2316 = vst.msk [vmem:[#allocation5] sm:$0xff] %vm392_vm10, %v2298_v54 }
0x1e74   :  { %v4325_v28 = vld [vmem:[#allocation5] sm:$0xff] }
0x1e75   :  { %2419 = vrot.lane.b32.xlu0 %v4325_v28, %s3422_s15 }
0x1ebf   :  { %v2319_v42 = vpop.permute.xlu1 %2318 }
0x1ec0   :  { %2321 = vst.msk [vmem:[#allocation4] sm:$0xff] %vm390_vm9, %v2319_v42  ;;  %v2324_v34 = vpop.permute.xlu2 %2323 }
0x1ec1   :  { %2327 = vst.msk [vmem:[#allocation3 + $0x20] sm:$0xff] %vm390_vm9, %v2319_v42 }
0x1ec2   :  { %2326 = vst.msk [vmem:[#allocation4] sm:$0xff] %vm392_vm10, %v2324_v34 }
0x1ec3   :  { %2328 = vst.msk [vmem:[#allocation3 + $0x18] sm:$0xff] %vm392_vm10, %v2324_v34 }
0x1ec9   :  { %v2329_v57 = vld [vmem:[#allocation4] sm:$0xff] }
0x1eca   :  { %3033 = vmatmul.msk.f32.vlgmr.msrb.gmra.mxu2 %vm133_vm0, %v2329_v57  ;;  %3034 = vmatmul.msk.f32.vlgmr.msrb.gmra.mxu3 %vm133_vm0, %v2329_v57 }
0x1ee7   :  { %v2420_v27 = vpop.permute.xlu0 %2419 }
0x1f4d   :  { %v2350_v25 = vpop.f32.mrf.mxu2  ;;  %v2370_v18 = vpop.f32.mrf.mxu3 }
0x1f4e   :  { %v2374_v38 = vadd.f32 %v2350_v25, %v4154_v15  ;;  %v2376_v44 = vadd.f32 %v2370_v18, %v4140_v48 }
0x1f50   :  { %3292 = vtanh.f32 %v2374_v38  ;;  %v3036_v49 = vmul.f32 -1.442695, %v2376_v44  ;;  %v3035_v56 = vmul.f32 -1.442695, %v2374_v38 }
0x1f51   :  { %3294 = vtanh.f32 %v2376_v44 }
0x1f52   :  { %3296 = vpow2.f32 %v3036_v49 }
0x1f56   :  { %v3293_v45 = vpop.eup %3292 }
0x1f57   :  { %v3295_v47 = vpop.eup %3294  ;;  %2424 = vrot.lane.b32.xlu1 %v3293_v45, %s3423_s2 }
0x1f58   :  { %2435 = vrot.lane.b32.xlu2 %v3295_v47, %s3423_s2  ;;  %v3297_v51 = vpop.eup %3296 }
0x1f59   :  { %v2400_v26 = vadd.f32 1.0, %v3297_v51 }
0x1f5b   :  { %3298 = vrcp.f32 %v2400_v26  ;;  %v2412_v6 = vand.u32 2147483648, %v2400_v26  ;;  %vm2406_vm2 = vweird.f32 %v2400_v26  ;;  %v2410_v61 = vand.u32 2147483647, %v2400_v26 }
0x1f5c   :  { %3300 = vpow2.f32 %v3035_v56 }
0x1f5d   :  { %v2413_v2 = vor.u32 1.1754944e-38, %v2412_v6  ;;  %vm2411_vm4 = vcmp.eq.f32.partialorder %v2410_v61, 8.507059e+37 }
0x1f61   :  { %v3299_v39 = vpop.eup %3298 }
0x1f62   :  { %v2402_v11 = vmul.f32 %v3299_v39, %v2400_v26  ;;  %v3301_v55 = vpop.eup %3300  ;;  %vm2407_vm1 = vweird.f32 %v3299_v39 }
0x1f63   :  { %v2380_v62 = vadd.f32 1.0, %v3301_v55  ;;  %vm2408_vm3 = vmor %vm2406_vm2, %vm2407_vm1 }
0x1f64   :  { %v2403_v15 = vsub.f32 1.0, %v2402_v11 }
0x1f65   :  { %3302 = vrcp.f32 %v2380_v62  ;;  %v2392_v60 = vand.u32 2147483648, %v2380_v62  ;;  %vm2386_vm6 = vweird.f32 %v2380_v62  ;;  %v2390_v63 = vand.u32 2147483647, %v2380_v62 }
0x1f66   :  { %v2404_v48 = vmul.f32 %v3299_v39, %v2403_v15 }
0x1f67   :  { %v2393_v9 = vor.u32 1.1754944e-38, %v2392_v60  ;;  %vm2391_vm8 = vcmp.eq.f32.partialorder %v2390_v63, 8.507059e+37 }
0x1f68   :  { %v2405_v58 = vadd.f32 %v3299_v39, %v2404_v48 }
0x1f6a   :  { %v2409_v8 = vsel %vm2408_vm3, %v3299_v39, %v2405_v58 }
0x1f6b   :  { %v2414_v17 = vsel %vm2411_vm4, %v2413_v2, %v2409_v8  ;;  %v3303_v1 = vpop.eup %3302 }
0x1f6c   :  { %v2382_v36 = vmul.f32 %v3303_v1, %v2380_v62  ;;  %vm2387_vm5 = vweird.f32 %v3303_v1  ;;  %v2433_v14 = vmul.f32 %v4325_v28, %v2414_v17 }
0x1f6d   :  { %vm2388_vm7 = vmor %vm2386_vm6, %vm2387_vm5 }
0x1f6e   :  { %v2383_v52 = vsub.f32 1.0, %v2382_v36 }
0x1f70   :  { %v2384_v40 = vmul.f32 %v3303_v1, %v2383_v52 }
0x1f72   :  { %v2385_v43 = vadd.f32 %v3303_v1, %v2384_v40 }
0x1f74   :  { %v2389_v5 = vsel %vm2388_vm7, %v3303_v1, %v2385_v43 }
0x1f75   :  { %v2394_v22 = vsel %vm2391_vm8, %v2393_v9, %v2389_v5 }
0x1f76   :  { %v2422_v29 = vmul.f32 %v2420_v27, %v2394_v22 }
0x1fb2   :  { %v2436_v0 = vpop.permute.xlu2 %2435 }
0x1fb3   :  { %v2438_v35 = vmul.f32 %v2436_v0, %v2414_v17 }
0x1fb5   :  { %2440 = vrot.lane.b32.xlu2 %v2438_v35, %s3422_s15 }
0x1fc9   :  { %v2425_v13 = vpop.permute.xlu1 %2424 }
0x1fca   :  { %v2427_v50 = vmul.f32 %v2425_v13, %v2394_v22 }
0x1fcc   :  { %2429 = vrot.lane.b32.xlu1 %v2427_v50, %s3422_s15 }
0x200f   :  { %v2441_v53 = vpop.permute.xlu2 %2440 }
0x2010   :  { %v2443_v24 = vadd.f32 %v2441_v53, %v2433_v14 }
0x2012   :  { %3304 = vtanh.f32 %v2443_v24 }
0x2018   :  { %v3305_v19 = vpop.eup %3304 }
0x2019   :  { %2452 = vrot.lane.b32.xlu1 %v3305_v19, %s3423_s2 }
0x203e   :  { %v2430_v30 = vpop.permute.xlu1 %2429 }
0x203f   :  { %v2432_v31 = vadd.f32 %v2430_v30, %v2422_v29 }
0x2041   :  { %3306 = vtanh.f32 %v2432_v31  ;;  %2457 = vrot.lane.b32.xlu1 %v2432_v31, %s3424_s17 }
0x2047   :  { %v3307_v32 = vpop.eup %3306 }
0x2048   :  { %2446 = vrot.lane.b32.xlu0 %v3307_v32, %s3423_s2 }
0x208b   :  { %v2453_v33 = vpop.permute.xlu1 %2452 }
0x208c   :  { %v2455_v46 = vmul.f32 %v2453_v33, %v2414_v17 }
0x208e   :  { %2468 = vrot.lane.b32.xlu0 %v2455_v46, %s3423_s2 }
0x20b3   :  { %v2458_v54 = vpop.permute.xlu1 %2457 }
0x20b4   :  { %2460 = vst.msk [vmem:[#allocation5] sm:$0xff] %vm390_vm9, %v2458_v54 }
0x20b5   :  { %2461 = vst.msk [vmem:[#allocation5] sm:$0xff] %vm392_vm10, %v2443_v24 }
0x20ba   :  { %v2447_v59 = vpop.permute.xlu0 %2446 }
0x20bb   :  { %v2449_v20 = vmul.f32 %v2447_v59, %v2394_v22 }
0x20bc   :  { %v4348_v10 = vld [vmem:[#allocation5] sm:$0xff] }
0x20bd   :  { %2564 = vrot.lane.b32.xlu1 %v4348_v10, %s3422_s15  ;;  %2463 = vrot.lane.b32.xlu2 %v2449_v20, %s3422_s15  ;;  %v1543_v20 = vadd.f32 %v4308_v7, %v4150_v4 }
0x2100   :  { %v2469_v12 = vpop.permute.xlu0 %2468 }
0x2101   :  { %2473 = vst.msk [vmem:[#allocation3 + $0x10] sm:$0xff] %vm392_vm10, %v2469_v12 }
0x2117   :  { %v2464_v16 = vpop.permute.xlu2 %2463 }
0x2118   :  { %2466 = vst.msk [vmem:[#allocation4] sm:$0xff] %vm390_vm9, %v2464_v16 }
0x2119   :  { %2471 = vst.msk [vmem:[#allocation4] sm:$0xff] %vm392_vm10, %v2469_v12 }
0x211a   :  { %2472 = vst.msk [vmem:[#allocation3 + $0x28] sm:$0xff] %vm390_vm9, %v2464_v16 }
0x2120   :  { %v2474_v21 = vld [vmem:[#allocation4] sm:$0xff] }
0x2121   :  { %3037 = vmatmul.msk.f32.vlgmr.msra.gmra.mxu0 %vm133_vm0, %v2474_v21  ;;  %3038 = vmatmul.msk.f32.vlgmr.msra.gmra.mxu1 %vm133_vm0, %v2474_v21 }
0x212f   :  { %v2565_v60 = vpop.permute.xlu1 %2564 }
0x219e   :  { %v2495_v3 = vpop.f32.mrf.mxu0  ;;  %v2515_v28 = vpop.f32.mrf.mxu1 }
0x219f   :  { %v2519_v42 = vadd.f32 %v2495_v3, %v4159_v23  ;;  %v2521_v34 = vadd.f32 %v2515_v28, %v4136_v41 }
0x21a1   :  { %3308 = vtanh.f32 %v2519_v42  ;;  %v3039_v18 = vmul.f32 -1.442695, %v2519_v42  ;;  %v3040_v47 = vmul.f32 -1.442695, %v2521_v34 }
0x21a2   :  { %3310 = vtanh.f32 %v2521_v34 }
0x21a3   :  { %3312 = vpow2.f32 %v3039_v18 }
0x21a7   :  { %v3309_v57 = vpop.eup %3308 }
0x21a8   :  { %v3311_v25 = vpop.eup %3310  ;;  %2569 = vrot.lane.b32.xlu2 %v3309_v57, %s3423_s2 }
0x21a9   :  { %2580 = vrot.lane.b32.xlu0 %v3311_v25, %s3423_s2  ;;  %v3313_v38 = vpop.eup %3312 }
0x21aa   :  { %v2525_v44 = vadd.f32 1.0, %v3313_v38 }
0x21ac   :  { %3314 = vrcp.f32 %v2525_v44  ;;  %v2537_v56 = vand.u32 2147483648, %v2525_v44  ;;  %vm2531_vm12 = vweird.f32 %v2525_v44  ;;  %v2535_v11 = vand.u32 2147483647, %v2525_v44 }
0x21ad   :  { %3316 = vpow2.f32 %v3040_v47 }
0x21ae   :  { %v2538_v55 = vor.u32 1.1754944e-38, %v2537_v56  ;;  %vm2536_vm14 = vcmp.eq.f32.partialorder %v2535_v11, 8.507059e+37 }
0x21b2   :  { %v3315_v45 = vpop.eup %3314 }
0x21b3   :  { %v2527_v49 = vmul.f32 %v3315_v45, %v2525_v44  ;;  %v3317_v41 = vpop.eup %3316  ;;  %vm2532_vm11 = vweird.f32 %v3315_v45 }
0x21b4   :  { %v2545_v26 = vadd.f32 1.0, %v3317_v41  ;;  %vm2533_vm13 = vmor %vm2531_vm12, %vm2532_vm11 }
0x21b5   :  { %v2528_v23 = vsub.f32 1.0, %v2527_v49 }
0x21b6   :  { %3318 = vrcp.f32 %v2545_v26  ;;  %v2557_v17 = vand.u32 2147483648, %v2545_v26  ;;  %vm2551_vm1 = vweird.f32 %v2545_v26  ;;  %v2555_v1 = vand.u32 2147483647, %v2545_v26 }
0x21b7   :  { %v2529_v51 = vmul.f32 %v3315_v45, %v2528_v23 }
0x21b8   :  { %v2558_v36 = vor.u32 1.1754944e-38, %v2557_v17  ;;  %vm2556_vm3 = vcmp.eq.f32.partialorder %v2555_v1, 8.507059e+37 }
0x21b9   :  { %v2530_v39 = vadd.f32 %v3315_v45, %v2529_v51 }
0x21bb   :  { %v2534_v15 = vsel %vm2533_vm13, %v3315_v45, %v2530_v39 }
0x21bc   :  { %v2539_v62 = vsel %vm2536_vm14, %v2538_v55, %v2534_v15  ;;  %v3319_v6 = vpop.eup %3318  ;;  %vm2932_vm14 = vcmask 1044484  }
0x21bd   :  { %v2547_v61 = vmul.f32 %v3319_v6, %v2545_v26  ;;  %vm2552_vm15 = vweird.f32 %v3319_v6  ;;  %v2567_v63 = vmul.f32 %v2565_v60, %v2539_v62 }
0x21be   :  { %vm2553_vm2 = vmor %vm2551_vm1, %vm2552_vm15  ;;  %vm2934_vm15 = vcmask 1045509   ;;  %vm2936_vm1 = vcmask 1046534  }
0x21bf   :  { %v2548_v8 = vsub.f32 1.0, %v2547_v61 }
0x21c1   :  { %v2549_v2 = vmul.f32 %v3319_v6, %v2548_v8 }
0x21c3   :  { %v2550_v0 = vadd.f32 %v3319_v6, %v2549_v2 }
0x21c5   :  { %v2554_v35 = vsel %vm2553_vm2, %v3319_v6, %v2550_v0  ;;  %vm2938_vm2 = vcmask 1047559  }
0x21c6   :  { %v2559_v40 = vsel %vm2556_vm3, %v2558_v36, %v2554_v35  ;;  %vm2941_vm3 = vcmask 64512  }
0x21c7   :  { %v2578_v22 = vmul.f32 %v4348_v10, %v2559_v40 }
0x2202   :  { %v2570_v48 = vpop.permute.xlu2 %2569 }
0x2203   :  { %v2572_v58 = vmul.f32 %v2570_v48, %v2539_v62 }
0x2205   :  { %2574 = vrot.lane.b32.xlu2 %v2572_v58, %s3422_s15 }
0x221b   :  { %v2581_v52 = vpop.permute.xlu0 %2580 }
0x221c   :  { %v2583_v43 = vmul.f32 %v2581_v52, %v2559_v40 }
0x221e   :  { %2585 = vrot.lane.b32.xlu0 %v2583_v43, %s3422_s15 }
0x225f   :  { %v2575_v5 = vpop.permute.xlu2 %2574 }
0x2260   :  { %v2577_v9 = vadd.f32 %v2575_v5, %v2567_v63 }
0x2262   :  { %3320 = vtanh.f32 %v2577_v9 }
0x2268   :  { %v3321_v13 = vpop.eup %3320 }
0x2269   :  { %2591 = vrot.lane.b32.xlu1 %v3321_v13, %s3423_s2  ;;  %v2779_v13 = vld [vmem:[%s4454_s7 + $0x38] sm:$0xff] }
0x226a   :  { %2816 = vmatpush.msrb.mxu0 %v2779_v13 }
0x2290   :  { %v2586_v50 = vpop.permute.xlu0 %2585 }
0x2291   :  { %v2588_v14 = vadd.f32 %v2586_v50, %v2578_v22  ;;  %v2778_v22 = vld [vmem:[%s4454_s7 + $0x30] sm:$0xff]  ;;  %v2777_v50 = vld [vmem:[%s4454_s7 + $0x28] sm:$0xff] }
0x2292   :  { %2817 = vmatpush.msrb.mxu0 %v2778_v22 }
0x2293   :  { %3322 = vtanh.f32 %v2588_v14 }
0x2294   :  { %2818 = vmatpush.msrb.mxu0 %v2777_v50 }
0x2299   :  { %v3323_v53 = vpop.eup %3322 }
0x229a   :  { %2597 = vrot.lane.b32.xlu2 %v3323_v53, %s3423_s2  ;;  %v2775_v53 = vld [vmem:[%s4454_s7 + $0x18] sm:$0xff] }
0x22db   :  { %v2592_v24 = vpop.permute.xlu1 %2591 }
0x22dc   :  { %v2594_v19 = vmul.f32 %v2592_v24, %v2539_v62  ;;  %v2774_v24 = vld [vmem:[%s4454_s7 + $0x10] sm:$0xff] }
0x22de   :  { %2608 = vrot.lane.b32.xlu0 %v2594_v19, %s3422_s15  ;;  %v2773_v19 = vld [vmem:[%s4454_s7 + $0x8] sm:$0xff] }
0x22e6   :  { %2602 = vrot.lane.b32.xlu0 %v2577_v9, %s3424_s17 }
0x22f4   :  { %v2598_v27 = vpop.permute.xlu2 %2597 }
0x22f5   :  { %v2600_v29 = vmul.f32 %v2598_v27, %v2559_v40  ;;  %v2772_v27 = vld [vmem:[%s4454_s7] sm:$0xff] }
0x22f7   :  { %2613 = vrot.lane.b32.xlu1 %v2600_v29, %s3423_s2 }
0x2350   :  { %v2609_v30 = vpop.permute.xlu0 %2608 }
0x2351   :  { %2611 = vst.msk [vmem:[#allocation4] sm:$0xff] %vm390_vm9, %v2609_v30 }
0x2352   :  { %2617 = vst.msk [vmem:[#allocation3 + $0x30] sm:$0xff] %vm390_vm9, %v2609_v30 }
0x2358   :  { %v2603_v31 = vpop.permute.xlu0 %2602 }
0x2359   :  { %2605 = vst.msk [vmem:[#allocation5] sm:$0xff] %vm390_vm9, %v2603_v31 }
0x235a   :  { %2606 = vst.msk [vmem:[#allocation5] sm:$0xff] %vm392_vm10, %v2588_v14  ;;  %v2776_v14 = vld [vmem:[%s4454_s7 + $0x20] sm:$0xff] }
0x235b   :  { %2819 = vmatpush.msrb.mxu0 %v2776_v14  ;;  %v2916_v14 = vlaneseq }
0x235d   :  { %2820 = vmatpush.msrb.mxu0 %v2775_v53 }
0x235f   :  { %2821 = vmatpush.msrb.mxu0 %v2774_v24 }
0x2361   :  { %v2707_v8 = vld [vmem:[#allocation5] sm:$0xff]  ;;  %2822 = vmatpush.msrb.mxu0 %v2773_v19 }
0x2363   :  { %2823 = vmatpush.msrb.mxu0 %v2772_v27 }
0x2369   :  { %v2614_v32 = vpop.permute.xlu1 %2613 }
0x236a   :  { %2616 = vst.msk [vmem:[#allocation4] sm:$0xff] %vm392_vm10, %v2614_v32 }
0x236b   :  { %2618 = vst.msk [vmem:[#allocation3 + $0x8] sm:$0xff] %vm392_vm10, %v2614_v32 }
0x2371   :  { %v2619_v33 = vld [vmem:[#allocation4] sm:$0xff] }
0x2372   :  { %3041 = vmatmul.msk.f32.vlgmr.msra.gmra.mxu2 %vm133_vm0, %v2619_v33  ;;  %3042 = vmatmul.msk.f32.vlgmr.msra.gmra.mxu3 %vm133_vm0, %v2619_v33  ;;  %v2765_v33 = vld [vmem:[#allocation3 + $0x8] sm:$0xff] }
0x23f5   :  { %v2660_v46 = vpop.f32.mrf.mxu3  ;;  %v2640_v59 = vpop.f32.mrf.mxu2 }
0x23f6   :  { %v2666_v54 = vadd.f32 %v2660_v46, %v4132_v37  ;;  %v2664_v10 = vadd.f32 %v2640_v59, %v1543_v20  ;;  %v2766_v46 = vld [vmem:[#allocation3 + $0x10] sm:$0xff]  ;;  %v2768_v59 = vld [vmem:[#allocation3 + $0x20] sm:$0xff]  ;;  %v2769_v20 = vld [vmem:[#allocation3 + $0x28] sm:$0xff] }
0x23f8   :  { %3324 = vtanh.f32 %v2666_v54  ;;  %v3044_v21 = vmul.f32 -1.442695, %v2666_v54  ;;  %v3043_v3 = vmul.f32 -1.442695, %v2664_v10  ;;  %v2767_v54 = vld [vmem:[#allocation3 + $0x18] sm:$0xff] }
0x23f9   :  { %3326 = vtanh.f32 %v2664_v10  ;;  %v2770_v10 = vld [vmem:[#allocation3 + $0x30] sm:$0xff] }
0x23fa   :  { %3328 = vpow2.f32 %v3044_v21 }
0x23fb   :  { %3330 = vpow2.f32 %v3043_v3 }
0x23fe   :  { %v3325_v12 = vpop.eup %3324 }
0x23ff   :  { %2725 = vrot.lane.b32.xlu2 %v3325_v12, %s3423_s2  ;;  %v3327_v16 = vpop.eup %3326 }
0x2400   :  { %v3329_v28 = vpop.eup %3328 }
0x2401   :  { %v2690_v42 = vadd.f32 1.0, %v3329_v28  ;;  %v3331_v37 = vpop.eup %3330  ;;  %v3082_v28 = vld [vmem:[%s4456_s9] ss:$0 sm:$0xff] }
0x2402   :  { %v2670_v34 = vadd.f32 1.0, %v3331_v37 }
0x2403   :  { %3332 = vrcp.f32 %v2690_v42  ;;  %v2702_v47 = vand.u32 2147483648, %v2690_v42  ;;  %vm2696_vm5 = vweird.f32 %v2690_v42  ;;  %v2700_v49 = vand.u32 2147483647, %v2690_v42 }
0x2404   :  { %3334 = vrcp.f32 %v2670_v34  ;;  %v2682_v15 = vand.u32 2147483648, %v2670_v34  ;;  %vm2676_vm11 = vweird.f32 %v2670_v34  ;;  %v2680_v55 = vand.u32 2147483647, %v2670_v34 }
0x2405   :  { %v2703_v41 = vor.u32 1.1754944e-38, %v2702_v47  ;;  %vm2701_vm7 = vcmp.eq.f32.partialorder %v2700_v49, 8.507059e+37 }
0x2406   :  { %v2683_v62 = vor.u32 1.1754944e-38, %v2682_v15  ;;  %vm2681_vm13 = vcmp.eq.f32.partialorder %v2680_v55, 8.507059e+37 }
0x2407   :  { %2714 = vrot.lane.b32.xlu2 %v3327_v16, %s3423_s2  ;;  %v3081_v16 = vld [vmem:[%s4455_s8] ss:$0 sm:$0xff] }
0x2409   :  { %v3333_v57 = vpop.eup %3332 }
0x240a   :  { %v2692_v4 = vmul.f32 %v3333_v57, %v2690_v42  ;;  %v3335_v25 = vpop.eup %3334  ;;  %vm2697_vm4 = vweird.f32 %v3333_v57 }
0x240b   :  { %v2672_v38 = vmul.f32 %v3335_v25, %v2670_v34  ;;  %vm2698_vm6 = vmor %vm2696_vm5, %vm2697_vm4  ;;  %vm2677_vm8 = vweird.f32 %v3335_v25 }
0x240c   :  { %v2693_v7 = vsub.f32 1.0, %v2692_v4  ;;  %vm2678_vm12 = vmor %vm2676_vm11, %vm2677_vm8 }
0x240d   :  { %v2673_v45 = vsub.f32 1.0, %v2672_v38 }
0x240e   :  { %v2694_v18 = vmul.f32 %v3333_v57, %v2693_v7 }
0x240f   :  { %v2674_v51 = vmul.f32 %v3335_v25, %v2673_v45 }
0x2410   :  { %v2695_v44 = vadd.f32 %v3333_v57, %v2694_v18  ;;  %v3425_v18 = vmov 0  }
0x2411   :  { %v2675_v11 = vadd.f32 %v3335_v25, %v2674_v51  ;;  %3079 = vset.pattern.permute.xlu2 %v3425_v18  ;;  %3080 = vset.pattern.permute.xlu0 %v3425_v18 }
0x2412   :  { %v2699_v23 = vsel %vm2698_vm6, %v3333_v57, %v2695_v44 }
0x2413   :  { %v2704_v39 = vsel %vm2701_vm7, %v2703_v41, %v2699_v23  ;;  %v2679_v48 = vsel %vm2678_vm12, %v3335_v25, %v2675_v11 }
0x2414   :  { %v2684_v6 = vsel %vm2681_vm13, %v2683_v62, %v2679_v48  ;;  %v2723_v2 = vmul.f32 %v2707_v8, %v2704_v39  ;;  %v3083_v48 = vld [vmem:[#allocation6] ss:$0 sm:$0xff] }
0x2459   :  { %v2726_v26 = vpop.permute.xlu2 %2725 }
0x245a   :  { %v2728_v56 = vmul.f32 %v2726_v26, %v2704_v39 }
0x245c   :  { %2730 = vrot.lane.b32.xlu1 %v2728_v56, %s3422_s15 }
0x2461   :  { %v2715_v58 = vpop.permute.xlu2 %2714 }
0x2462   :  { %v2717_v61 = vmul.f32 %v2715_v58, %v2684_v6 }
0x2464   :  { %2709 = vrot.lane.b32.xlu1 %v2707_v8, %s3422_s15  ;;  %2719 = vrot.lane.b32.xlu2 %v2717_v61, %s3422_s15 }
0x24be   :  { %v2720_v52 = vpop.permute.xlu2 %2719 }
0x24ce   :  { %v2731_v0 = vpop.permute.xlu1 %2730 }
0x24cf   :  { %v2733_v17 = vadd.f32 %v2731_v0, %v2723_v2 }
0x24d1   :  { %3336 = vtanh.f32 %v2733_v17 }
0x24d6   :  { %v2710_v1 = vpop.permute.xlu1 %2709 }
0x24d7   :  { %v3337_v35 = vpop.eup %3336  ;;  %v2712_v36 = vmul.f32 %v2710_v1, %v2684_v6 }
0x24d8   :  { %2742 = vrot.lane.b32.xlu0 %v3337_v35, %s3423_s2 }
0x24d9   :  { %v2722_v40 = vadd.f32 %v2720_v52, %v2712_v36 }
0x24db   :  { %3338 = vtanh.f32 %v2722_v40 }
0x24e1   :  { %v3339_v43 = vpop.eup %3338 }
0x24e2   :  { %2736 = vrot.lane.b32.xlu1 %v3339_v43, %s3423_s2 }
0x254a   :  { %v2743_v60 = vpop.permute.xlu0 %2742 }
0x254b   :  { %v2745_v63 = vmul.f32 %v2743_v60, %v2704_v39 }
0x254d   :  { %2758 = vrot.lane.b32.xlu0 %v2745_v63, %s3423_s2 }
0x2554   :  { %v2737_v5 = vpop.permute.xlu1 %2736 }
0x2555   :  { %v2739_v9 = vmul.f32 %v2737_v5, %v2684_v6  ;;  %2747 = vrot.lane.b32.xlu0 %v2722_v40, %s3424_s17 }
0x2557   :  { %2753 = vrot.lane.b32.xlu2 %v2739_v9, %s3422_s15 }
0x25b1   :  { %v2754_v29 = vpop.permute.xlu2 %2753 }
0x25b2   :  { %2756 = vst.msk [vmem:[#allocation4] sm:$0xff] %vm390_vm9, %v2754_v29 }
0x25b3   :  { %2762 = vst.msk [vmem:[#allocation3 + $0x38] sm:$0xff] %vm390_vm9, %v2754_v29  ;;  %v2917_v29 = vand.u32 127, %v2916_v14 }
0x25ba   :  { %v2771_v12 = vld [vmem:[#allocation3 + $0x38] sm:$0xff] }
0x25bf   :  { %v2759_v30 = vpop.permute.xlu0 %2758 }
0x25c0   :  { %2761 = vst.msk [vmem:[#allocation4] sm:$0xff] %vm392_vm10, %v2759_v30 }
0x25c1   :  { %2763 = vst.msk [vmem:[#allocation3] sm:$0xff] %vm392_vm10, %v2759_v30 }
0x25c7   :  { %v2748_v31 = vpop.permute.xlu0 %2747 }
0x25c8   :  { %2750 = vst.msk [vmem:[#allocation5] sm:$0xff] %vm390_vm9, %v2748_v31  ;;  %v2764_v32 = vld [vmem:[#allocation3] sm:$0xff] }
0x25c9   :  { %2751 = vst.msk [vmem:[#allocation5] sm:$0xff] %vm392_vm10, %v2733_v17  ;;  %3045 = vmatmul.msk.f32.vlgmr.msrb.gmra.mxu0 %vm133_vm0, %v2764_v32  ;;  %vm2930_vm10 = vcmask 1043459  }
0x25d1   :  { %3046 = vmatmul.msk.f32.gmra.mxu0 %vm133_vm0, %v2765_v33 }
0x25d9   :  { %3047 = vmatmul.msk.f32.gmra.mxu0 %vm133_vm0, %v2766_v46 }
0x25e1   :  { %3048 = vmatmul.msk.f32.gmra.mxu0 %vm133_vm0, %v2767_v54 }
0x25e9   :  { %3049 = vmatmul.msk.f32.gmra.mxu0 %vm133_vm0, %v2768_v59 }
0x25f1   :  { %3050 = vmatmul.msk.f32.gmra.mxu0 %vm133_vm0, %v2769_v20 }
0x25f9   :  { %3051 = vmatmul.msk.f32.gmra.mxu0 %vm133_vm0, %v2770_v10 }
0x2601   :  { %3052 = vmatmul.msk.f32.gmra.mxu0 %vm133_vm0, %v2771_v12  ;;  %vm2926_vm0 = vcmask 1041409  }
0x2646   :  { %v2825_v21 = vpop.f32.mrf.mxu0 }
0x2647   :  { %v2826_v3 = vadd.f32 %v3081_v16, %v2825_v21 }
0x2649   :  { %v2849_v42 = vmax.f32 %v2826_v3, 0.0 }
0x264b   :  { %v2861_v37 = vmul.f32 %v3082_v28, %v2849_v42 }
0x264d   :  { %v2869_v34 = vsel %vm390_vm9, %v2861_v37, 0.0 }
0x264e   :  { %v2828_v57 = vpop.f32.mrf.mxu0  ;;  %2870 = vadd.xlane.f32.xlu1 %v2869_v34 }
0x264f   :  { %v2829_v4 = vadd.f32 %v3081_v16, %v2828_v57 }
0x2651   :  { %v2850_v7 = vmax.f32 %v2829_v4, 0.0 }
0x2653   :  { %v2862_v25 = vmul.f32 %v3082_v28, %v2850_v7 }
0x2655   :  { %v2872_v38 = vsel %vm390_vm9, %v2862_v25, 0.0 }
0x2656   :  { %v2831_v44 = vpop.f32.mrf.mxu0  ;;  %2873 = vadd.xlane.f32.xlu2 %v2872_v38 }
0x2657   :  { %v2832_v45 = vadd.f32 %v3081_v16, %v2831_v44 }
0x2659   :  { %v2851_v47 = vmax.f32 %v2832_v45, 0.0 }
0x265b   :  { %v2863_v49 = vmul.f32 %v3082_v28, %v2851_v47 }
0x265d   :  { %v2875_v23 = vsel %vm390_vm9, %v2863_v49, 0.0 }
0x265e   :  { %v2834_v51 = vpop.f32.mrf.mxu0  ;;  %2876 = vadd.xlane.f32.xlu0 %v2875_v23 }
0x265f   :  { %v2835_v41 = vadd.f32 %v3081_v16, %v2834_v51 }
0x2661   :  { %v2852_v26 = vmax.f32 %v2835_v41, 0.0 }
0x2663   :  { %v2864_v39 = vmul.f32 %v3082_v28, %v2852_v26 }
0x2665   :  { %v2878_v56 = vsel %vm390_vm9, %v2864_v39, 0.0 }
0x2666   :  { %v2837_v11 = vpop.f32.mrf.mxu0  ;;  %2879 = vadd.xlane.f32.xlu1 %v2878_v56 }
0x2667   :  { %v2838_v15 = vadd.f32 %v3081_v16, %v2837_v11 }
0x2669   :  { %v2853_v55 = vmax.f32 %v2838_v15, 0.0 }
0x266b   :  { %v2865_v62 = vmul.f32 %v3082_v28, %v2853_v55 }
0x266d   :  { %v2881_v58 = vsel %vm390_vm9, %v2865_v62, 0.0 }
0x266e   :  { %v2840_v6 = vpop.f32.mrf.mxu0  ;;  %2882 = vadd.xlane.f32.xlu0 %v2881_v58  ;;  %2897 = vperm.xlu2 %3079, %v3083_v48  }
0x266f   :  { %v2841_v61 = vadd.f32 %v3081_v16, %v2840_v6 }
0x2671   :  { %v2854_v8 = vmax.f32 %v2841_v61, 0.0 }
0x2673   :  { %v2866_v2 = vmul.f32 %v3082_v28, %v2854_v8 }
0x2675   :  { %v2884_v0 = vsel %vm390_vm9, %v2866_v2, 0.0 }
0x2676   :  { %v2843_v17 = vpop.f32.mrf.mxu0  ;;  %2885 = vadd.xlane.f32.xlu1 %v2884_v0 }
0x2677   :  { %v2844_v1 = vadd.f32 %v3081_v16, %v2843_v17 }
0x2679   :  { %v2855_v35 = vmax.f32 %v2844_v1, 0.0 }
0x267b   :  { %v2867_v36 = vmul.f32 %v3082_v28, %v2855_v35 }
0x267d   :  { %v2887_v52 = vsel %vm390_vm9, %v2867_v36, 0.0 }
0x267e   :  { %2888 = vadd.xlane.f32.xlu0 %v2887_v52  ;;  %v2846_v40 = vpop.f32.mrf.mxu0 }
0x267f   :  { %v2847_v43 = vadd.f32 %v3081_v16, %v2846_v40 }
0x2681   :  { %v2856_v60 = vmax.f32 %v2847_v43, 0.0 }
0x2683   :  { %v2868_v63 = vmul.f32 %v3082_v28, %v2856_v60 }
0x2685   :  { %v2890_v5 = vsel %vm390_vm9, %v2868_v63, 0.0  ;;  %vm2928_vm9 = vcmask 1042434  }
0x2686   :  { %2891 = vadd.xlane.f32.xlu1 %v2890_v5 }
0x26c1   :  { %v2871_v9 = vpop.xlane.xlu1 %2870 }
0x26c9   :  { %v2874_v13 = vpop.xlane.xlu2 %2873 }
0x26d1   :  { %v2877_v22 = vpop.xlane.xlu0 %2876  ;;  %v2898_v24 = vpop.permute.xlu2 %2897 }
0x26d2   :  { %v2900_v19 = vadd.f32 %v2898_v24, %v2871_v9  ;;  %v2901_v27 = vadd.f32 %v2898_v24, %v2874_v13  ;;  %v2902_v30 = vadd.f32 %v2898_v24, %v2877_v22 }
0x26d4   :  { %v2918_v32 = vperm.slane %v2900_v19, %v2917_v29  ;;  %v2919_v33 = vperm.slane %v2901_v27, %v2917_v29  ;;  %v2920_v10 = vperm.slane %v2902_v30, %v2917_v29 }
0x26d6   :  { %v2927_v16 = vsel %vm2926_vm0, %v2919_v33, %v2918_v32 }
0x26d7   :  { %v2929_v42 = vsel %vm2928_vm9, %v2920_v10, %v2927_v16 }
0x26d9   :  { %v2880_v50 = vpop.xlane.xlu1 %2879 }
0x26da   :  { %v2903_v46 = vadd.f32 %v2898_v24, %v2880_v50 }
0x26dc   :  { %v2921_v21 = vperm.slane %v2903_v46, %v2917_v29 }
0x26de   :  { %v2931_v57 = vsel %vm2930_vm10, %v2921_v21, %v2929_v42 }
0x26e1   :  { %v2883_v53 = vpop.xlane.xlu0 %2882 }
0x26e2   :  { %v2904_v59 = vadd.f32 %v2898_v24, %v2883_v53 }
0x26e4   :  { %v2922_v3 = vperm.slane %v2904_v59, %v2917_v29 }
0x26e6   :  { %v2933_v7 = vsel %vm2932_vm14, %v2922_v3, %v2931_v57 }
0x26e9   :  { %v2886_v31 = vpop.xlane.xlu1 %2885 }
0x26ea   :  { %v2905_v20 = vadd.f32 %v2898_v24, %v2886_v31 }
0x26ec   :  { %v2923_v28 = vperm.slane %v2905_v20, %v2917_v29 }
0x26ee   :  { %v2935_v25 = vsel %vm2934_vm15, %v2923_v28, %v2933_v7 }
0x26f1   :  { %v2889_v54 = vpop.xlane.xlu0 %2888 }
0x26f2   :  { %v2906_v12 = vadd.f32 %v2898_v24, %v2889_v54 }
0x26f4   :  { %v2924_v37 = vperm.slane %v2906_v12, %v2917_v29 }
0x26f6   :  { %v2937_v38 = vsel %vm2936_vm1, %v2924_v37, %v2935_v25 }
0x26f9   :  { %v2892_v34 = vpop.xlane.xlu1 %2891 }
0x26fa   :  { %v2907_v4 = vadd.f32 %v2898_v24, %v2892_v34 }
0x26fc   :  { %v2925_v18 = vperm.slane %v2907_v4, %v2917_v29 }
0x26fe   :  { %v2939_v44 = vsel %vm2938_vm2, %v2925_v18, %v2937_v38 }
0x26ff   :  { %2942 = vst.msk [vmem:[%s4458_s11] sm:$0xff] %vm2941_vm3, %v2939_v44 }
0x2700   :  { %2947 = vsyncpa [#allocation8], 1 }
0x2701   :  { %2948 = vsyncpa [#allocation10], 1 }

</bundles_post_ra>
